<compile_context>
chip_gen: v7x
topology: tpu7x:2x2x1
jax: 0.10.0
libtpu: 0.0.40
codegen_flags: <defaults>
</compile_context>

<pallas_src>
import functools

import jax
import jax.numpy as jnp
from jax import lax
from jax.experimental import pallas as pl
from jax.experimental.pallas import tpu as pltpu


def decoder_layer_kernel(
    xq_ref, xf_ref, mem_ref, tmask_ref, smask_ref,
    g1_ref, be1_ref,
    wq_s_ref, bq_s_ref, wk_s_ref, bk_s_ref, wv_s_ref, bv_s_ref, wo_s_ref, bo_s_ref,
    g2_ref, be2_ref,
    wq_c_ref, bq_c_ref, wk_c_ref, bk_c_ref, wv_c_ref, bv_c_ref, wo_c_ref, bo_c_ref,
    g3_ref, be3_ref,
    w1_ref, b1_ref, w2_ref, b2_ref,
    o_ref,
    k_self, v_self, k_mem, v_mem, attn_scr,
    *, num_heads, eps):
    f32 = jnp.float32
    bf16 = jnp.bfloat16
    qb = pl.program_id(1)

    x = xq_ref[0]                         # (TQ, D) f32 query block (residual stream)
    TQ, D = x.shape
    dk = D // num_heads
    scale = 1.0 / (dk ** 0.5)
    neg = f32(-1e9)
    contract_last = (((1,), (1,)), ((), ()))   # contract last dim of both, no batch

    def layer_norm(v, g_ref, b_ref):
        mean = jnp.mean(v, axis=-1, keepdims=True)
        # torch.std default is unbiased (ddof = 1); eps added to std (not var)
        var = jnp.sum((v - mean) ** 2, axis=-1, keepdims=True) * (1.0 / (D - 1))
        inv = pl.reciprocal(jnp.sqrt(var) + eps, approx=True)   # EUP slot
        return g_ref[0] * (v - mean) * inv + b_ref[0]

    # ---- once per batch (qb == 0): project K/V for both attentions into VMEM ----
    @pl.when(qb == 0)
    def _():
        xfn = layer_norm(xf_ref[0], g1_ref, be1_ref).astype(bf16)   # (S_tgt, D)
        k_self[...] = (jnp.dot(xfn, wk_s_ref[...], preferred_element_type=f32)
                       + bk_s_ref[0]).astype(bf16)
        v_self[...] = (jnp.dot(xfn, wv_s_ref[...], preferred_element_type=f32)
                       + bv_s_ref[0]).astype(bf16)
        m_bf = mem_ref[0].astype(bf16)     # memory is used raw (no LN) in DecoderLayer
        k_mem[...] = (jnp.dot(m_bf, wk_c_ref[...], preferred_element_type=f32)
                      + bk_c_ref[0]).astype(bf16)
        v_mem[...] = (jnp.dot(m_bf, wv_c_ref[...], preferred_element_type=f32)
                      + bv_c_ref[0]).astype(bf16)

    # additive mask biases, hoisted out of the head loops (f32, pre-softmax)
    tgt_bias = jnp.where(tmask_ref[0] > 0, f32(0.0), neg)     # (TQ, S_tgt)
    src_bias = jnp.where(smask_ref[0] > 0, f32(0.0), neg)     # (1,  S_src) -> broadcasts

    def mha(q_norm, k_scr, v_scr, mask_bias, wq_ref, bq_ref, wo_ref, bo_ref):
        q = jnp.dot(q_norm.astype(bf16), wq_ref[...],
                    preferred_element_type=f32) + bq_ref[0]        # (TQ, D) f32
        for h in range(num_heads):          # static unroll: H is small
            sl = slice(h * dk, (h + 1) * dk)
            qh = q[:, sl].astype(bf16)
            kh = k_scr[:, sl]               # (S_kv, dk) bf16
            vh = v_scr[:, sl]
            s = lax.dot_general(qh, kh, contract_last,
                                preferred_element_type=f32)        # (TQ, S_kv), no .T
            s = s * scale + mask_bias
            m = jnp.max(s, axis=-1, keepdims=True)
            e = jnp.exp(s - m)
            p = (e * pl.reciprocal(jnp.sum(e, axis=-1, keepdims=True),
                                   approx=True)).astype(bf16)
            attn_scr[:, sl] = jnp.dot(p, vh, preferred_element_type=f32)
        return (jnp.dot(attn_scr[...].astype(bf16), wo_ref[...],
                        preferred_element_type=f32) + bo_ref[0])

    # ---- sublayer 0: pre-LN masked self-attention + residual ----
    x1 = x + mha(layer_norm(x, g1_ref, be1_ref), k_self, v_self, tgt_bias,
                 wq_s_ref, bq_s_ref, wo_s_ref, bo_s_ref)
    # ---- sublayer 1: pre-LN cross-attention over encoder memory + residual ----
    x2 = x1 + mha(layer_norm(x1, g2_ref, be2_ref), k_mem, v_mem, src_bias,
                  wq_c_ref, bq_c_ref, wo_c_ref, bo_c_ref)
    # ---- sublayer 2: pre-LN position-wise FFN + residual ----
    x2n = layer_norm(x2, g3_ref, be3_ref).astype(bf16)
    hid = jnp.maximum(jnp.dot(x2n, w1_ref[...], preferred_element_type=f32)
                      + b1_ref[0], 0.0)
    ff = jnp.dot(hid.astype(bf16), w2_ref[...], preferred_element_type=f32) + b2_ref[0]
    o_ref[0] = (x2 + ff).astype(o_ref.dtype)


def _pick_tq(s):
    for cand in (256, 128, 64, 32, 16, 8):
        if s % cand == 0:
            return cand
    return s


def decoder_layer(x, memory, src_mask, tgt_mask, params, *, num_heads, eps=1e-6):
    B, S_t, D = x.shape
    S_s = memory.shape[1]
    Dff = params["ffn"]["w1"].shape[1]
    TQ = _pick_tq(S_t)
    NQ = S_t // TQ
    bf16 = jnp.bfloat16

    def attn_args(p):
        return [p["wq"].astype(bf16), p["bq"], p["wk"].astype(bf16), p["bk"],
                p["wv"].astype(bf16), p["bv"], p["wo"].astype(bf16), p["bo"]]

    const = lambda shape: pl.BlockSpec(shape, lambda b, q: (0, 0))
    attn_specs = [const((D, D)), const((1, D))] * 4
    ln_specs = [const((1, D)), const((1, D))]

    in_specs = [
        pl.BlockSpec((1, TQ, D), lambda b, q: (b, q, 0)),    # x (query block)
        pl.BlockSpec((1, S_t, D), lambda b, q: (b, 0, 0)),   # x (full, for self K/V)
        pl.BlockSpec((1, S_s, D), lambda b, q: (b, 0, 0)),   # memory (full, K/V)
        pl.BlockSpec((1, TQ, S_t), lambda b, q: (b, q, 0)),  # tgt_mask rows
        pl.BlockSpec((1, 1, S_s), lambda b, q: (b, 0, 0)),   # src_mask
    ] + ln_specs + attn_specs + ln_specs + attn_specs + ln_specs + [
        const((D, Dff)), const((1, Dff)), const((Dff, D)), const((1, D)),
    ]

    args = [x, x, memory, tgt_mask, src_mask,
            params["ln1"]["g"], params["ln1"]["b"],
            *attn_args(params["self_attn"]),
            params["ln2"]["g"], params["ln2"]["b"],
            *attn_args(params["src_attn"]),
            params["ln3"]["g"], params["ln3"]["b"],
            params["ffn"]["w1"].astype(bf16), params["ffn"]["b1"],
            params["ffn"]["w2"].astype(bf16), params["ffn"]["b2"]]

    kernel = functools.partial(decoder_layer_kernel, num_heads=num_heads, eps=eps)

    return pl.pallas_call(
        kernel,
        out_shape=jax.ShapeDtypeStruct((B, S_t, D), x.dtype),
        grid_spec=pltpu.PrefetchScalarGridSpec(
            num_scalar_prefetch=0,
            grid=(B, NQ),
            in_specs=in_specs,
            out_specs=pl.BlockSpec((1, TQ, D), lambda b, q: (b, q, 0)),
            scratch_shapes=[
                pltpu.VMEM((S_t, D), bf16),        # self-attn K
                pltpu.VMEM((S_t, D), bf16),        # self-attn V
                pltpu.VMEM((S_s, D), bf16),        # cross-attn K (memory)
                pltpu.VMEM((S_s, D), bf16),        # cross-attn V (memory)
                pltpu.VMEM((TQ, D), jnp.float32),  # per-tile head-output accumulator
            ]),
        compiler_params=pltpu.CompilerParams(
            # batch axis parallel (megacore); query-tile axis stays "arbitrary"
            # because K/V scratch is filled at qb == 0 and reused by later tiles.
            dimension_semantics=("parallel", "arbitrary"),
            vmem_limit_bytes=48 * 1024 * 1024,
        ),
    )(*args)


def decoder_layer_ref(x, memory, src_mask, tgt_mask, params, *, num_heads, eps=1e-6):
    """Pure-JAX f32 reference with identical math (for correctness check)."""
    B, S_t, D = x.shape
    dk = D // num_heads

    def ln(v, p):
        mean = jnp.mean(v, axis=-1, keepdims=True)
        var = jnp.sum((v - mean) ** 2, axis=-1, keepdims=True) / (D - 1)
        return p["g"][0] * (v - mean) / (jnp.sqrt(var) + eps) + p["b"][0]

    def mha(q_in, kv_in, mask, p):
        Sq, Sk = q_in.shape[1], kv_in.shape[1]
        q = q_in @ p["wq"] + p["bq"][0]
        k = kv_in @ p["wk"] + p["bk"][0]
        v = kv_in @ p["wv"] + p["bv"][0]
        q = q.reshape(B, Sq, num_heads, dk).transpose(0, 2, 1, 3)
        k = k.reshape(B, Sk, num_heads, dk).transpose(0, 2, 1, 3)
        v = v.reshape(B, Sk, num_heads, dk).transpose(0, 2, 1, 3)
        s = jnp.einsum("bhqd,bhkd->bhqk", q, k) / jnp.sqrt(jnp.float32(dk))
        s = jnp.where(mask[:, None, :, :] > 0, s, -1e9)
        a = jax.nn.softmax(s, axis=-1)
        o = jnp.einsum("bhqk,bhkd->bhqd", a, v).transpose(0, 2, 1, 3).reshape(B, Sq, D)
        return o @ p["wo"] + p["bo"][0]

    xn1 = ln(x, params["ln1"])
    x = x + mha(xn1, xn1, tgt_mask, params["self_attn"])
    xn2 = ln(x, params["ln2"])
    x = x + mha(xn2, memory, src_mask, params["src_attn"])
    xn3 = ln(x, params["ln3"])
    ff = (jnp.maximum(xn3 @ params["ffn"]["w1"] + params["ffn"]["b1"][0], 0.0)
          @ params["ffn"]["w2"] + params["ffn"]["b2"][0])
    return x + ff


if __name__ == "__main__":
    B, S_T, S_S, D, H, DFF = 2, 8, 16, 32, 4, 64

    key = jax.random.PRNGKey(0)
    std = 0.05

    def linear(k, din, dout):
        kw, kb = jax.random.split(k)
        return (jax.random.normal(kw, (din, dout), jnp.float32) * std,
                jax.random.normal(kb, (1, dout), jnp.float32) * std)

    def attn_params(k):
        ks = jax.random.split(k, 4)
        wq, bq = linear(ks[0], D, D)
        wk, bk = linear(ks[1], D, D)
        wv, bv = linear(ks[2], D, D)
        wo, bo = linear(ks[3], D, D)
        return {"wq": wq, "bq": bq, "wk": wk, "bk": bk,
                "wv": wv, "bv": bv, "wo": wo, "bo": bo}

    k_self, k_src, k_ff1, k_ff2, k_x, k_m = jax.random.split(key, 6)
    w1, b1 = linear(k_ff1, D, DFF)
    w2, b2 = linear(k_ff2, DFF, D)
    ln_p = lambda: {"g": jnp.ones((1, D), jnp.float32),
                    "b": jnp.zeros((1, D), jnp.float32)}
    params = {
        "ln1": ln_p(), "self_attn": attn_params(k_self),
        "ln2": ln_p(), "src_attn": attn_params(k_src),
        "ln3": ln_p(),
        "ffn": {"w1": w1, "b1": b1, "w2": w2, "b2": b2},
    }

    x = jax.random.normal(k_x, (B, S_T, D), jnp.float32)
    memory = jax.random.normal(k_m, (B, S_S, D), jnp.float32)

    # target mask: padding AND causal (subsequent) mask -> (B, S_T, S_T)
    tgt_lens = jnp.array([S_T, 5], jnp.int32)
    tgt_pad = (jnp.arange(S_T)[None, :] < tgt_lens[:, None]).astype(jnp.float32)
    causal = jnp.tril(jnp.ones((S_T, S_T), jnp.float32))
    tgt_mask = tgt_pad[:, None, :] * causal[None, :, :]
    # source mask: padding only -> (B, 1, S_S)
    src_lens = jnp.array([S_S, 11], jnp.int32)
    src_mask = (jnp.arange(S_S)[None, :] < src_lens[:, None]
                ).astype(jnp.float32)[:, None, :]

    out = decoder_layer(x, memory, src_mask, tgt_mask, params, num_heads=H)
    out = jax.block_until_ready(out)

    ref = decoder_layer_ref(x, memory, src_mask, tgt_mask, params, num_heads=H)
    assert out.shape == (B, S_T, D)
    # bf16 MXU operands + approx reciprocals -> compare against the f32
    # reference with a tolerance appropriate for bf16 matmul rounding.
    assert jnp.allclose(out, ref, atol=3e-2, rtol=3e-2), (
        "Pallas output mismatch vs JAX reference: max abs diff = "
        f"{jnp.max(jnp.abs(out - ref))}")

    print("KERNEL_OK")
</pallas_src>

<mosaic_0001>
module attributes {stable_mosaic.version = 11 : i64} {
  func.func @decoder_layer_kernel(%arg0: i32, %arg1: i32, %arg2: memref<1x8x32xf32, #tpu.memory_space<vmem>>, %arg3: memref<1x8x32xf32, #tpu.memory_space<vmem>>, %arg4: memref<1x16x32xf32, #tpu.memory_space<vmem>>, %arg5: memref<1x8x8xf32, #tpu.memory_space<vmem>>, %arg6: memref<1x1x16xf32, #tpu.memory_space<vmem>>, %arg7: memref<1x32xf32, #tpu.memory_space<vmem>>, %arg8: memref<1x32xf32, #tpu.memory_space<vmem>>, %arg9: memref<32x32xbf16, #tpu.memory_space<vmem>>, %arg10: memref<1x32xf32, #tpu.memory_space<vmem>>, %arg11: memref<32x32xbf16, #tpu.memory_space<vmem>>, %arg12: memref<1x32xf32, #tpu.memory_space<vmem>>, %arg13: memref<32x32xbf16, #tpu.memory_space<vmem>>, %arg14: memref<1x32xf32, #tpu.memory_space<vmem>>, %arg15: memref<32x32xbf16, #tpu.memory_space<vmem>>, %arg16: memref<1x32xf32, #tpu.memory_space<vmem>>, %arg17: memref<1x32xf32, #tpu.memory_space<vmem>>, %arg18: memref<1x32xf32, #tpu.memory_space<vmem>>, %arg19: memref<32x32xbf16, #tpu.memory_space<vmem>>, %arg20: memref<1x32xf32, #tpu.memory_space<vmem>>, %arg21: memref<32x32xbf16, #tpu.memory_space<vmem>>, %arg22: memref<1x32xf32, #tpu.memory_space<vmem>>, %arg23: memref<32x32xbf16, #tpu.memory_space<vmem>>, %arg24: memref<1x32xf32, #tpu.memory_space<vmem>>, %arg25: memref<32x32xbf16, #tpu.memory_space<vmem>>, %arg26: memref<1x32xf32, #tpu.memory_space<vmem>>, %arg27: memref<1x32xf32, #tpu.memory_space<vmem>>, %arg28: memref<1x32xf32, #tpu.memory_space<vmem>>, %arg29: memref<32x64xbf16, #tpu.memory_space<vmem>>, %arg30: memref<1x64xf32, #tpu.memory_space<vmem>>, %arg31: memref<64x32xbf16, #tpu.memory_space<vmem>>, %arg32: memref<1x32xf32, #tpu.memory_space<vmem>>, %arg33: memref<1x8x32xf32, #tpu.memory_space<vmem>>, %arg34: memref<8x32xbf16, #tpu.memory_space<vmem>>, %arg35: memref<8x32xbf16, #tpu.memory_space<vmem>>, %arg36: memref<16x32xbf16, #tpu.memory_space<vmem>>, %arg37: memref<16x32xbf16, #tpu.memory_space<vmem>>, %arg38: memref<8x32xf32, #tpu.memory_space<vmem>>) attributes {dimension_semantics = [#tpu.dimension_semantics<parallel>, #tpu.dimension_semantics<arbitrary>], iteration_bounds = array<i64: 2, 1>, scalar_prefetch = 0 : i64, scratch_operands = 5 : i64, tpu.core_type = #tpu.core_type<tc>, window_params = [{transform_indices = @transform_0, window_bounds = array<i64: 1, 8, 32>}, {transform_indices = @transform_1, window_bounds = array<i64: 1, 8, 32>}, {transform_indices = @transform_2, window_bounds = array<i64: 1, 16, 32>}, {transform_indices = @transform_3, window_bounds = array<i64: 1, 8, 8>}, {transform_indices = @transform_4, window_bounds = array<i64: 1, 1, 16>}, {pipeline_mode = #tpu.pipeline_mode<synchronous>, transform_indices = @transform_5, window_bounds = array<i64: 1, 32>}, {pipeline_mode = #tpu.pipeline_mode<synchronous>, transform_indices = @transform_6, window_bounds = array<i64: 1, 32>}, {pipeline_mode = #tpu.pipeline_mode<synchronous>, transform_indices = @transform_7, window_bounds = array<i64: 32, 32>}, {pipeline_mode = #tpu.pipeline_mode<synchronous>, transform_indices = @transform_8, window_bounds = array<i64: 1, 32>}, {pipeline_mode = #tpu.pipeline_mode<synchronous>, transform_indices = @transform_9, window_bounds = array<i64: 32, 32>}, {pipeline_mode = #tpu.pipeline_mode<synchronous>, transform_indices = @transform_10, window_bounds = array<i64: 1, 32>}, {pipeline_mode = #tpu.pipeline_mode<synchronous>, transform_indices = @transform_11, window_bounds = array<i64: 32, 32>}, {pipeline_mode = #tpu.pipeline_mode<synchronous>, transform_indices = @transform_12, window_bounds = array<i64: 1, 32>}, {pipeline_mode = #tpu.pipeline_mode<synchronous>, transform_indices = @transform_13, window_bounds = array<i64: 32, 32>}, {pipeline_mode = #tpu.pipeline_mode<synchronous>, transform_indices = @transform_14, window_bounds = array<i64: 1, 32>}, {pipeline_mode = #tpu.pipeline_mode<synchronous>, transform_indices = @transform_15, window_bounds = array<i64: 1, 32>}, {pipeline_mode = #tpu.pipeline_mode<synchronous>, transform_indices = @transform_16, window_bounds = array<i64: 1, 32>}, {pipeline_mode = #tpu.pipeline_mode<synchronous>, transform_indices = @transform_17, window_bounds = array<i64: 32, 32>}, {pipeline_mode = #tpu.pipeline_mode<synchronous>, transform_indices = @transform_18, window_bounds = array<i64: 1, 32>}, {pipeline_mode = #tpu.pipeline_mode<synchronous>, transform_indices = @transform_19, window_bounds = array<i64: 32, 32>}, {pipeline_mode = #tpu.pipeline_mode<synchronous>, transform_indices = @transform_20, window_bounds = array<i64: 1, 32>}, {pipeline_mode = #tpu.pipeline_mode<synchronous>, transform_indices = @transform_21, window_bounds = array<i64: 32, 32>}, {pipeline_mode = #tpu.pipeline_mode<synchronous>, transform_indices = @transform_22, window_bounds = array<i64: 1, 32>}, {pipeline_mode = #tpu.pipeline_mode<synchronous>, transform_indices = @transform_23, window_bounds = array<i64: 32, 32>}, {pipeline_mode = #tpu.pipeline_mode<synchronous>, transform_indices = @transform_24, window_bounds = array<i64: 1, 32>}, {pipeline_mode = #tpu.pipeline_mode<synchronous>, transform_indices = @transform_25, window_bounds = array<i64: 1, 32>}, {pipeline_mode = #tpu.pipeline_mode<synchronous>, transform_indices = @transform_26, window_bounds = array<i64: 1, 32>}, {pipeline_mode = #tpu.pipeline_mode<synchronous>, transform_indices = @transform_27, window_bounds = array<i64: 32, 64>}, {pipeline_mode = #tpu.pipeline_mode<synchronous>, transform_indices = @transform_28, window_bounds = array<i64: 1, 64>}, {pipeline_mode = #tpu.pipeline_mode<synchronous>, transform_indices = @transform_29, window_bounds = array<i64: 64, 32>}, {pipeline_mode = #tpu.pipeline_mode<synchronous>, transform_indices = @transform_30, window_bounds = array<i64: 1, 32>}, {transform_indices = @transform_31, window_bounds = array<i64: 1, 8, 32>}]} {
    %c0 = arith.constant 0 : index
    %c0_0 = arith.constant 0 : index
    %c0_1 = arith.constant 0 : index
    %0 = vector.load %arg2[%c0, %c0_0, %c0_1] : memref<1x8x32xf32, #tpu.memory_space<vmem>>, vector<1x8x32xf32>
    %1 = vector.shape_cast %0 : vector<1x8x32xf32> to vector<8x32xf32>
    %c0_i32 = arith.constant 0 : i32
    %2 = arith.cmpi eq, %arg1, %c0_i32 : i32
    %3 = arith.extui %2 : i1 to i32
    %c0_i32_2 = arith.constant 0 : i32
    %4 = arith.cmpi ne, %3, %c0_i32_2 : i32
    scf.if %4 {
      %c0_164 = arith.constant 0 : index
      %c0_165 = arith.constant 0 : index
      %c0_166 = arith.constant 0 : index
      %336 = vector.load %arg3[%c0_164, %c0_165, %c0_166] : memref<1x8x32xf32, #tpu.memory_space<vmem>>, vector<1x8x32xf32>
      %337 = vector.shape_cast %336 : vector<1x8x32xf32> to vector<8x32xf32>
      %cst_167 = arith.constant dense<0.000000e+00> : vector<8xf32>
      %338 = vector.multi_reduction <add>, %337, %cst_167 [1] : vector<8x32xf32> to vector<8xf32>
      %339 = vector.shape_cast %338 : vector<8xf32> to vector<8x1xf32>
      %cst_168 = arith.constant 3.200000e+01 : f32
      %340 = vector.broadcast %cst_168 : f32 to vector<8x1xf32>
      %341 = arith.divf %339, %340 : vector<8x1xf32>
      %342 = vector.broadcast %341 : vector<8x1xf32> to vector<8x32xf32>
      %343 = arith.subf %337, %342 : vector<8x32xf32>
      %344 = arith.mulf %343, %343 : vector<8x32xf32>
      %cst_169 = arith.constant dense<0.000000e+00> : vector<8xf32>
      %345 = vector.multi_reduction <add>, %344, %cst_169 [1] : vector<8x32xf32> to vector<8xf32>
      %346 = vector.shape_cast %345 : vector<8xf32> to vector<8x1xf32>
      %cst_170 = arith.constant 0.0322580636 : f32
      %347 = vector.broadcast %cst_170 : f32 to vector<8x1xf32>
      %348 = arith.mulf %346, %347 : vector<8x1xf32>
      %349 = math.sqrt %348 : vector<8x1xf32>
      %cst_171 = arith.constant 9.99999997E-7 : f32
      %350 = vector.broadcast %cst_171 : f32 to vector<8x1xf32>
      %351 = arith.addf %349, %350 : vector<8x1xf32>
      %352 = tpu.reciprocal %351 {approx = true} : vector<8x1xf32> -> vector<8x1xf32>
      %c0_172 = arith.constant 0 : index
      %c0_173 = arith.constant 0 : index
      %353 = vector.load %arg7[%c0_172, %c0_173] : memref<1x32xf32, #tpu.memory_space<vmem>>, vector<1x32xf32>
      %354 = vector.shape_cast %353 : vector<1x32xf32> to vector<32xf32>
      %355 = vector.broadcast %341 : vector<8x1xf32> to vector<8x32xf32>
      %356 = arith.subf %337, %355 : vector<8x32xf32>
      %357 = vector.shape_cast %354 : vector<32xf32> to vector<1x32xf32>
      %358 = vector.broadcast %357 : vector<1x32xf32> to vector<8x32xf32>
      %359 = arith.mulf %358, %356 : vector<8x32xf32>
      %360 = vector.broadcast %352 : vector<8x1xf32> to vector<8x32xf32>
      %361 = arith.mulf %359, %360 : vector<8x32xf32>
      %c0_174 = arith.constant 0 : index
      %c0_175 = arith.constant 0 : index
      %362 = vector.load %arg8[%c0_174, %c0_175] : memref<1x32xf32, #tpu.memory_space<vmem>>, vector<1x32xf32>
      %363 = vector.shape_cast %362 : vector<1x32xf32> to vector<32xf32>
      %364 = vector.shape_cast %363 : vector<32xf32> to vector<1x32xf32>
      %365 = vector.broadcast %364 : vector<1x32xf32> to vector<8x32xf32>
      %366 = arith.addf %361, %365 : vector<8x32xf32>
      %367 = arith.truncf %366 : vector<8x32xf32> to vector<8x32xbf16>
      %c0_176 = arith.constant 0 : index
      %c0_177 = arith.constant 0 : index
      %368 = vector.load %arg11[%c0_176, %c0_177] : memref<32x32xbf16, #tpu.memory_space<vmem>>, vector<32x32xbf16>
      %cst_178 = arith.constant dense<0.000000e+00> : vector<8x32xf32>
      %369 = tpu.matmul %367, %368, %cst_178 {dimension_numbers = #tpu.dot_dimension_numbers<[1], [0], [0], [1], [0, 0, 1, 1], [], []>} : vector<8x32xbf16>, vector<32x32xbf16>, vector<8x32xf32> -> vector<8x32xf32>
      %c0_179 = arith.constant 0 : index
      %c0_180 = arith.constant 0 : index
      %370 = vector.load %arg12[%c0_179, %c0_180] : memref<1x32xf32, #tpu.memory_space<vmem>>, vector<1x32xf32>
      %371 = vector.shape_cast %370 : vector<1x32xf32> to vector<32xf32>
      %372 = vector.shape_cast %371 : vector<32xf32> to vector<1x32xf32>
      %373 = vector.broadcast %372 : vector<1x32xf32> to vector<8x32xf32>
      %374 = arith.addf %369, %373 : vector<8x32xf32>
      %375 = arith.truncf %374 : vector<8x32xf32> to vector<8x32xbf16>
      %c0_181 = arith.constant 0 : index
      %c0_182 = arith.constant 0 : index
      %376 = vector.load %arg34[%c0_181, %c0_182] : memref<8x32xbf16, #tpu.memory_space<vmem>>, vector<8x32xbf16>
      tpu.vector_store %arg34[%c0_181, %c0_182], %375 {strides = array<i32>} : memref<8x32xbf16, #tpu.memory_space<vmem>>, vector<8x32xbf16>,
      %c0_183 = arith.constant 0 : index
      %c0_184 = arith.constant 0 : index
      %377 = vector.load %arg13[%c0_183, %c0_184] : memref<32x32xbf16, #tpu.memory_space<vmem>>, vector<32x32xbf16>
      %cst_185 = arith.constant dense<0.000000e+00> : vector<8x32xf32>
      %378 = tpu.matmul %367, %377, %cst_185 {dimension_numbers = #tpu.dot_dimension_numbers<[1], [0], [0], [1], [0, 0, 1, 1], [], []>} : vector<8x32xbf16>, vector<32x32xbf16>, vector<8x32xf32> -> vector<8x32xf32>
      %c0_186 = arith.constant 0 : index
      %c0_187 = arith.constant 0 : index
      %379 = vector.load %arg14[%c0_186, %c0_187] : memref<1x32xf32, #tpu.memory_space<vmem>>, vector<1x32xf32>
      %380 = vector.shape_cast %379 : vector<1x32xf32> to vector<32xf32>
      %381 = vector.shape_cast %380 : vector<32xf32> to vector<1x32xf32>
      %382 = vector.broadcast %381 : vector<1x32xf32> to vector<8x32xf32>
      %383 = arith.addf %378, %382 : vector<8x32xf32>
      %384 = arith.truncf %383 : vector<8x32xf32> to vector<8x32xbf16>
      %c0_188 = arith.constant 0 : index
      %c0_189 = arith.constant 0 : index
      %385 = vector.load %arg35[%c0_188, %c0_189] : memref<8x32xbf16, #tpu.memory_space<vmem>>, vector<8x32xbf16>
      tpu.vector_store %arg35[%c0_188, %c0_189], %384 {strides = array<i32>} : memref<8x32xbf16, #tpu.memory_space<vmem>>, vector<8x32xbf16>,
      %c0_190 = arith.constant 0 : index
      %c0_191 = arith.constant 0 : index
      %c0_192 = arith.constant 0 : index
      %386 = vector.load %arg4[%c0_190, %c0_191, %c0_192] : memref<1x16x32xf32, #tpu.memory_space<vmem>>, vector<1x16x32xf32>
      %387 = vector.shape_cast %386 : vector<1x16x32xf32> to vector<16x32xf32>
      %388 = arith.truncf %387 : vector<16x32xf32> to vector<16x32xbf16>
      %c0_193 = arith.constant 0 : index
      %c0_194 = arith.constant 0 : index
      %389 = vector.load %arg21[%c0_193, %c0_194] : memref<32x32xbf16, #tpu.memory_space<vmem>>, vector<32x32xbf16>
      %cst_195 = arith.constant dense<0.000000e+00> : vector<16x32xf32>
      %390 = tpu.matmul %388, %389, %cst_195 {dimension_numbers = #tpu.dot_dimension_numbers<[1], [0], [0], [1], [0, 0, 1, 1], [], []>} : vector<16x32xbf16>, vector<32x32xbf16>, vector<16x32xf32> -> vector<16x32xf32>
      %c0_196 = arith.constant 0 : index
      %c0_197 = arith.constant 0 : index
      %391 = vector.load %arg22[%c0_196, %c0_197] : memref<1x32xf32, #tpu.memory_space<vmem>>, vector<1x32xf32>
      %392 = vector.shape_cast %391 : vector<1x32xf32> to vector<32xf32>
      %393 = vector.shape_cast %392 : vector<32xf32> to vector<1x32xf32>
      %394 = vector.broadcast %393 : vector<1x32xf32> to vector<16x32xf32>
      %395 = arith.addf %390, %394 : vector<16x32xf32>
      %396 = arith.truncf %395 : vector<16x32xf32> to vector<16x32xbf16>
      %c0_198 = arith.constant 0 : index
      %c0_199 = arith.constant 0 : index
      %397 = vector.load %arg36[%c0_198, %c0_199] : memref<16x32xbf16, #tpu.memory_space<vmem>>, vector<16x32xbf16>
      tpu.vector_store %arg36[%c0_198, %c0_199], %396 {strides = array<i32>} : memref<16x32xbf16, #tpu.memory_space<vmem>>, vector<16x32xbf16>,
      %c0_200 = arith.constant 0 : index
      %c0_201 = arith.constant 0 : index
      %398 = vector.load %arg23[%c0_200, %c0_201] : memref<32x32xbf16, #tpu.memory_space<vmem>>, vector<32x32xbf16>
      %cst_202 = arith.constant dense<0.000000e+00> : vector<16x32xf32>
      %399 = tpu.matmul %388, %398, %cst_202 {dimension_numbers = #tpu.dot_dimension_numbers<[1], [0], [0], [1], [0, 0, 1, 1], [], []>} : vector<16x32xbf16>, vector<32x32xbf16>, vector<16x32xf32> -> vector<16x32xf32>
      %c0_203 = arith.constant 0 : index
      %c0_204 = arith.constant 0 : index
      %400 = vector.load %arg24[%c0_203, %c0_204] : memref<1x32xf32, #tpu.memory_space<vmem>>, vector<1x32xf32>
      %401 = vector.shape_cast %400 : vector<1x32xf32> to vector<32xf32>
      %402 = vector.shape_cast %401 : vector<32xf32> to vector<1x32xf32>
      %403 = vector.broadcast %402 : vector<1x32xf32> to vector<16x32xf32>
      %404 = arith.addf %399, %403 : vector<16x32xf32>
      %405 = arith.truncf %404 : vector<16x32xf32> to vector<16x32xbf16>
      %c0_205 = arith.constant 0 : index
      %c0_206 = arith.constant 0 : index
      %406 = vector.load %arg37[%c0_205, %c0_206] : memref<16x32xbf16, #tpu.memory_space<vmem>>, vector<16x32xbf16>
      tpu.vector_store %arg37[%c0_205, %c0_206], %405 {strides = array<i32>} : memref<16x32xbf16, #tpu.memory_space<vmem>>, vector<16x32xbf16>,
    } else {
    }
    %c0_3 = arith.constant 0 : index
    %c0_4 = arith.constant 0 : index
    %c0_5 = arith.constant 0 : index
    %5 = vector.load %arg5[%c0_3, %c0_4, %c0_5] : memref<1x8x8xf32, #tpu.memory_space<vmem>>, vector<1x8x8xf32>
    %6 = vector.shape_cast %5 : vector<1x8x8xf32> to vector<8x8xf32>
    %cst = arith.constant 0.000000e+00 : f32
    %7 = vector.broadcast %cst : f32 to vector<8x8xf32>
    %8 = arith.cmpf ogt, %6, %7 : vector<8x8xf32>
    %cst_6 = arith.constant 0.000000e+00 : f32
    %cst_7 = arith.constant -1.000000e+09 : f32
    %9 = vector.broadcast %cst_6 : f32 to vector<8x8xf32>
    %10 = vector.broadcast %cst_7 : f32 to vector<8x8xf32>
    %11 = arith.select %8, %9, %10 : vector<8x8xi1>, vector<8x8xf32>
    %c0_8 = arith.constant 0 : index
    %c0_9 = arith.constant 0 : index
    %c0_10 = arith.constant 0 : index
    %12 = vector.load %arg6[%c0_8, %c0_9, %c0_10] : memref<1x1x16xf32, #tpu.memory_space<vmem>>, vector<1x1x16xf32>
    %13 = vector.shape_cast %12 : vector<1x1x16xf32> to vector<1x16xf32>
    %cst_11 = arith.constant 0.000000e+00 : f32
    %14 = vector.broadcast %cst_11 : f32 to vector<1x16xf32>
    %15 = arith.cmpf ogt, %13, %14 : vector<1x16xf32>
    %cst_12 = arith.constant 0.000000e+00 : f32
    %cst_13 = arith.constant -1.000000e+09 : f32
    %16 = vector.broadcast %cst_12 : f32 to vector<1x16xf32>
    %17 = vector.broadcast %cst_13 : f32 to vector<1x16xf32>
    %18 = arith.select %15, %16, %17 : vector<1x16xi1>, vector<1x16xf32>
    %cst_14 = arith.constant dense<0.000000e+00> : vector<8xf32>
    %19 = vector.multi_reduction <add>, %1, %cst_14 [1] : vector<8x32xf32> to vector<8xf32>
    %20 = vector.shape_cast %19 : vector<8xf32> to vector<8x1xf32>
    %cst_15 = arith.constant 3.200000e+01 : f32
    %21 = vector.broadcast %cst_15 : f32 to vector<8x1xf32>
    %22 = arith.divf %20, %21 : vector<8x1xf32>
    %23 = vector.broadcast %22 : vector<8x1xf32> to vector<8x32xf32>
    %24 = arith.subf %1, %23 : vector<8x32xf32>
    %25 = arith.mulf %24, %24 : vector<8x32xf32>
    %cst_16 = arith.constant dense<0.000000e+00> : vector<8xf32>
    %26 = vector.multi_reduction <add>, %25, %cst_16 [1] : vector<8x32xf32> to vector<8xf32>
    %27 = vector.shape_cast %26 : vector<8xf32> to vector<8x1xf32>
    %cst_17 = arith.constant 0.0322580636 : f32
    %28 = vector.broadcast %cst_17 : f32 to vector<8x1xf32>
    %29 = arith.mulf %27, %28 : vector<8x1xf32>
    %30 = math.sqrt %29 : vector<8x1xf32>
    %cst_18 = arith.constant 9.99999997E-7 : f32
    %31 = vector.broadcast %cst_18 : f32 to vector<8x1xf32>
    %32 = arith.addf %30, %31 : vector<8x1xf32>
    %33 = tpu.reciprocal %32 {approx = true} : vector<8x1xf32> -> vector<8x1xf32>
    %c0_19 = arith.constant 0 : index
    %c0_20 = arith.constant 0 : index
    %34 = vector.load %arg7[%c0_19, %c0_20] : memref<1x32xf32, #tpu.memory_space<vmem>>, vector<1x32xf32>
    %35 = vector.shape_cast %34 : vector<1x32xf32> to vector<32xf32>
    %36 = vector.broadcast %22 : vector<8x1xf32> to vector<8x32xf32>
    %37 = arith.subf %1, %36 : vector<8x32xf32>
    %38 = vector.shape_cast %35 : vector<32xf32> to vector<1x32xf32>
    %39 = vector.broadcast %38 : vector<1x32xf32> to vector<8x32xf32>
    %40 = arith.mulf %39, %37 : vector<8x32xf32>
    %41 = vector.broadcast %33 : vector<8x1xf32> to vector<8x32xf32>
    %42 = arith.mulf %40, %41 : vector<8x32xf32>
    %c0_21 = arith.constant 0 : index
    %c0_22 = arith.constant 0 : index
    %43 = vector.load %arg8[%c0_21, %c0_22] : memref<1x32xf32, #tpu.memory_space<vmem>>, vector<1x32xf32>
    %44 = vector.shape_cast %43 : vector<1x32xf32> to vector<32xf32>
    %45 = vector.shape_cast %44 : vector<32xf32> to vector<1x32xf32>
    %46 = vector.broadcast %45 : vector<1x32xf32> to vector<8x32xf32>
    %47 = arith.addf %42, %46 : vector<8x32xf32>
    %48 = arith.truncf %47 : vector<8x32xf32> to vector<8x32xbf16>
    %c0_23 = arith.constant 0 : index
    %c0_24 = arith.constant 0 : index
    %49 = vector.load %arg9[%c0_23, %c0_24] : memref<32x32xbf16, #tpu.memory_space<vmem>>, vector<32x32xbf16>
    %cst_25 = arith.constant dense<0.000000e+00> : vector<8x32xf32>
    %50 = tpu.matmul %48, %49, %cst_25 {dimension_numbers = #tpu.dot_dimension_numbers<[1], [0], [0], [1], [0, 0, 1, 1], [], []>} : vector<8x32xbf16>, vector<32x32xbf16>, vector<8x32xf32> -> vector<8x32xf32>
    %c0_26 = arith.constant 0 : index
    %c0_27 = arith.constant 0 : index
    %51 = vector.load %arg10[%c0_26, %c0_27] : memref<1x32xf32, #tpu.memory_space<vmem>>, vector<1x32xf32>
    %52 = vector.shape_cast %51 : vector<1x32xf32> to vector<32xf32>
    %53 = vector.shape_cast %52 : vector<32xf32> to vector<1x32xf32>
    %54 = vector.broadcast %53 : vector<1x32xf32> to vector<8x32xf32>
    %55 = arith.addf %50, %54 : vector<8x32xf32>
    %56 = vector.extract_strided_slice %55 {offsets = [0, 0], sizes = [8, 8], strides = [1, 1]} : vector<8x32xf32> to vector<8x8xf32>
    %57 = arith.truncf %56 : vector<8x8xf32> to vector<8x8xbf16>
    %c0_28 = arith.constant 0 : index
    %c0_29 = arith.constant 0 : index
    %58 = vector.load %arg34[%c0_28, %c0_29] : memref<8x32xbf16, #tpu.memory_space<vmem>>, vector<8x8xbf16>
    %c0_30 = arith.constant 0 : index
    %c0_31 = arith.constant 0 : index
    %59 = vector.load %arg35[%c0_30, %c0_31] : memref<8x32xbf16, #tpu.memory_space<vmem>>, vector<8x8xbf16>
    %cst_32 = arith.constant dense<0.000000e+00> : vector<8x8xf32>
    %60 = tpu.matmul %57, %58, %cst_32 {dimension_numbers = #tpu.dot_dimension_numbers<[1], [1], [0], [0], [0, 0, 1, 0], [], []>} : vector<8x8xbf16>, vector<8x8xbf16>, vector<8x8xf32> -> vector<8x8xf32>
    %cst_33 = arith.constant 0.353553385 : f32
    %61 = vector.broadcast %cst_33 : f32 to vector<8x8xf32>
    %62 = arith.mulf %60, %61 : vector<8x8xf32>
    %63 = arith.addf %62, %11 : vector<8x8xf32>
    %cst_34 = arith.constant dense<0xFF800000> : vector<8xf32>
    %64 = vector.multi_reduction <maximumf>, %63, %cst_34 [1] : vector<8x8xf32> to vector<8xf32>
    %65 = vector.shape_cast %64 : vector<8xf32> to vector<8x1xf32>
    %66 = vector.broadcast %65 : vector<8x1xf32> to vector<8x8xf32>
    %67 = arith.subf %63, %66 : vector<8x8xf32>
    %68 = math.exp %67 : vector<8x8xf32>
    %cst_35 = arith.constant dense<0.000000e+00> : vector<8xf32>
    %69 = vector.multi_reduction <add>, %68, %cst_35 [1] : vector<8x8xf32> to vector<8xf32>
    %70 = vector.shape_cast %69 : vector<8xf32> to vector<8x1xf32>
    %71 = tpu.reciprocal %70 {approx = true} : vector<8x1xf32> -> vector<8x1xf32>
    %72 = vector.broadcast %71 : vector<8x1xf32> to vector<8x8xf32>
    %73 = arith.mulf %68, %72 : vector<8x8xf32>
    %74 = arith.truncf %73 : vector<8x8xf32> to vector<8x8xbf16>
    %cst_36 = arith.constant dense<0.000000e+00> : vector<8x8xf32>
    %75 = tpu.matmul %74, %59, %cst_36 {dimension_numbers = #tpu.dot_dimension_numbers<[1], [0], [0], [1], [0, 0, 1, 1], [], []>} : vector<8x8xbf16>, vector<8x8xbf16>, vector<8x8xf32> -> vector<8x8xf32>
    %c0_37 = arith.constant 0 : index
    %c0_38 = arith.constant 0 : index
    %76 = vector.load %arg38[%c0_37, %c0_38] : memref<8x32xf32, #tpu.memory_space<vmem>>, vector<8x8xf32>
    tpu.vector_store %arg38[%c0_37, %c0_38], %75 {strides = array<i32>} : memref<8x32xf32, #tpu.memory_space<vmem>>, vector<8x8xf32>,
    %77 = vector.extract_strided_slice %55 {offsets = [0, 8], sizes = [8, 8], strides = [1, 1]} : vector<8x32xf32> to vector<8x8xf32>
    %78 = arith.truncf %77 : vector<8x8xf32> to vector<8x8xbf16>
    %c0_39 = arith.constant 0 : index
    %c8 = arith.constant 8 : index
    %79 = vector.load %arg34[%c0_39, %c8] : memref<8x32xbf16, #tpu.memory_space<vmem>>, vector<8x8xbf16>
    %c0_40 = arith.constant 0 : index
    %c8_41 = arith.constant 8 : index
    %80 = vector.load %arg35[%c0_40, %c8_41] : memref<8x32xbf16, #tpu.memory_space<vmem>>, vector<8x8xbf16>
    %cst_42 = arith.constant dense<0.000000e+00> : vector<8x8xf32>
    %81 = tpu.matmul %78, %79, %cst_42 {dimension_numbers = #tpu.dot_dimension_numbers<[1], [1], [0], [0], [0, 0, 1, 0], [], []>} : vector<8x8xbf16>, vector<8x8xbf16>, vector<8x8xf32> -> vector<8x8xf32>
    %cst_43 = arith.constant 0.353553385 : f32
    %82 = vector.broadcast %cst_43 : f32 to vector<8x8xf32>
    %83 = arith.mulf %81, %82 : vector<8x8xf32>
    %84 = arith.addf %83, %11 : vector<8x8xf32>
    %cst_44 = arith.constant dense<0xFF800000> : vector<8xf32>
    %85 = vector.multi_reduction <maximumf>, %84, %cst_44 [1] : vector<8x8xf32> to vector<8xf32>
    %86 = vector.shape_cast %85 : vector<8xf32> to vector<8x1xf32>
    %87 = vector.broadcast %86 : vector<8x1xf32> to vector<8x8xf32>
    %88 = arith.subf %84, %87 : vector<8x8xf32>
    %89 = math.exp %88 : vector<8x8xf32>
    %cst_45 = arith.constant dense<0.000000e+00> : vector<8xf32>
    %90 = vector.multi_reduction <add>, %89, %cst_45 [1] : vector<8x8xf32> to vector<8xf32>
    %91 = vector.shape_cast %90 : vector<8xf32> to vector<8x1xf32>
    %92 = tpu.reciprocal %91 {approx = true} : vector<8x1xf32> -> vector<8x1xf32>
    %93 = vector.broadcast %92 : vector<8x1xf32> to vector<8x8xf32>
    %94 = arith.mulf %89, %93 : vector<8x8xf32>
    %95 = arith.truncf %94 : vector<8x8xf32> to vector<8x8xbf16>
    %cst_46 = arith.constant dense<0.000000e+00> : vector<8x8xf32>
    %96 = tpu.matmul %95, %80, %cst_46 {dimension_numbers = #tpu.dot_dimension_numbers<[1], [0], [0], [1], [0, 0, 1, 1], [], []>} : vector<8x8xbf16>, vector<8x8xbf16>, vector<8x8xf32> -> vector<8x8xf32>
    %c0_47 = arith.constant 0 : index
    %c8_48 = arith.constant 8 : index
    %97 = vector.load %arg38[%c0_47, %c8_48] : memref<8x32xf32, #tpu.memory_space<vmem>>, vector<8x8xf32>
    tpu.vector_store %arg38[%c0_47, %c8_48], %96 {strides = array<i32>} : memref<8x32xf32, #tpu.memory_space<vmem>>, vector<8x8xf32>,
    %98 = vector.extract_strided_slice %55 {offsets = [0, 16], sizes = [8, 8], strides = [1, 1]} : vector<8x32xf32> to vector<8x8xf32>
    %99 = arith.truncf %98 : vector<8x8xf32> to vector<8x8xbf16>
    %c0_49 = arith.constant 0 : index
    %c16 = arith.constant 16 : index
    %100 = vector.load %arg34[%c0_49, %c16] : memref<8x32xbf16, #tpu.memory_space<vmem>>, vector<8x8xbf16>
    %c0_50 = arith.constant 0 : index
    %c16_51 = arith.constant 16 : index
    %101 = vector.load %arg35[%c0_50, %c16_51] : memref<8x32xbf16, #tpu.memory_space<vmem>>, vector<8x8xbf16>
    %cst_52 = arith.constant dense<0.000000e+00> : vector<8x8xf32>
    %102 = tpu.matmul %99, %100, %cst_52 {dimension_numbers = #tpu.dot_dimension_numbers<[1], [1], [0], [0], [0, 0, 1, 0], [], []>} : vector<8x8xbf16>, vector<8x8xbf16>, vector<8x8xf32> -> vector<8x8xf32>
    %cst_53 = arith.constant 0.353553385 : f32
    %103 = vector.broadcast %cst_53 : f32 to vector<8x8xf32>
    %104 = arith.mulf %102, %103 : vector<8x8xf32>
    %105 = arith.addf %104, %11 : vector<8x8xf32>
    %cst_54 = arith.constant dense<0xFF800000> : vector<8xf32>
    %106 = vector.multi_reduction <maximumf>, %105, %cst_54 [1] : vector<8x8xf32> to vector<8xf32>
    %107 = vector.shape_cast %106 : vector<8xf32> to vector<8x1xf32>
    %108 = vector.broadcast %107 : vector<8x1xf32> to vector<8x8xf32>
    %109 = arith.subf %105, %108 : vector<8x8xf32>
    %110 = math.exp %109 : vector<8x8xf32>
    %cst_55 = arith.constant dense<0.000000e+00> : vector<8xf32>
    %111 = vector.multi_reduction <add>, %110, %cst_55 [1] : vector<8x8xf32> to vector<8xf32>
    %112 = vector.shape_cast %111 : vector<8xf32> to vector<8x1xf32>
    %113 = tpu.reciprocal %112 {approx = true} : vector<8x1xf32> -> vector<8x1xf32>
    %114 = vector.broadcast %113 : vector<8x1xf32> to vector<8x8xf32>
    %115 = arith.mulf %110, %114 : vector<8x8xf32>
    %116 = arith.truncf %115 : vector<8x8xf32> to vector<8x8xbf16>
    %cst_56 = arith.constant dense<0.000000e+00> : vector<8x8xf32>
    %117 = tpu.matmul %116, %101, %cst_56 {dimension_numbers = #tpu.dot_dimension_numbers<[1], [0], [0], [1], [0, 0, 1, 1], [], []>} : vector<8x8xbf16>, vector<8x8xbf16>, vector<8x8xf32> -> vector<8x8xf32>
    %c0_57 = arith.constant 0 : index
    %c16_58 = arith.constant 16 : index
    %118 = vector.load %arg38[%c0_57, %c16_58] : memref<8x32xf32, #tpu.memory_space<vmem>>, vector<8x8xf32>
    tpu.vector_store %arg38[%c0_57, %c16_58], %117 {strides = array<i32>} : memref<8x32xf32, #tpu.memory_space<vmem>>, vector<8x8xf32>,
    %119 = vector.extract_strided_slice %55 {offsets = [0, 24], sizes = [8, 8], strides = [1, 1]} : vector<8x32xf32> to vector<8x8xf32>
    %120 = arith.truncf %119 : vector<8x8xf32> to vector<8x8xbf16>
    %c0_59 = arith.constant 0 : index
    %c24 = arith.constant 24 : index
    %121 = vector.load %arg34[%c0_59, %c24] : memref<8x32xbf16, #tpu.memory_space<vmem>>, vector<8x8xbf16>
    %c0_60 = arith.constant 0 : index
    %c24_61 = arith.constant 24 : index
    %122 = vector.load %arg35[%c0_60, %c24_61] : memref<8x32xbf16, #tpu.memory_space<vmem>>, vector<8x8xbf16>
    %cst_62 = arith.constant dense<0.000000e+00> : vector<8x8xf32>
    %123 = tpu.matmul %120, %121, %cst_62 {dimension_numbers = #tpu.dot_dimension_numbers<[1], [1], [0], [0], [0, 0, 1, 0], [], []>} : vector<8x8xbf16>, vector<8x8xbf16>, vector<8x8xf32> -> vector<8x8xf32>
    %cst_63 = arith.constant 0.353553385 : f32
    %124 = vector.broadcast %cst_63 : f32 to vector<8x8xf32>
    %125 = arith.mulf %123, %124 : vector<8x8xf32>
    %126 = arith.addf %125, %11 : vector<8x8xf32>
    %cst_64 = arith.constant dense<0xFF800000> : vector<8xf32>
    %127 = vector.multi_reduction <maximumf>, %126, %cst_64 [1] : vector<8x8xf32> to vector<8xf32>
    %128 = vector.shape_cast %127 : vector<8xf32> to vector<8x1xf32>
    %129 = vector.broadcast %128 : vector<8x1xf32> to vector<8x8xf32>
    %130 = arith.subf %126, %129 : vector<8x8xf32>
    %131 = math.exp %130 : vector<8x8xf32>
    %cst_65 = arith.constant dense<0.000000e+00> : vector<8xf32>
    %132 = vector.multi_reduction <add>, %131, %cst_65 [1] : vector<8x8xf32> to vector<8xf32>
    %133 = vector.shape_cast %132 : vector<8xf32> to vector<8x1xf32>
    %134 = tpu.reciprocal %133 {approx = true} : vector<8x1xf32> -> vector<8x1xf32>
    %135 = vector.broadcast %134 : vector<8x1xf32> to vector<8x8xf32>
    %136 = arith.mulf %131, %135 : vector<8x8xf32>
    %137 = arith.truncf %136 : vector<8x8xf32> to vector<8x8xbf16>
    %cst_66 = arith.constant dense<0.000000e+00> : vector<8x8xf32>
    %138 = tpu.matmul %137, %122, %cst_66 {dimension_numbers = #tpu.dot_dimension_numbers<[1], [0], [0], [1], [0, 0, 1, 1], [], []>} : vector<8x8xbf16>, vector<8x8xbf16>, vector<8x8xf32> -> vector<8x8xf32>
    %c0_67 = arith.constant 0 : index
    %c24_68 = arith.constant 24 : index
    %139 = vector.load %arg38[%c0_67, %c24_68] : memref<8x32xf32, #tpu.memory_space<vmem>>, vector<8x8xf32>
    tpu.vector_store %arg38[%c0_67, %c24_68], %138 {strides = array<i32>} : memref<8x32xf32, #tpu.memory_space<vmem>>, vector<8x8xf32>,
    %c0_69 = arith.constant 0 : index
    %c0_70 = arith.constant 0 : index
    %140 = vector.load %arg38[%c0_69, %c0_70] : memref<8x32xf32, #tpu.memory_space<vmem>>, vector<8x32xf32>
    %141 = arith.truncf %140 : vector<8x32xf32> to vector<8x32xbf16>
    %c0_71 = arith.constant 0 : index
    %c0_72 = arith.constant 0 : index
    %142 = vector.load %arg15[%c0_71, %c0_72] : memref<32x32xbf16, #tpu.memory_space<vmem>>, vector<32x32xbf16>
    %cst_73 = arith.constant dense<0.000000e+00> : vector<8x32xf32>
    %143 = tpu.matmul %141, %142, %cst_73 {dimension_numbers = #tpu.dot_dimension_numbers<[1], [0], [0], [1], [0, 0, 1, 1], [], []>} : vector<8x32xbf16>, vector<32x32xbf16>, vector<8x32xf32> -> vector<8x32xf32>
    %c0_74 = arith.constant 0 : index
    %c0_75 = arith.constant 0 : index
    %144 = vector.load %arg16[%c0_74, %c0_75] : memref<1x32xf32, #tpu.memory_space<vmem>>, vector<1x32xf32>
    %145 = vector.shape_cast %144 : vector<1x32xf32> to vector<32xf32>
    %146 = vector.shape_cast %145 : vector<32xf32> to vector<1x32xf32>
    %147 = vector.broadcast %146 : vector<1x32xf32> to vector<8x32xf32>
    %148 = arith.addf %143, %147 : vector<8x32xf32>
    %149 = arith.addf %1, %148 : vector<8x32xf32>
    %cst_76 = arith.constant dense<0.000000e+00> : vector<8xf32>
    %150 = vector.multi_reduction <add>, %149, %cst_76 [1] : vector<8x32xf32> to vector<8xf32>
    %151 = vector.shape_cast %150 : vector<8xf32> to vector<8x1xf32>
    %cst_77 = arith.constant 3.200000e+01 : f32
    %152 = vector.broadcast %cst_77 : f32 to vector<8x1xf32>
    %153 = arith.divf %151, %152 : vector<8x1xf32>
    %154 = vector.broadcast %153 : vector<8x1xf32> to vector<8x32xf32>
    %155 = arith.subf %149, %154 : vector<8x32xf32>
    %156 = arith.mulf %155, %155 : vector<8x32xf32>
    %cst_78 = arith.constant dense<0.000000e+00> : vector<8xf32>
    %157 = vector.multi_reduction <add>, %156, %cst_78 [1] : vector<8x32xf32> to vector<8xf32>
    %158 = vector.shape_cast %157 : vector<8xf32> to vector<8x1xf32>
    %cst_79 = arith.constant 0.0322580636 : f32
    %159 = vector.broadcast %cst_79 : f32 to vector<8x1xf32>
    %160 = arith.mulf %158, %159 : vector<8x1xf32>
    %161 = math.sqrt %160 : vector<8x1xf32>
    %cst_80 = arith.constant 9.99999997E-7 : f32
    %162 = vector.broadcast %cst_80 : f32 to vector<8x1xf32>
    %163 = arith.addf %161, %162 : vector<8x1xf32>
    %164 = tpu.reciprocal %163 {approx = true} : vector<8x1xf32> -> vector<8x1xf32>
    %c0_81 = arith.constant 0 : index
    %c0_82 = arith.constant 0 : index
    %165 = vector.load %arg17[%c0_81, %c0_82] : memref<1x32xf32, #tpu.memory_space<vmem>>, vector<1x32xf32>
    %166 = vector.shape_cast %165 : vector<1x32xf32> to vector<32xf32>
    %167 = vector.broadcast %153 : vector<8x1xf32> to vector<8x32xf32>
    %168 = arith.subf %149, %167 : vector<8x32xf32>
    %169 = vector.shape_cast %166 : vector<32xf32> to vector<1x32xf32>
    %170 = vector.broadcast %169 : vector<1x32xf32> to vector<8x32xf32>
    %171 = arith.mulf %170, %168 : vector<8x32xf32>
    %172 = vector.broadcast %164 : vector<8x1xf32> to vector<8x32xf32>
    %173 = arith.mulf %171, %172 : vector<8x32xf32>
    %c0_83 = arith.constant 0 : index
    %c0_84 = arith.constant 0 : index
    %174 = vector.load %arg18[%c0_83, %c0_84] : memref<1x32xf32, #tpu.memory_space<vmem>>, vector<1x32xf32>
    %175 = vector.shape_cast %174 : vector<1x32xf32> to vector<32xf32>
    %176 = vector.shape_cast %175 : vector<32xf32> to vector<1x32xf32>
    %177 = vector.broadcast %176 : vector<1x32xf32> to vector<8x32xf32>
    %178 = arith.addf %173, %177 : vector<8x32xf32>
    %179 = arith.truncf %178 : vector<8x32xf32> to vector<8x32xbf16>
    %c0_85 = arith.constant 0 : index
    %c0_86 = arith.constant 0 : index
    %180 = vector.load %arg19[%c0_85, %c0_86] : memref<32x32xbf16, #tpu.memory_space<vmem>>, vector<32x32xbf16>
    %cst_87 = arith.constant dense<0.000000e+00> : vector<8x32xf32>
    %181 = tpu.matmul %179, %180, %cst_87 {dimension_numbers = #tpu.dot_dimension_numbers<[1], [0], [0], [1], [0, 0, 1, 1], [], []>} : vector<8x32xbf16>, vector<32x32xbf16>, vector<8x32xf32> -> vector<8x32xf32>
    %c0_88 = arith.constant 0 : index
    %c0_89 = arith.constant 0 : index
    %182 = vector.load %arg20[%c0_88, %c0_89] : memref<1x32xf32, #tpu.memory_space<vmem>>, vector<1x32xf32>
    %183 = vector.shape_cast %182 : vector<1x32xf32> to vector<32xf32>
    %184 = vector.shape_cast %183 : vector<32xf32> to vector<1x32xf32>
    %185 = vector.broadcast %184 : vector<1x32xf32> to vector<8x32xf32>
    %186 = arith.addf %181, %185 : vector<8x32xf32>
    %187 = vector.extract_strided_slice %186 {offsets = [0, 0], sizes = [8, 8], strides = [1, 1]} : vector<8x32xf32> to vector<8x8xf32>
    %188 = arith.truncf %187 : vector<8x8xf32> to vector<8x8xbf16>
    %c0_90 = arith.constant 0 : index
    %c0_91 = arith.constant 0 : index
    %189 = vector.load %arg36[%c0_90, %c0_91] : memref<16x32xbf16, #tpu.memory_space<vmem>>, vector<16x8xbf16>
    %c0_92 = arith.constant 0 : index
    %c0_93 = arith.constant 0 : index
    %190 = vector.load %arg37[%c0_92, %c0_93] : memref<16x32xbf16, #tpu.memory_space<vmem>>, vector<16x8xbf16>
    %cst_94 = arith.constant dense<0.000000e+00> : vector<8x16xf32>
    %191 = tpu.matmul %188, %189, %cst_94 {dimension_numbers = #tpu.dot_dimension_numbers<[1], [1], [0], [0], [0, 0, 1, 0], [], []>} : vector<8x8xbf16>, vector<16x8xbf16>, vector<8x16xf32> -> vector<8x16xf32>
    %cst_95 = arith.constant 0.353553385 : f32
    %192 = vector.broadcast %cst_95 : f32 to vector<8x16xf32>
    %193 = arith.mulf %191, %192 : vector<8x16xf32>
    %194 = vector.broadcast %18 : vector<1x16xf32> to vector<8x16xf32>
    %195 = arith.addf %193, %194 : vector<8x16xf32>
    %cst_96 = arith.constant dense<0xFF800000> : vector<8xf32>
    %196 = vector.multi_reduction <maximumf>, %195, %cst_96 [1] : vector<8x16xf32> to vector<8xf32>
    %197 = vector.shape_cast %196 : vector<8xf32> to vector<8x1xf32>
    %198 = vector.broadcast %197 : vector<8x1xf32> to vector<8x16xf32>
    %199 = arith.subf %195, %198 : vector<8x16xf32>
    %200 = math.exp %199 : vector<8x16xf32>
    %cst_97 = arith.constant dense<0.000000e+00> : vector<8xf32>
    %201 = vector.multi_reduction <add>, %200, %cst_97 [1] : vector<8x16xf32> to vector<8xf32>
    %202 = vector.shape_cast %201 : vector<8xf32> to vector<8x1xf32>
    %203 = tpu.reciprocal %202 {approx = true} : vector<8x1xf32> -> vector<8x1xf32>
    %204 = vector.broadcast %203 : vector<8x1xf32> to vector<8x16xf32>
    %205 = arith.mulf %200, %204 : vector<8x16xf32>
    %206 = arith.truncf %205 : vector<8x16xf32> to vector<8x16xbf16>
    %cst_98 = arith.constant dense<0.000000e+00> : vector<8x8xf32>
    %207 = tpu.matmul %206, %190, %cst_98 {dimension_numbers = #tpu.dot_dimension_numbers<[1], [0], [0], [1], [0, 0, 1, 1], [], []>} : vector<8x16xbf16>, vector<16x8xbf16>, vector<8x8xf32> -> vector<8x8xf32>
    %c0_99 = arith.constant 0 : index
    %c0_100 = arith.constant 0 : index
    %208 = vector.load %arg38[%c0_99, %c0_100] : memref<8x32xf32, #tpu.memory_space<vmem>>, vector<8x8xf32>
    tpu.vector_store %arg38[%c0_99, %c0_100], %207 {strides = array<i32>} : memref<8x32xf32, #tpu.memory_space<vmem>>, vector<8x8xf32>,
    %209 = vector.extract_strided_slice %186 {offsets = [0, 8], sizes = [8, 8], strides = [1, 1]} : vector<8x32xf32> to vector<8x8xf32>
    %210 = arith.truncf %209 : vector<8x8xf32> to vector<8x8xbf16>
    %c0_101 = arith.constant 0 : index
    %c8_102 = arith.constant 8 : index
    %211 = vector.load %arg36[%c0_101, %c8_102] : memref<16x32xbf16, #tpu.memory_space<vmem>>, vector<16x8xbf16>
    %c0_103 = arith.constant 0 : index
    %c8_104 = arith.constant 8 : index
    %212 = vector.load %arg37[%c0_103, %c8_104] : memref<16x32xbf16, #tpu.memory_space<vmem>>, vector<16x8xbf16>
    %cst_105 = arith.constant dense<0.000000e+00> : vector<8x16xf32>
    %213 = tpu.matmul %210, %211, %cst_105 {dimension_numbers = #tpu.dot_dimension_numbers<[1], [1], [0], [0], [0, 0, 1, 0], [], []>} : vector<8x8xbf16>, vector<16x8xbf16>, vector<8x16xf32> -> vector<8x16xf32>
    %cst_106 = arith.constant 0.353553385 : f32
    %214 = vector.broadcast %cst_106 : f32 to vector<8x16xf32>
    %215 = arith.mulf %213, %214 : vector<8x16xf32>
    %216 = vector.broadcast %18 : vector<1x16xf32> to vector<8x16xf32>
    %217 = arith.addf %215, %216 : vector<8x16xf32>
    %cst_107 = arith.constant dense<0xFF800000> : vector<8xf32>
    %218 = vector.multi_reduction <maximumf>, %217, %cst_107 [1] : vector<8x16xf32> to vector<8xf32>
    %219 = vector.shape_cast %218 : vector<8xf32> to vector<8x1xf32>
    %220 = vector.broadcast %219 : vector<8x1xf32> to vector<8x16xf32>
    %221 = arith.subf %217, %220 : vector<8x16xf32>
    %222 = math.exp %221 : vector<8x16xf32>
    %cst_108 = arith.constant dense<0.000000e+00> : vector<8xf32>
    %223 = vector.multi_reduction <add>, %222, %cst_108 [1] : vector<8x16xf32> to vector<8xf32>
    %224 = vector.shape_cast %223 : vector<8xf32> to vector<8x1xf32>
    %225 = tpu.reciprocal %224 {approx = true} : vector<8x1xf32> -> vector<8x1xf32>
    %226 = vector.broadcast %225 : vector<8x1xf32> to vector<8x16xf32>
    %227 = arith.mulf %222, %226 : vector<8x16xf32>
    %228 = arith.truncf %227 : vector<8x16xf32> to vector<8x16xbf16>
    %cst_109 = arith.constant dense<0.000000e+00> : vector<8x8xf32>
    %229 = tpu.matmul %228, %212, %cst_109 {dimension_numbers = #tpu.dot_dimension_numbers<[1], [0], [0], [1], [0, 0, 1, 1], [], []>} : vector<8x16xbf16>, vector<16x8xbf16>, vector<8x8xf32> -> vector<8x8xf32>
    %c0_110 = arith.constant 0 : index
    %c8_111 = arith.constant 8 : index
    %230 = vector.load %arg38[%c0_110, %c8_111] : memref<8x32xf32, #tpu.memory_space<vmem>>, vector<8x8xf32>
    tpu.vector_store %arg38[%c0_110, %c8_111], %229 {strides = array<i32>} : memref<8x32xf32, #tpu.memory_space<vmem>>, vector<8x8xf32>,
    %231 = vector.extract_strided_slice %186 {offsets = [0, 16], sizes = [8, 8], strides = [1, 1]} : vector<8x32xf32> to vector<8x8xf32>
    %232 = arith.truncf %231 : vector<8x8xf32> to vector<8x8xbf16>
    %c0_112 = arith.constant 0 : index
    %c16_113 = arith.constant 16 : index
    %233 = vector.load %arg36[%c0_112, %c16_113] : memref<16x32xbf16, #tpu.memory_space<vmem>>, vector<16x8xbf16>
    %c0_114 = arith.constant 0 : index
    %c16_115 = arith.constant 16 : index
    %234 = vector.load %arg37[%c0_114, %c16_115] : memref<16x32xbf16, #tpu.memory_space<vmem>>, vector<16x8xbf16>
    %cst_116 = arith.constant dense<0.000000e+00> : vector<8x16xf32>
    %235 = tpu.matmul %232, %233, %cst_116 {dimension_numbers = #tpu.dot_dimension_numbers<[1], [1], [0], [0], [0, 0, 1, 0], [], []>} : vector<8x8xbf16>, vector<16x8xbf16>, vector<8x16xf32> -> vector<8x16xf32>
    %cst_117 = arith.constant 0.353553385 : f32
    %236 = vector.broadcast %cst_117 : f32 to vector<8x16xf32>
    %237 = arith.mulf %235, %236 : vector<8x16xf32>
    %238 = vector.broadcast %18 : vector<1x16xf32> to vector<8x16xf32>
    %239 = arith.addf %237, %238 : vector<8x16xf32>
    %cst_118 = arith.constant dense<0xFF800000> : vector<8xf32>
    %240 = vector.multi_reduction <maximumf>, %239, %cst_118 [1] : vector<8x16xf32> to vector<8xf32>
    %241 = vector.shape_cast %240 : vector<8xf32> to vector<8x1xf32>
    %242 = vector.broadcast %241 : vector<8x1xf32> to vector<8x16xf32>
    %243 = arith.subf %239, %242 : vector<8x16xf32>
    %244 = math.exp %243 : vector<8x16xf32>
    %cst_119 = arith.constant dense<0.000000e+00> : vector<8xf32>
    %245 = vector.multi_reduction <add>, %244, %cst_119 [1] : vector<8x16xf32> to vector<8xf32>
    %246 = vector.shape_cast %245 : vector<8xf32> to vector<8x1xf32>
    %247 = tpu.reciprocal %246 {approx = true} : vector<8x1xf32> -> vector<8x1xf32>
    %248 = vector.broadcast %247 : vector<8x1xf32> to vector<8x16xf32>
    %249 = arith.mulf %244, %248 : vector<8x16xf32>
    %250 = arith.truncf %249 : vector<8x16xf32> to vector<8x16xbf16>
    %cst_120 = arith.constant dense<0.000000e+00> : vector<8x8xf32>
    %251 = tpu.matmul %250, %234, %cst_120 {dimension_numbers = #tpu.dot_dimension_numbers<[1], [0], [0], [1], [0, 0, 1, 1], [], []>} : vector<8x16xbf16>, vector<16x8xbf16>, vector<8x8xf32> -> vector<8x8xf32>
    %c0_121 = arith.constant 0 : index
    %c16_122 = arith.constant 16 : index
    %252 = vector.load %arg38[%c0_121, %c16_122] : memref<8x32xf32, #tpu.memory_space<vmem>>, vector<8x8xf32>
    tpu.vector_store %arg38[%c0_121, %c16_122], %251 {strides = array<i32>} : memref<8x32xf32, #tpu.memory_space<vmem>>, vector<8x8xf32>,
    %253 = vector.extract_strided_slice %186 {offsets = [0, 24], sizes = [8, 8], strides = [1, 1]} : vector<8x32xf32> to vector<8x8xf32>
    %254 = arith.truncf %253 : vector<8x8xf32> to vector<8x8xbf16>
    %c0_123 = arith.constant 0 : index
    %c24_124 = arith.constant 24 : index
    %255 = vector.load %arg36[%c0_123, %c24_124] : memref<16x32xbf16, #tpu.memory_space<vmem>>, vector<16x8xbf16>
    %c0_125 = arith.constant 0 : index
    %c24_126 = arith.constant 24 : index
    %256 = vector.load %arg37[%c0_125, %c24_126] : memref<16x32xbf16, #tpu.memory_space<vmem>>, vector<16x8xbf16>
    %cst_127 = arith.constant dense<0.000000e+00> : vector<8x16xf32>
    %257 = tpu.matmul %254, %255, %cst_127 {dimension_numbers = #tpu.dot_dimension_numbers<[1], [1], [0], [0], [0, 0, 1, 0], [], []>} : vector<8x8xbf16>, vector<16x8xbf16>, vector<8x16xf32> -> vector<8x16xf32>
    %cst_128 = arith.constant 0.353553385 : f32
    %258 = vector.broadcast %cst_128 : f32 to vector<8x16xf32>
    %259 = arith.mulf %257, %258 : vector<8x16xf32>
    %260 = vector.broadcast %18 : vector<1x16xf32> to vector<8x16xf32>
    %261 = arith.addf %259, %260 : vector<8x16xf32>
    %cst_129 = arith.constant dense<0xFF800000> : vector<8xf32>
    %262 = vector.multi_reduction <maximumf>, %261, %cst_129 [1] : vector<8x16xf32> to vector<8xf32>
    %263 = vector.shape_cast %262 : vector<8xf32> to vector<8x1xf32>
    %264 = vector.broadcast %263 : vector<8x1xf32> to vector<8x16xf32>
    %265 = arith.subf %261, %264 : vector<8x16xf32>
    %266 = math.exp %265 : vector<8x16xf32>
    %cst_130 = arith.constant dense<0.000000e+00> : vector<8xf32>
    %267 = vector.multi_reduction <add>, %266, %cst_130 [1] : vector<8x16xf32> to vector<8xf32>
    %268 = vector.shape_cast %267 : vector<8xf32> to vector<8x1xf32>
    %269 = tpu.reciprocal %268 {approx = true} : vector<8x1xf32> -> vector<8x1xf32>
    %270 = vector.broadcast %269 : vector<8x1xf32> to vector<8x16xf32>
    %271 = arith.mulf %266, %270 : vector<8x16xf32>
    %272 = arith.truncf %271 : vector<8x16xf32> to vector<8x16xbf16>
    %cst_131 = arith.constant dense<0.000000e+00> : vector<8x8xf32>
    %273 = tpu.matmul %272, %256, %cst_131 {dimension_numbers = #tpu.dot_dimension_numbers<[1], [0], [0], [1], [0, 0, 1, 1], [], []>} : vector<8x16xbf16>, vector<16x8xbf16>, vector<8x8xf32> -> vector<8x8xf32>
    %c0_132 = arith.constant 0 : index
    %c24_133 = arith.constant 24 : index
    %274 = vector.load %arg38[%c0_132, %c24_133] : memref<8x32xf32, #tpu.memory_space<vmem>>, vector<8x8xf32>
    tpu.vector_store %arg38[%c0_132, %c24_133], %273 {strides = array<i32>} : memref<8x32xf32, #tpu.memory_space<vmem>>, vector<8x8xf32>,
    %c0_134 = arith.constant 0 : index
    %c0_135 = arith.constant 0 : index
    %275 = vector.load %arg38[%c0_134, %c0_135] : memref<8x32xf32, #tpu.memory_space<vmem>>, vector<8x32xf32>
    %276 = arith.truncf %275 : vector<8x32xf32> to vector<8x32xbf16>
    %c0_136 = arith.constant 0 : index
    %c0_137 = arith.constant 0 : index
    %277 = vector.load %arg25[%c0_136, %c0_137] : memref<32x32xbf16, #tpu.memory_space<vmem>>, vector<32x32xbf16>
    %cst_138 = arith.constant dense<0.000000e+00> : vector<8x32xf32>
    %278 = tpu.matmul %276, %277, %cst_138 {dimension_numbers = #tpu.dot_dimension_numbers<[1], [0], [0], [1], [0, 0, 1, 1], [], []>} : vector<8x32xbf16>, vector<32x32xbf16>, vector<8x32xf32> -> vector<8x32xf32>
    %c0_139 = arith.constant 0 : index
    %c0_140 = arith.constant 0 : index
    %279 = vector.load %arg26[%c0_139, %c0_140] : memref<1x32xf32, #tpu.memory_space<vmem>>, vector<1x32xf32>
    %280 = vector.shape_cast %279 : vector<1x32xf32> to vector<32xf32>
    %281 = vector.shape_cast %280 : vector<32xf32> to vector<1x32xf32>
    %282 = vector.broadcast %281 : vector<1x32xf32> to vector<8x32xf32>
    %283 = arith.addf %278, %282 : vector<8x32xf32>
    %284 = arith.addf %149, %283 : vector<8x32xf32>
    %cst_141 = arith.constant dense<0.000000e+00> : vector<8xf32>
    %285 = vector.multi_reduction <add>, %284, %cst_141 [1] : vector<8x32xf32> to vector<8xf32>
    %286 = vector.shape_cast %285 : vector<8xf32> to vector<8x1xf32>
    %cst_142 = arith.constant 3.200000e+01 : f32
    %287 = vector.broadcast %cst_142 : f32 to vector<8x1xf32>
    %288 = arith.divf %286, %287 : vector<8x1xf32>
    %289 = vector.broadcast %288 : vector<8x1xf32> to vector<8x32xf32>
    %290 = arith.subf %284, %289 : vector<8x32xf32>
    %291 = arith.mulf %290, %290 : vector<8x32xf32>
    %cst_143 = arith.constant dense<0.000000e+00> : vector<8xf32>
    %292 = vector.multi_reduction <add>, %291, %cst_143 [1] : vector<8x32xf32> to vector<8xf32>
    %293 = vector.shape_cast %292 : vector<8xf32> to vector<8x1xf32>
    %cst_144 = arith.constant 0.0322580636 : f32
    %294 = vector.broadcast %cst_144 : f32 to vector<8x1xf32>
    %295 = arith.mulf %293, %294 : vector<8x1xf32>
    %296 = math.sqrt %295 : vector<8x1xf32>
    %cst_145 = arith.constant 9.99999997E-7 : f32
    %297 = vector.broadcast %cst_145 : f32 to vector<8x1xf32>
    %298 = arith.addf %296, %297 : vector<8x1xf32>
    %299 = tpu.reciprocal %298 {approx = true} : vector<8x1xf32> -> vector<8x1xf32>
    %c0_146 = arith.constant 0 : index
    %c0_147 = arith.constant 0 : index
    %300 = vector.load %arg27[%c0_146, %c0_147] : memref<1x32xf32, #tpu.memory_space<vmem>>, vector<1x32xf32>
    %301 = vector.shape_cast %300 : vector<1x32xf32> to vector<32xf32>
    %302 = vector.broadcast %288 : vector<8x1xf32> to vector<8x32xf32>
    %303 = arith.subf %284, %302 : vector<8x32xf32>
    %304 = vector.shape_cast %301 : vector<32xf32> to vector<1x32xf32>
    %305 = vector.broadcast %304 : vector<1x32xf32> to vector<8x32xf32>
    %306 = arith.mulf %305, %303 : vector<8x32xf32>
    %307 = vector.broadcast %299 : vector<8x1xf32> to vector<8x32xf32>
    %308 = arith.mulf %306, %307 : vector<8x32xf32>
    %c0_148 = arith.constant 0 : index
    %c0_149 = arith.constant 0 : index
    %309 = vector.load %arg28[%c0_148, %c0_149] : memref<1x32xf32, #tpu.memory_space<vmem>>, vector<1x32xf32>
    %310 = vector.shape_cast %309 : vector<1x32xf32> to vector<32xf32>
    %311 = vector.shape_cast %310 : vector<32xf32> to vector<1x32xf32>
    %312 = vector.broadcast %311 : vector<1x32xf32> to vector<8x32xf32>
    %313 = arith.addf %308, %312 : vector<8x32xf32>
    %314 = arith.truncf %313 : vector<8x32xf32> to vector<8x32xbf16>
    %c0_150 = arith.constant 0 : index
    %c0_151 = arith.constant 0 : index
    %315 = vector.load %arg29[%c0_150, %c0_151] : memref<32x64xbf16, #tpu.memory_space<vmem>>, vector<32x64xbf16>
    %cst_152 = arith.constant dense<0.000000e+00> : vector<8x64xf32>
    %316 = tpu.matmul %314, %315, %cst_152 {dimension_numbers = #tpu.dot_dimension_numbers<[1], [0], [0], [1], [0, 0, 1, 1], [], []>} : vector<8x32xbf16>, vector<32x64xbf16>, vector<8x64xf32> -> vector<8x64xf32>
    %c0_153 = arith.constant 0 : index
    %c0_154 = arith.constant 0 : index
    %317 = vector.load %arg30[%c0_153, %c0_154] : memref<1x64xf32, #tpu.memory_space<vmem>>, vector<1x64xf32>
    %318 = vector.shape_cast %317 : vector<1x64xf32> to vector<64xf32>
    %319 = vector.shape_cast %318 : vector<64xf32> to vector<1x64xf32>
    %320 = vector.broadcast %319 : vector<1x64xf32> to vector<8x64xf32>
    %321 = arith.addf %316, %320 : vector<8x64xf32>
    %cst_155 = arith.constant 0.000000e+00 : f32
    %322 = vector.broadcast %cst_155 : f32 to vector<8x64xf32>
    %323 = arith.maximumf %321, %322 : vector<8x64xf32>
    %324 = arith.truncf %323 : vector<8x64xf32> to vector<8x64xbf16>
    %c0_156 = arith.constant 0 : index
    %c0_157 = arith.constant 0 : index
    %325 = vector.load %arg31[%c0_156, %c0_157] : memref<64x32xbf16, #tpu.memory_space<vmem>>, vector<64x32xbf16>
    %cst_158 = arith.constant dense<0.000000e+00> : vector<8x32xf32>
    %326 = tpu.matmul %324, %325, %cst_158 {dimension_numbers = #tpu.dot_dimension_numbers<[1], [0], [0], [1], [0, 0, 1, 1], [], []>} : vector<8x64xbf16>, vector<64x32xbf16>, vector<8x32xf32> -> vector<8x32xf32>
    %c0_159 = arith.constant 0 : index
    %c0_160 = arith.constant 0 : index
    %327 = vector.load %arg32[%c0_159, %c0_160] : memref<1x32xf32, #tpu.memory_space<vmem>>, vector<1x32xf32>
    %328 = vector.shape_cast %327 : vector<1x32xf32> to vector<32xf32>
    %329 = vector.shape_cast %328 : vector<32xf32> to vector<1x32xf32>
    %330 = vector.broadcast %329 : vector<1x32xf32> to vector<8x32xf32>
    %331 = arith.addf %326, %330 : vector<8x32xf32>
    %332 = arith.addf %284, %331 : vector<8x32xf32>
    %c0_161 = arith.constant 0 : index
    %c0_162 = arith.constant 0 : index
    %c0_163 = arith.constant 0 : index
    %333 = vector.load %arg33[%c0_161, %c0_162, %c0_163] : memref<1x8x32xf32, #tpu.memory_space<vmem>>, vector<1x8x32xf32>
    %334 = vector.shape_cast %333 : vector<1x8x32xf32> to vector<8x32xf32>
    %335 = vector.shape_cast %332 : vector<8x32xf32> to vector<1x8x32xf32>
    tpu.vector_store %arg33[%c0_161, %c0_162, %c0_163], %335 {strides = array<i32>} : memref<1x8x32xf32, #tpu.memory_space<vmem>>, vector<1x8x32xf32>,
    return
  }
  func.func @transform_0(%arg0: i32, %arg1: i32) -> (i32, i32, i32) {
    %c0_i32 = arith.constant 0 : i32
    %c0_i32_0 = arith.constant 0 : i32
    return %arg0, %arg1, %c0_i32 : i32, i32, i32
  }
  func.func @transform_1(%arg0: i32, %arg1: i32) -> (i32, i32, i32) {
    %c0_i32 = arith.constant 0 : i32
    %c0_i32_0 = arith.constant 0 : i32
    %c0_i32_1 = arith.constant 0 : i32
    return %arg0, %c0_i32, %c0_i32_0 : i32, i32, i32
  }
  func.func @transform_2(%arg0: i32, %arg1: i32) -> (i32, i32, i32) {
    %c0_i32 = arith.constant 0 : i32
    %c0_i32_0 = arith.constant 0 : i32
    %c0_i32_1 = arith.constant 0 : i32
    return %arg0, %c0_i32, %c0_i32_0 : i32, i32, i32
  }
  func.func @transform_3(%arg0: i32, %arg1: i32) -> (i32, i32, i32) {
    %c0_i32 = arith.constant 0 : i32
    %c0_i32_0 = arith.constant 0 : i32
    return %arg0, %arg1, %c0_i32 : i32, i32, i32
  }
  func.func @transform_4(%arg0: i32, %arg1: i32) -> (i32, i32, i32) {
    %c0_i32 = arith.constant 0 : i32
    %c0_i32_0 = arith.constant 0 : i32
    %c0_i32_1 = arith.constant 0 : i32
    return %arg0, %c0_i32, %c0_i32_0 : i32, i32, i32
  }
  func.func @transform_5(%arg0: i32, %arg1: i32) -> (i32, i32) {
    %c0_i32 = arith.constant 0 : i32
    %c0_i32_0 = arith.constant 0 : i32
    %c0_i32_1 = arith.constant 0 : i32
    return %c0_i32, %c0_i32_0 : i32, i32
  }
  func.func @transform_6(%arg0: i32, %arg1: i32) -> (i32, i32) {
    %c0_i32 = arith.constant 0 : i32
    %c0_i32_0 = arith.constant 0 : i32
    %c0_i32_1 = arith.constant 0 : i32
    return %c0_i32, %c0_i32_0 : i32, i32
  }
  func.func @transform_7(%arg0: i32, %arg1: i32) -> (i32, i32) {
    %c0_i32 = arith.constant 0 : i32
    %c0_i32_0 = arith.constant 0 : i32
    %c0_i32_1 = arith.constant 0 : i32
    return %c0_i32, %c0_i32_0 : i32, i32
  }
  func.func @transform_8(%arg0: i32, %arg1: i32) -> (i32, i32) {
    %c0_i32 = arith.constant 0 : i32
    %c0_i32_0 = arith.constant 0 : i32
    %c0_i32_1 = arith.constant 0 : i32
    return %c0_i32, %c0_i32_0 : i32, i32
  }
  func.func @transform_9(%arg0: i32, %arg1: i32) -> (i32, i32) {
    %c0_i32 = arith.constant 0 : i32
    %c0_i32_0 = arith.constant 0 : i32
    %c0_i32_1 = arith.constant 0 : i32
    return %c0_i32, %c0_i32_0 : i32, i32
  }
  func.func @transform_10(%arg0: i32, %arg1: i32) -> (i32, i32) {
    %c0_i32 = arith.constant 0 : i32
    %c0_i32_0 = arith.constant 0 : i32
    %c0_i32_1 = arith.constant 0 : i32
    return %c0_i32, %c0_i32_0 : i32, i32
  }
  func.func @transform_11(%arg0: i32, %arg1: i32) -> (i32, i32) {
    %c0_i32 = arith.constant 0 : i32
    %c0_i32_0 = arith.constant 0 : i32
    %c0_i32_1 = arith.constant 0 : i32
    return %c0_i32, %c0_i32_0 : i32, i32
  }
  func.func @transform_12(%arg0: i32, %arg1: i32) -> (i32, i32) {
    %c0_i32 = arith.constant 0 : i32
    %c0_i32_0 = arith.constant 0 : i32
    %c0_i32_1 = arith.constant 0 : i32
    return %c0_i32, %c0_i32_0 : i32, i32
  }
  func.func @transform_13(%arg0: i32, %arg1: i32) -> (i32, i32) {
    %c0_i32 = arith.constant 0 : i32
    %c0_i32_0 = arith.constant 0 : i32
    %c0_i32_1 = arith.constant 0 : i32
    return %c0_i32, %c0_i32_0 : i32, i32
  }
  func.func @transform_14(%arg0: i32, %arg1: i32) -> (i32, i32) {
    %c0_i32 = arith.constant 0 : i32
    %c0_i32_0 = arith.constant 0 : i32
    %c0_i32_1 = arith.constant 0 : i32
    return %c0_i32, %c0_i32_0 : i32, i32
  }
  func.func @transform_15(%arg0: i32, %arg1: i32) -> (i32, i32) {
    %c0_i32 = arith.constant 0 : i32
    %c0_i32_0 = arith.constant 0 : i32
    %c0_i32_1 = arith.constant 0 : i32
    return %c0_i32, %c0_i32_0 : i32, i32
  }
  func.func @transform_16(%arg0: i32, %arg1: i32) -> (i32, i32) {
    %c0_i32 = arith.constant 0 : i32
    %c0_i32_0 = arith.constant 0 : i32
    %c0_i32_1 = arith.constant 0 : i32
    return %c0_i32, %c0_i32_0 : i32, i32
  }
  func.func @transform_17(%arg0: i32, %arg1: i32) -> (i32, i32) {
    %c0_i32 = arith.constant 0 : i32
    %c0_i32_0 = arith.constant 0 : i32
    %c0_i32_1 = arith.constant 0 : i32
    return %c0_i32, %c0_i32_0 : i32, i32
  }
  func.func @transform_18(%arg0: i32, %arg1: i32) -> (i32, i32) {
    %c0_i32 = arith.constant 0 : i32
    %c0_i32_0 = arith.constant 0 : i32
    %c0_i32_1 = arith.constant 0 : i32
    return %c0_i32, %c0_i32_0 : i32, i32
  }
  func.func @transform_19(%arg0: i32, %arg1: i32) -> (i32, i32) {
    %c0_i32 = arith.constant 0 : i32
    %c0_i32_0 = arith.constant 0 : i32
    %c0_i32_1 = arith.constant 0 : i32
    return %c0_i32, %c0_i32_0 : i32, i32
  }
  func.func @transform_20(%arg0: i32, %arg1: i32) -> (i32, i32) {
    %c0_i32 = arith.constant 0 : i32
    %c0_i32_0 = arith.constant 0 : i32
    %c0_i32_1 = arith.constant 0 : i32
    return %c0_i32, %c0_i32_0 : i32, i32
  }
  func.func @transform_21(%arg0: i32, %arg1: i32) -> (i32, i32) {
    %c0_i32 = arith.constant 0 : i32
    %c0_i32_0 = arith.constant 0 : i32
    %c0_i32_1 = arith.constant 0 : i32
    return %c0_i32, %c0_i32_0 : i32, i32
  }
  func.func @transform_22(%arg0: i32, %arg1: i32) -> (i32, i32) {
    %c0_i32 = arith.constant 0 : i32
    %c0_i32_0 = arith.constant 0 : i32
    %c0_i32_1 = arith.constant 0 : i32
    return %c0_i32, %c0_i32_0 : i32, i32
  }
  func.func @transform_23(%arg0: i32, %arg1: i32) -> (i32, i32) {
    %c0_i32 = arith.constant 0 : i32
    %c0_i32_0 = arith.constant 0 : i32
    %c0_i32_1 = arith.constant 0 : i32
    return %c0_i32, %c0_i32_0 : i32, i32
  }
  func.func @transform_24(%arg0: i32, %arg1: i32) -> (i32, i32) {
    %c0_i32 = arith.constant 0 : i32
    %c0_i32_0 = arith.constant 0 : i32
    %c0_i32_1 = arith.constant 0 : i32
    return %c0_i32, %c0_i32_0 : i32, i32
  }
  func.func @transform_25(%arg0: i32, %arg1: i32) -> (i32, i32) {
    %c0_i32 = arith.constant 0 : i32
    %c0_i32_0 = arith.constant 0 : i32
    %c0_i32_1 = arith.constant 0 : i32
    return %c0_i32, %c0_i32_0 : i32, i32
  }
  func.func @transform_26(%arg0: i32, %arg1: i32) -> (i32, i32) {
    %c0_i32 = arith.constant 0 : i32
    %c0_i32_0 = arith.constant 0 : i32
    %c0_i32_1 = arith.constant 0 : i32
    return %c0_i32, %c0_i32_0 : i32, i32
  }
  func.func @transform_27(%arg0: i32, %arg1: i32) -> (i32, i32) {
    %c0_i32 = arith.constant 0 : i32
    %c0_i32_0 = arith.constant 0 : i32
    %c0_i32_1 = arith.constant 0 : i32
    return %c0_i32, %c0_i32_0 : i32, i32
  }
  func.func @transform_28(%arg0: i32, %arg1: i32) -> (i32, i32) {
    %c0_i32 = arith.constant 0 : i32
    %c0_i32_0 = arith.constant 0 : i32
    %c0_i32_1 = arith.constant 0 : i32
    return %c0_i32, %c0_i32_0 : i32, i32
  }
  func.func @transform_29(%arg0: i32, %arg1: i32) -> (i32, i32) {
    %c0_i32 = arith.constant 0 : i32
    %c0_i32_0 = arith.constant 0 : i32
    %c0_i32_1 = arith.constant 0 : i32
    return %c0_i32, %c0_i32_0 : i32, i32
  }
  func.func @transform_30(%arg0: i32, %arg1: i32) -> (i32, i32) {
    %c0_i32 = arith.constant 0 : i32
    %c0_i32_0 = arith.constant 0 : i32
    %c0_i32_1 = arith.constant 0 : i32
    return %c0_i32, %c0_i32_0 : i32, i32
  }
  func.func @transform_31(%arg0: i32, %arg1: i32) -> (i32, i32, i32) {
    %c0_i32 = arith.constant 0 : i32
    %c0_i32_0 = arith.constant 0 : i32
    return %arg0, %arg1, %c0_i32 : i32, i32, i32
  }
}

</mosaic_0001>

<bundles_post_ra>
// kernel: tpu_custom_call.1
= control target key start
LH: loop header
LB: loop body
LE: loop exit
PB: predicated region body
PF: predicated region fallthrough
CT: control target
= control target key end

     0   :  { %s4861_s6 = smov 1   ;;  %s4862_s10 = smov 2   ;;  %s5802_s0 = inlined_call_operand.smem [shape: u32[32], index: -1, kind: input, shape index: {}] }
   0x1   :  { %s4931_s5 = sld [smem:[%s5802_s0]]   ;;  %s4863_s14 = smov 3  }
   0x2   :  { %s4936_s9 = sld [smem:[%s5802_s0 + %s4861_s6]]   ;;  %s4864_s18 = smov 4  }
   0x3   :  { %s4941_s13 = sld [smem:[%s5802_s0 + %s4862_s10]]   ;;  %s4865_s22 = smov 5  }
   0x4   :  { %s4946_s17 = sld [smem:[%s5802_s0 + %s4863_s14]]   ;;  %s4866_s26 = smov 6  }
   0x5   :  { %s4951_s21 = sld [smem:[%s5802_s0 + %s4864_s18]]   ;;  %s4867_s30 = smov 7  }
   0x6   :  { %s4956_s25 = sld [smem:[%s5802_s0 + %s4865_s22]]   ;;  %s4868_s4 = smov 8  }
   0x7   :  { %5847 = sst [smem:[#allocation49_spill]] %s4931_s5  ;;  %s4869_s10 = smov 9  }
   0x8   :  { %5848 = sst [smem:[#allocation50_spill]] %s4936_s9  ;;  %s4870_s15 = smov 10  }
   0x9   :  { %5849 = sst [smem:[#allocation51_spill]] %s4941_s13  ;;  %s4871_s20 = smov 11  }
   0xa   :  { %5850 = sst [smem:[#allocation52_spill]] %s4946_s17  ;;  %s4873_s1 = smov 13  }
   0xb   :  { %5851 = sst [smem:[#allocation53_spill]] %s4951_s21  ;;  %s4874_s7 = smov 14  }
   0xc   :  { %5852 = sst [smem:[#allocation54_spill]] %s4956_s25  ;;  %s4876_s22 = smov 16  }
   0xd   :  { %s4961_s29 = sld [smem:[%s5802_s0 + %s4866_s26]]   ;;  %s4872_s26 = smov 12  }
   0xe   :  { %s4966_s3 = sld [smem:[%s5802_s0 + %s4867_s30]]   ;;  %s4877_s28 = smov 17  }
   0xf   :  { %s4971_s8 = sld [smem:[%s5802_s0 + %s4868_s4]]  }
  0x10   :  { %s4976_s14 = sld [smem:[%s5802_s0 + %s4869_s10]]  }
  0x11   :  { %s4981_s19 = sld [smem:[%s5802_s0 + %s4870_s15]]   ;;  %s4875_s15 = smov 15  }
  0x12   :  { %s4986_s24 = sld [smem:[%s5802_s0 + %s4871_s20]]  }
  0x13   :  { %s4991_s30 = sld [smem:[%s5802_s0 + %s4872_s26]]  }
  0x14   :  { %5853 = sst [smem:[#allocation55_spill]] %s4966_s3 }
  0x15   :  { %5854 = sst [smem:[#allocation56_spill]] %s4971_s8 }
  0x16   :  { %5855 = sst [smem:[#allocation57_spill]] %s4976_s14 }
  0x17   :  { %5856 = sst [smem:[#allocation58_spill]] %s4981_s19 }
  0x18   :  { %s4996_s6 = sld [smem:[%s5802_s0 + %s4873_s1]]  }
  0x19   :  { %5857 = sst [smem:[#allocation59_spill]] %s4991_s30 }
  0x1a   :  { %s5001_s12 = sld [smem:[%s5802_s0 + %s4874_s7]]   ;;  %s4878_s7 = smov 18  }
  0x1b   :  { %s5006_s20 = sld [smem:[%s5802_s0 + %s4875_s15]]   ;;  %s4879_s15 = smov 19  }
  0x1c   :  { %s5011_s27 = sld [smem:[%s5802_s0 + %s4876_s22]]   ;;  %s4880_s22 = smov 20  }
  0x1d   :  { %s5016_s4 = sld [smem:[%s5802_s0 + %s4877_s28]]   ;;  %s4881_s28 = smov 21  }
  0x1e   :  { %5858 = sst [smem:[#allocation60_spill]] %s4996_s6 }
  0x1f   :  { %s5021_s6 = sld [smem:[%s5802_s0 + %s4878_s7]]   ;;  %s4882_s7 = smov 22  }
  0x20   :  { %s5026_s13 = sld [smem:[%s5802_s0 + %s4879_s15]]   ;;  %s4883_s15 = smov 23  }
  0x21   :  { %5859 = sst [smem:[#allocation61_spill]] %s5006_s20 }
  0x22   :  { %s5031_s14 = sld [smem:[%s5802_s0 + %s4880_s22]]   ;;  %s4884_s22 = smov 24  }
  0x23   :  { %5860 = sst [smem:[#allocation62_spill]] %s5016_s4 }
  0x24   :  { %s5036_s4 = sld [smem:[%s5802_s0 + %s4881_s28]]   ;;  %s4885_s28 = smov 25  }
  0x25   :  { %5861 = sst [smem:[#allocation63_spill]] %s5021_s6 }
  0x26   :  { %5862 = sst [smem:[#allocation64_spill]] %s5026_s13 }
  0x27   :  { %s5041_s6 = sld [smem:[%s5802_s0 + %s4882_s7]]   ;;  %s4886_s7 = smov 26  }
  0x28   :  { %5863 = sst [smem:[#allocation65_spill]] %s5031_s14 }
  0x29   :  { %s5046_s5 = sld [smem:[%s5802_s0 + %s4883_s15]]   ;;  %s4887_s15 = smov 27  }
  0x2a   :  { %5864 = sst [smem:[#allocation66_spill]] %s5036_s4 }
  0x2b   :  { %s5051_s14 = sld [smem:[%s5802_s0 + %s4884_s22]]   ;;  %s4888_s22 = smov 28  }
  0x2c   :  { %s5056_s21 = sld [smem:[%s5802_s0 + %s4885_s28]]   ;;  %s4889_s28 = smov 29  }
  0x2d   :  { %5865 = sst [smem:[#allocation67_spill]] %s5041_s6 }
  0x2e   :  { %s5061_s9 = sld [smem:[%s5802_s0 + %s4886_s7]]   ;;  %s4890_s7 = smov 30  }
  0x2f   :  { %5866 = sst [smem:[#allocation68_spill]] %s5046_s5 }
  0x30   :  { %s5066_s5 = sld [smem:[%s5802_s0 + %s4887_s15]]   ;;  %s4891_s15 = smov 31  }
  0x31   :  { %5867 = sst [smem:[#allocation69_spill]] %s5051_s14 }
  0x32   :  { %5868 = sst [smem:[#allocation70_spill]] %s5056_s21 }
  0x33   :  { %s5071_s14 = sld [smem:[%s5802_s0 + %s4888_s22]]  }
  0x34   :  { %5869 = sst [smem:[#allocation71_spill]] %s5061_s9 }
  0x35   :  { %s5076_s4 = sld [smem:[%s5802_s0 + %s4889_s28]]  }
  0x36   :  { %5870 = sst [smem:[#allocation72_spill]] %s5066_s5 }
  0x37   :  { %s5081_s9 = sld [smem:[%s5802_s0 + %s4890_s7]]  }
  0x38   :  { %s5086_s5 = sld [smem:[%s5802_s0 + %s4891_s15]]  }
  0x39   :  { %5871 = sst [smem:[#allocation73_spill]] %s5071_s14 }
  0x3d   :  { %5872 = sst [smem:[#allocation74_spill]] %s5081_s9 }
  0x3e   :  { %5873 = sst [smem:[#allocation75_spill]] %s5086_s5 }
  0x3f   :  { %68 = vsyncpa [#allocation8], 0 }
  0x40   :  { %70 = vsyncpa [#allocation8 + $0x1], 0 }
  0x41   :  { %71 = vsyncpa [#allocation11], 0 }
  0x42   :  { %73 = vsyncpa [#allocation11 + $0x1], 0 }
  0x43   :  { %74 = vsyncpa [#allocation14], 0 }
  0x44   :  { %75 = vsyncpa [#allocation17], 0 }
  0x45   :  { %76 = vsyncpa [#allocation20], 0 }
  0x46   :  { %77 = vsyncpa [#allocation23], 0 }
  0x47   :  { %78 = vsyncpa [#allocation26], 0 }
  0x48   :  { %79 = vsyncpa [#allocation29], 0 }
  0x49   :  { %80 = vsyncpa [#allocation32], 0 }
  0x4a   :  { %81 = vsyncpa [#allocation35], 0 }
  0x4b   :  { %82 = vsyncpa [#allocation9], 0 }
  0x4c   :  { %84 = vsyncpa [#allocation9 + $0x1], 0  ;;  %s5088_s22 = smov 0   ;;  %s5090_s23 = smov 0  }
  0x4d   :  { %s5092_s0 = smov 0   ;;  %s5094_s26 = smov 0  }
  0x4e   :  { %s5096_s28 = smov 0   ;;  %s5098_s1 = smov 0  }
  0x4f LB: > { %s5874_s8 = sld [smem:[#allocation56_spill]]  ;;  %s5875_s17 = sld [smem:[#allocation52_spill]]  ;;  %s4851_s26 = sphi %s5094_s26, %s5953_s26   ;;  %s4847_s0 = sphi %s5092_s0, %s5949_s0   ;;  %s4843_s23 = sphi %s5090_s23, %s5952_s23   ;;  %s4839_s22 = sphi %s5088_s22, %s5951_s22   ;;  %s4859_s1 = sphi %s5098_s1, %s90_s1   ;;  %s4855_s28 = sphi %s5096_s28, %s5954_s28  }
  0x50   : > { %s5876_s30 = sld [smem:[#allocation59_spill]]  ;;  %s5877_s21 = sld [smem:[#allocation70_spill]] }
  0x51   : > { %s5878_s20 = sld [smem:[#allocation61_spill]]  ;;  %s5879_s19 = sld [smem:[#allocation58_spill]] }
  0x52   : > { %s5880_s13 = sld [smem:[#allocation64_spill]]  ;;  %s5881_s6 = sld [smem:[#allocation67_spill]] }
  0x53   : > { %s5882_s3 = sld [smem:[#allocation55_spill]]  ;;  %s5883_s25 = sld [smem:[#allocation54_spill]] }
  0x54   : > { %5884 = sst [smem:[#allocation76_spill]] %s4847_s0  ;;  %s5119_s2 = sadd.s32 4294967295, %s4859_s1  }
  0x55   : > { %5885 = sst [smem:[#allocation77_spill]] %s4859_s1  ;;  %p3485_p0 = scmp.ge.s32.totalorder %s4859_s1, 1 }
  0x56   : > { %p5814_p1 = scmp.eq.s32.totalorder %s5119_s2, 0  ;;  %p815_p2 = scmp.lt.s32.totalorder %s4859_s1, 3 }
  0x57   : > { %s4892_s10 = smov [#allocation13]   ;;  %s4893_s15 = smov [#allocation16]  }
  0x58   : > { %p5124_p3 = pnand %p3485_p0, %p815_p2  ;;  %s828_s11 = sshll.u32 %s4892_s10, 4  ;;  %s829_s11 = int_to_ptr.vmem [resolvable:$true] %s828_s11 }
  0x59   : > { %s849_s16 = sshll.u32 %s4893_s15, 4  ;;  %s4894_s5 = smov [#allocation19]   ;;  %s5137_s16 = int_to_ptr.vmem [resolvable:$true] %s849_s16 }
  0x5a   : > { %s5886_s7 = scalar_select %p5124_p3, 1, 0 }
  0x5b   : > { %p3924_p5 = pneg %p5124_p3  ;;  %s5139_s9 = sshll.u32 %s4894_s5, 4  ;;  %s878_s9 = int_to_ptr.vmem [resolvable:$true] %s5139_s9 }
  0x5c   : > { %s4203_s14 = scalar_lea.hbm %s5883_s25, 16 }
  0x5d   : > { %p5133_p6 = pnand %p3924_p5, %p5814_p1  ;;  %p4204_p7 = scmp.ne.s32.totalorder %s5883_s25, %s4203_s14 }
  0x5e   : > { %p4210_p11 = scmp.lt.u32.totalorder %s4203_s14, %s5883_s25 }
  0x5f   : > { %s5887_s18 = scalar_select %p5133_p6, 1, 0 }
  0x60   : > { %p5145_p8 = pneg %p5133_p6 }
  0x62   : > { %s5888_s10 = scalar_select %p5145_p8, 1, 0 }
  0x63   : > { %p4206_p9 = pnand %p5145_p8, %p4204_p7 }
  0x65   : > { %p4207_p10 = pneg %p4206_p9 }
  0x67   : > { %p4212_p12 = pnand %p4210_p11, %p4207_p10 }
  0x69   : > { %4215 = shalt.err (!%p4212_p12)
}
  0x6a   : > { %s4216_s15 = scalar_lea.vmem %s829_s11, 16  ;;  %s4223_s5 = scalar_lea.vmem %s829_s11, 32 }
  0x6b   : > { %p4217_p13 = scmp.ne.s32.totalorder %s829_s11, %s4216_s15  ;;  %p4224_p5 = scmp.lt.s32.totalorder %s829_s11, %s829_s11 }
  0x6c   : > { %p4225_p4 = scmp.lt.s32.totalorder %s4223_s5, %s4216_s15 }
  0x6d   : > { %p4219_p0 = pnand %p4217_p13, %p5145_p8 }
  0x6e   : > { %p4226_p1 = por %p4225_p4, %p4224_p5 }
  0x6f   : > { %p4220_p2 = pneg %p4219_p0 }
  0x71   : > { %p4227_p3 = pnand %p4226_p1, %p4220_p2 }
  0x73   : > { %4230 = shalt.err (!%p4227_p3)
}
  0x74   : > { %3927 = dma.hbm_to_vmem [thread:$0]  (!%p5133_p6), %s5883_s25, 16, %s829_s11, [#allocation14]  }
  0x75   : > { %s4231_s14 = scalar_lea.hbm %s5882_s3, 256 }
  0x76   : > { %p4232_p7 = scmp.ne.s32.totalorder %s5882_s3, %s4231_s14  ;;  %p4238_p11 = scmp.lt.u32.totalorder %s4231_s14, %s5882_s3 }
  0x78   : > { %p4234_p9 = pnand %p4232_p7, %p5145_p8 }
  0x7a   : > { %p4235_p10 = pneg %p4234_p9 }
  0x7c   : > { %p4240_p12 = pnand %p4238_p11, %p4235_p10 }
  0x7e   : > { %4243 = shalt.err (!%p4240_p12)
}
  0x7f   : > { %s4244_s15 = scalar_lea.vmem %s5137_s16, 256  ;;  %p4252_p13 = scmp.lt.s32.totalorder %s5137_s16, %s5137_s16 }
  0x80   : > { %p4245_p1 = scmp.ne.s32.totalorder %s5137_s16, %s4244_s15  ;;  %p4253_p0 = scmp.lt.s32.totalorder %s4244_s15, %s4244_s15 }
  0x82   : > { %p4247_p3 = pnand %p4245_p1, %p5145_p8  ;;  %p4254_p2 = por %p4253_p0, %p4252_p13 }
  0x84   : > { %p4248_p4 = pneg %p4247_p3 }
  0x86   : > { %p4255_p5 = pnand %p4254_p2, %p4248_p4 }
  0x88   : > { %4258 = shalt.err (!%p4255_p5)
}
  0x89   : > { %s5817_s11 = smov 64   ;;  %s5819_s5 = smov 4  }
  0x8a   : > { %3933 = dma.hbm_to_vmem [thread:$0]  (!%p5133_p6), %s5882_s3, 256, %s5137_s16, [#allocation17], %s5817_s11, %s5817_s11, %s5819_s5  }
  0x8b   : > { %s4259_s14 = scalar_lea.hbm %s5879_s19, 16 }
  0x8c   : > { %p4260_p7 = scmp.ne.s32.totalorder %s5879_s19, %s4259_s14  ;;  %p4266_p11 = scmp.lt.u32.totalorder %s4259_s14, %s5879_s19 }
  0x8e   : > { %p4262_p9 = pnand %p4260_p7, %p5145_p8 }
  0x90   : > { %p4263_p10 = pneg %p4262_p9 }
  0x92   : > { %p4268_p12 = pnand %p4266_p11, %p4263_p10 }
  0x94   : > { %4271 = shalt.err (!%p4268_p12)
}
  0x95   : > { %s4272_s15 = scalar_lea.vmem %s878_s9, 16  ;;  %s4279_s25 = scalar_lea.vmem %s878_s9, 32 }
  0x96   : > { %p4273_p1 = scmp.ne.s32.totalorder %s878_s9, %s4272_s15  ;;  %p4280_p13 = scmp.lt.s32.totalorder %s878_s9, %s878_s9 }
  0x97   : > { %p4281_p0 = scmp.lt.s32.totalorder %s4279_s25, %s4272_s15 }
  0x98   : > { %p4275_p3 = pnand %p4273_p1, %p5145_p8 }
  0x99   : > { %p4282_p2 = por %p4281_p0, %p4280_p13 }
  0x9a   : > { %p4276_p4 = pneg %p4275_p3 }
  0x9c   : > { %p4283_p5 = pnand %p4282_p2, %p4276_p4 }
  0x9e   : > { %4286 = shalt.err (!%p4283_p5)
}
  0x9f   : > { %3939 = dma.hbm_to_vmem [thread:$0]  (!%p5133_p6), %s5879_s19, 16, %s878_s9, [#allocation20]  }
  0xa0   : > { %s4897_s16 = smov [#allocation22]   ;;  %s4898_s11 = smov [#allocation25]  }
  0xa1   : > { %s901_s14 = sshll.u32 %s4897_s16, 4  ;;  %s926_s5 = sshll.u32 %s4898_s11, 4  ;;  %s902_s14 = int_to_ptr.vmem [resolvable:$true] %s901_s14  ;;  %s927_s5 = int_to_ptr.vmem [resolvable:$true] %s926_s5 }
  0xa2   : > { %s4287_s3 = scalar_lea.hbm %s5876_s30, 16 }
  0xa3   : > { %p4288_p7 = scmp.ne.s32.totalorder %s5876_s30, %s4287_s3  ;;  %p4294_p11 = scmp.lt.u32.totalorder %s4287_s3, %s5876_s30 }
  0xa5   : > { %p4290_p9 = pnand %p4288_p7, %p5145_p8 }
  0xa7   : > { %p4291_p10 = pneg %p4290_p9 }
  0xa9   : > { %p4296_p12 = pnand %p4294_p11, %p4291_p10 }
  0xab   : > { %4299 = shalt.err (!%p4296_p12)
}
  0xac   : > { %s4300_s25 = scalar_lea.vmem %s902_s14, 16  ;;  %s4307_s9 = scalar_lea.vmem %s902_s14, 32 }
  0xad   : > { %p4301_p1 = scmp.ne.s32.totalorder %s902_s14, %s4300_s25  ;;  %p4308_p13 = scmp.lt.s32.totalorder %s902_s14, %s902_s14 }
  0xae   : > { %p4309_p0 = scmp.lt.s32.totalorder %s4307_s9, %s4300_s25 }
  0xaf   : > { %p4303_p3 = pnand %p4301_p1, %p5145_p8 }
  0xb0   : > { %p4310_p2 = por %p4309_p0, %p4308_p13 }
  0xb1   : > { %p4304_p4 = pneg %p4303_p3 }
  0xb3   : > { %p4311_p5 = pnand %p4310_p2, %p4304_p4 }
  0xb5   : > { %4314 = shalt.err (!%p4311_p5)
}
  0xb6   : > { %3945 = dma.hbm_to_vmem [thread:$0]  (!%p5133_p6), %s5876_s30, 16, %s902_s14, [#allocation23]  }
  0xb7   : > { %s4315_s3 = scalar_lea.hbm %s5878_s20, 16 }
  0xb8   : > { %p4316_p7 = scmp.ne.s32.totalorder %s5878_s20, %s4315_s3  ;;  %p4322_p11 = scmp.lt.u32.totalorder %s4315_s3, %s5878_s20 }
  0xba   : > { %p4318_p9 = pnand %p4316_p7, %p5145_p8 }
  0xbc   : > { %p4319_p10 = pneg %p4318_p9 }
  0xbe   : > { %p4324_p12 = pnand %p4322_p11, %p4319_p10 }
  0xc0   : > { %4327 = shalt.err (!%p4324_p12)
}
  0xc1   : > { %s4328_s11 = scalar_lea.vmem %s927_s5, 16  ;;  %s4335_s15 = scalar_lea.vmem %s927_s5, 32 }
  0xc2   : > { %p4329_p1 = scmp.ne.s32.totalorder %s927_s5, %s4328_s11  ;;  %p4336_p13 = scmp.lt.s32.totalorder %s927_s5, %s927_s5 }
  0xc3   : > { %p4337_p0 = scmp.lt.s32.totalorder %s4335_s15, %s4328_s11 }
  0xc4   : > { %p4331_p3 = pnand %p4329_p1, %p5145_p8 }
  0xc5   : > { %p4338_p2 = por %p4337_p0, %p4336_p13 }
  0xc6   : > { %p4332_p4 = pneg %p4331_p3 }
  0xc8   : > { %p4339_p5 = pnand %p4338_p2, %p4332_p4 }
  0xca   : > { %4342 = shalt.err (!%p4339_p5)
}
  0xcb   : > { %3951 = dma.hbm_to_vmem [thread:$0]  (!%p5133_p6), %s5878_s20, 16, %s927_s5, [#allocation26]  }
  0xcc   : > { %s4899_s16 = smov [#allocation28]   ;;  %s4900_s25 = smov [#allocation31]  }
  0xcd   : > { %s953_s14 = sshll.u32 %s4899_s16, 4  ;;  %s983_s9 = sshll.u32 %s4900_s25, 4  ;;  %s954_s14 = int_to_ptr.vmem [resolvable:$true] %s953_s14  ;;  %s984_s9 = int_to_ptr.vmem [resolvable:$true] %s983_s9 }
  0xce   : > { %s4343_s3 = scalar_lea.hbm %s5880_s13, 256 }
  0xcf   : > { %p4344_p7 = scmp.ne.s32.totalorder %s5880_s13, %s4343_s3  ;;  %p4350_p11 = scmp.lt.u32.totalorder %s4343_s3, %s5880_s13 }
  0xd1   : > { %p4346_p9 = pnand %p4344_p7, %p5145_p8 }
  0xd3   : > { %p4347_p10 = pneg %p4346_p9 }
  0xd5   : > { %p4352_p12 = pnand %p4350_p11, %p4347_p10 }
  0xd7   : > { %4355 = shalt.err (!%p4352_p12)
}
  0xd8   : > { %s4356_s11 = scalar_lea.vmem %s954_s14, 256  ;;  %p4364_p13 = scmp.lt.s32.totalorder %s954_s14, %s954_s14 }
  0xd9   : > { %p4357_p1 = scmp.ne.s32.totalorder %s954_s14, %s4356_s11  ;;  %p4365_p0 = scmp.lt.s32.totalorder %s4356_s11, %s4356_s11 }
  0xdb   : > { %p4359_p3 = pnand %p4357_p1, %p5145_p8  ;;  %p4366_p2 = por %p4365_p0, %p4364_p13 }
  0xdd   : > { %p4360_p4 = pneg %p4359_p3 }
  0xdf   : > { %p4367_p5 = pnand %p4366_p2, %p4360_p4 }
  0xe1   : > { %4370 = shalt.err (!%p4367_p5)
}
  0xe2   : > { %s5889_s5 = smov 4   ;;  %s5890_s15 = smov 64  }
  0xe3   : > { %3957 = dma.hbm_to_vmem [thread:$0]  (!%p5133_p6), %s5880_s13, 256, %s954_s14, [#allocation29], %s5890_s15, %s5890_s15, %s5889_s5  }
  0xe4   : > { %s4371_s16 = scalar_lea.hbm %s5881_s6, 16 }
  0xe5   : > { %p4372_p7 = scmp.ne.s32.totalorder %s5881_s6, %s4371_s16  ;;  %p4378_p11 = scmp.lt.u32.totalorder %s4371_s16, %s5881_s6 }
  0xe7   : > { %p4374_p9 = pnand %p4372_p7, %p5145_p8 }
  0xe9   : > { %p4375_p10 = pneg %p4374_p9 }
  0xeb   : > { %p4380_p12 = pnand %p4378_p11, %p4375_p10 }
  0xed   : > { %4383 = shalt.err (!%p4380_p12)
}
  0xee   : > { %s4384_s25 = scalar_lea.vmem %s984_s9, 16  ;;  %s4391_s3 = scalar_lea.vmem %s984_s9, 32 }
  0xef   : > { %p4385_p1 = scmp.ne.s32.totalorder %s984_s9, %s4384_s25  ;;  %p4392_p13 = scmp.lt.s32.totalorder %s984_s9, %s984_s9 }
  0xf0   : > { %p4393_p0 = scmp.lt.s32.totalorder %s4391_s3, %s4384_s25 }
  0xf1   : > { %p4387_p3 = pnand %p4385_p1, %p5145_p8 }
  0xf2   : > { %p4394_p2 = por %p4393_p0, %p4392_p13 }
  0xf3   : > { %p4388_p4 = pneg %p4387_p3 }
  0xf5   : > { %p4395_p5 = pnand %p4394_p2, %p4388_p4 }
  0xf7   : > { %4398 = shalt.err (!%p4395_p5)
}
  0xf8   : > { %3963 = dma.hbm_to_vmem [thread:$0]  (!%p5133_p6), %s5881_s6, 16, %s984_s9, [#allocation32]  }
  0xf9   : > { %s4901_s14 = smov [#allocation34]   ;;  %s4399_s16 = scalar_lea.hbm %s5877_s21, 16 }
  0xfa   : > { %s1008_s11 = sshll.u32 %s4901_s14, 4  ;;  %p4400_p7 = scmp.ne.s32.totalorder %s5877_s21, %s4399_s16  ;;  %s1009_s11 = int_to_ptr.vmem [resolvable:$true] %s1008_s11 }
  0xfb   : > { %p4406_p11 = scmp.lt.u32.totalorder %s4399_s16, %s5877_s21 }
  0xfc   : > { %p4402_p9 = pnand %p4400_p7, %p5145_p8 }
  0xfe   : > { %p4403_p10 = pneg %p4402_p9 }
 0x100   : > { %p4408_p12 = pnand %p4406_p11, %p4403_p10 }
 0x102   : > { %4411 = shalt.err (!%p4408_p12)
}
 0x103   : > { %s4412_s25 = scalar_lea.vmem %s1009_s11, 16  ;;  %s4419_s3 = scalar_lea.vmem %s1009_s11, 32 }
 0x104   : > { %p4413_p1 = scmp.ne.s32.totalorder %s1009_s11, %s4412_s25  ;;  %p4420_p13 = scmp.lt.s32.totalorder %s1009_s11, %s1009_s11 }
 0x105   : > { %p4421_p0 = scmp.lt.s32.totalorder %s4419_s3, %s4412_s25 }
 0x106   : > { %p4415_p3 = pnand %p4413_p1, %p5145_p8 }
 0x107   : > { %p4422_p2 = por %p4421_p0, %p4420_p13 }
 0x108   : > { %p4416_p4 = pneg %p4415_p3 }
 0x10a   : > { %p4423_p5 = pnand %p4422_p2, %p4416_p4 }
 0x10c   : > { %4426 = shalt.err (!%p4423_p5)
}
 0x10d   : > { %3969 = dma.hbm_to_vmem [thread:$0]  (!%p5133_p6), %s5877_s21, 16, %s1009_s11, [#allocation35]  }
 0x10e   : > { %s3484_s9 = sadd.s32 4294967294, %s4859_s1   ;;  %s102_s14 = sadd.s32 1, %s4855_s28 }
 0x10f   : > { %p104_p7 = scmp.ge.s32.totalorder %s102_s14, 2  ;;  %s137_s16 = sadd.s32 1, %s4847_s0 }
 0x110   : > { %p144_p9 = scmp.ne.s32.totalorder %s4847_s0, %s4843_s23  ;;  %p145_p10 = scmp.eq.s32.totalorder %s4859_s1, 0 }
 0x111   : > { %s5956_s14 = smov (%p104_p7, %s102_s14), 0  ;;  %p150_p12 = scmp.ne.s32.totalorder %s4843_s23, %s4839_s22 }
 0x112   : > { %5891 = sst [smem:[#allocation78_spill]] %s5956_s14  ;;  %p5247_p11 = por %p145_p10, %p144_p9 }
 0x113   : > { %s134_s11 = ssub.s32 %s4855_s28, %s5956_s14  ;;  %p802_p1 = scmp.eq.s32.totalorder %s5119_s2, 1 }
 0x114   : > { %p135_p3 = scmp.eq.s32.totalorder %s134_s11, 0  ;;  %p5893_p4 = scmp.eq.s32.totalorder %s5119_s2, 0 }
 0x115   : > { %p5262_p0 = por %p802_p1, %p144_p9  ;;  %p808_p2 = scmp.eq.s32.totalorder %s3484_s9, 1 }
 0x116   : > { %p5258_p13 = por %p5893_p4, %p150_p12  ;;  %p4003_p7 = scmp.lt.s32.totalorder %s4859_s1, 2 }
 0x117   : > { %s5895_s6 = scalar_select %p5262_p0, 1, 0 }
 0x118   : > { %s5894_s3 = scalar_select %p5258_p13, 1, 0 }
 0x119   : > { %s5267_s13 = scalar_select %p135_p3, %s4847_s0, %s137_s16  }
 0x11a   : > { %p5269_p5 = por %p808_p2, %p150_p12  ;;  %s5275_s20 = sand.u32 1, %s4847_s0  }
 0x11b   : > { %5896 = sst [smem:[#allocation79_spill]] %s5267_s13  ;;  %s5831_s11 = sshll.u32 %s4855_s28, 7 }
 0x11c   : > { %s5897_s19 = scalar_select %p5269_p5, 1, 0 }
 0x11d   : > { %s5838_s21 = sshll.u32 %s5275_s20, 3  ;;  %p5281_p9 = pnand %p4003_p7, %p5247_p11 }
 0x11e   : > { %5898 = sst [smem:[#allocation80_spill]] %s5897_s19  ;;  %s1078_s9 = sand.u32 1, %s4859_s1  }
 0x11f   : > { %s5899_s30 = scalar_select %p5281_p9, 1, 0 }
 0x120   : > { %s5289_s16 = scalar_lea.hbm %s5875_s17, %s5831_s11  ;;  %s1082_s14 = scalar_lea.vmem [#allocation10], %s5838_s21 }
 0x121   : > { %s1090_s13 = sshll.u32 %s1082_s14, 4  ;;  %s5295_s0 = scalar_lea.sflag [#allocation11], %s1078_s9  ;;  %s5293_s13 = int_to_ptr.vmem [resolvable:$true] %s1090_s13 }
 0x122   : > { %s4427_s25 = scalar_lea.hbm %s5289_s16, 128  ;;  %p5301_p11 = pneg %p5281_p9 }
 0x123   : > { %p4428_p10 = scmp.ne.s32.totalorder %s5289_s16, %s4427_s25  ;;  %s4432_s11 = scalar_lea.hbm %s5875_s17, 256 }
 0x124   : > { %s5900_s19 = scalar_select %p5301_p11, 1, 0 }
 0x125   : > { %p4430_p12 = pnand %p5301_p11, %p4428_p10  ;;  %p4433_p3 = scmp.lt.u32.totalorder %s5289_s16, %s5875_s17 }
 0x126   : > { %p4434_p4 = scmp.lt.u32.totalorder %s4432_s11, %s4427_s25  ;;  %p4436_p7 = scmp.lt.u32.totalorder %s4427_s25, %s5289_s16 }
 0x127   : > { %p4431_p1 = pneg %p4430_p12 }
 0x128   : > { %p4435_p2 = por %p4434_p4, %p4433_p3 }
 0x12a   : > { %p4437_p5 = por %p4436_p7, %p4435_p2 }
 0x12c   : > { %p4438_p0 = pnand %p4437_p5, %p4431_p1 }
 0x12e   : > { %4441 = shalt.err (!%p4438_p0)
}
 0x12f   : > { %s4442_s14 = scalar_lea.vmem %s5293_s13, 128  ;;  %s4902_s9 = smov [#allocation10]  }
 0x130   : > { %p4443_p13 = scmp.ne.s32.totalorder %s5293_s13, %s4442_s14  ;;  %s4447_s21 = sshll.u32 %s4902_s9, 4  ;;  %s4448_s21 = int_to_ptr.vmem [resolvable:$false] %s4447_s21 }
 0x131   : > { %s4449_s1 = scalar_lea.vmem %s4448_s21, 256  ;;  %p4450_p10 = scmp.lt.s32.totalorder %s5293_s13, %s4448_s21 }
 0x132   : > { %p4445_p6 = pnand %p4443_p13, %p5301_p11  ;;  %p4451_p12 = scmp.lt.s32.totalorder %s4449_s1, %s4442_s14 }
 0x134   : > { %p4446_p8 = pneg %p4445_p6  ;;  %p4452_p3 = por %p4451_p12, %p4450_p10 }
 0x136   : > { %p4453_p4 = pnand %p4452_p3, %p4446_p8 }
 0x138   : > { %4456 = shalt.err (!%p4453_p4)
}
 0x139   : > { %3979 = dma.hbm_to_vmem [thread:$0]  (!%p5281_p9), %s5289_s16, 128, %s5293_s13, %s5295_s0  }
 0x13a   : > { %s4903_s11 = smov [#allocation15]   ;;  %s4904_s9 = smov [#allocation18]  }
 0x13b   : > { %s839_s25 = sshll.u32 %s4903_s11, 4  ;;  %s863_s17 = sshll.u32 %s4904_s9, 4  ;;  %s840_s25 = int_to_ptr.vmem [resolvable:$true] %s839_s25  ;;  %s864_s17 = int_to_ptr.vmem [resolvable:$true] %s863_s17 }
 0x13c   : > { %s4457_s21 = scalar_lea.hbm %s4961_s29, 16  ;;  %p5901_p13 = scmp.ne.s32.totalorder %s5888_s10, 0 }
 0x13d   : > { %p4458_p6 = scmp.ne.s32.totalorder %s4961_s29, %s4457_s21  ;;  %p4464_p5 = scmp.lt.u32.totalorder %s4457_s21, %s4961_s29 }
 0x13f   : > { %p4460_p8 = pnand %p4458_p6, %p5901_p13 }
 0x141   : > { %p4461_p0 = pneg %p4460_p8 }
 0x143   : > { %p4466_p1 = pnand %p4464_p5, %p4461_p0 }
 0x145   : > { %4469 = shalt.err (!%p4466_p1)
}
 0x146   : > { %s4470_s1 = scalar_lea.vmem %s840_s25, 16  ;;  %s4477_s13 = scalar_lea.vmem %s840_s25, 32 }
 0x147   : > { %p4471_p2 = scmp.ne.s32.totalorder %s840_s25, %s4470_s1  ;;  %p4478_p12 = scmp.lt.s32.totalorder %s840_s25, %s840_s25 }
 0x148   : > { %p4479_p3 = scmp.lt.s32.totalorder %s4477_s13, %s4470_s1 }
 0x149   : > { %p4473_p7 = pnand %p4471_p2, %p5901_p13 }
 0x14a   : > { %p4480_p4 = por %p4479_p3, %p4478_p12 }
 0x14b   : > { %p4474_p10 = pneg %p4473_p7 }
 0x14d   : > { %p4481_p9 = pnand %p4480_p4, %p4474_p10 }
 0x14f   : > { %4484 = shalt.err (!%p4481_p9)
}
 0x150   : > { %p5902_p11 = scmp.ne.s32.totalorder %s5887_s18, 0  ;;  %s4485_s16 = scalar_lea.hbm %s5874_s8, 16 }
 0x151   : > { %p4486_p6 = scmp.ne.s32.totalorder %s5874_s8, %s4485_s16  ;;  %p4492_p5 = scmp.lt.u32.totalorder %s4485_s16, %s5874_s8 }
 0x152   : > { %3930 = dma.hbm_to_vmem [thread:$0]  (!%p5902_p11), %s4961_s29, 16, %s840_s25, [#allocation14]  }
 0x153   : > { %p4488_p8 = pnand %p4486_p6, %p5901_p13 }
 0x155   : > { %p4489_p0 = pneg %p4488_p8 }
 0x157   : > { %p4494_p1 = pnand %p4492_p5, %p4489_p0 }
 0x159   : > { %4497 = shalt.err (!%p4494_p1)
}
 0x15a   : > { %s4498_s14 = scalar_lea.vmem %s864_s17, 16  ;;  %s4505_s11 = scalar_lea.vmem %s864_s17, 32 }
 0x15b   : > { %p4499_p9 = scmp.ne.s32.totalorder %s864_s17, %s4498_s14  ;;  %p4506_p10 = scmp.lt.s32.totalorder %s864_s17, %s864_s17 }
 0x15c   : > { %p4507_p12 = scmp.lt.s32.totalorder %s4505_s11, %s4498_s14 }
 0x15d   : > { %p4501_p2 = pnand %p4499_p9, %p5901_p13 }
 0x15e   : > { %p4508_p3 = por %p4507_p12, %p4506_p10 }
 0x15f   : > { %p4502_p7 = pneg %p4501_p2 }
 0x161   : > { %p4509_p4 = pnand %p4508_p3, %p4502_p7 }
 0x163   : > { %4512 = shalt.err (!%p4509_p4)
}
 0x164   : > { %3936 = dma.hbm_to_vmem [thread:$0]  (!%p5902_p11), %s5874_s8, 16, %s864_s17, [#allocation17]  }
 0x165   : > { %s4905_s25 = smov [#allocation21]   ;;  %s4906_s21 = smov [#allocation24]  }
 0x166   : > { %s887_s9 = sshll.u32 %s4905_s25, 4  ;;  %s915_s1 = sshll.u32 %s4906_s21, 4  ;;  %s888_s9 = int_to_ptr.vmem [resolvable:$true] %s887_s9  ;;  %s916_s1 = int_to_ptr.vmem [resolvable:$true] %s915_s1 }
 0x167   : > { %s4513_s13 = scalar_lea.hbm %s4986_s24, 256 }
 0x168   : > { %p4514_p6 = scmp.ne.s32.totalorder %s4986_s24, %s4513_s13  ;;  %p4520_p5 = scmp.lt.u32.totalorder %s4513_s13, %s4986_s24 }
 0x16a   : > { %p4516_p8 = pnand %p4514_p6, %p5901_p13 }
 0x16c   : > { %p4517_p0 = pneg %p4516_p8 }
 0x16e   : > { %p4522_p1 = pnand %p4520_p5, %p4517_p0 }
 0x170   : > { %4525 = shalt.err (!%p4522_p1)
}
 0x171   : > { %s4526_s16 = scalar_lea.vmem %s888_s9, 256  ;;  %p4534_p10 = scmp.lt.s32.totalorder %s888_s9, %s888_s9 }
 0x172   : > { %p4527_p9 = scmp.ne.s32.totalorder %s888_s9, %s4526_s16  ;;  %p4535_p12 = scmp.lt.s32.totalorder %s4526_s16, %s4526_s16 }
 0x174   : > { %p4529_p2 = pnand %p4527_p9, %p5901_p13  ;;  %p4536_p3 = por %p4535_p12, %p4534_p10 }
 0x176   : > { %p4530_p7 = pneg %p4529_p2 }
 0x178   : > { %p4537_p4 = pnand %p4536_p3, %p4530_p7 }
 0x17a   : > { %4540 = shalt.err (!%p4537_p4)
}
 0x17b   : > { %3942 = dma.hbm_to_vmem [thread:$0]  (!%p5902_p11), %s4986_s24, 256, %s888_s9, [#allocation20], %s5890_s15, %s5890_s15, %s5889_s5  }
 0x17c   : > { %s4541_s17 = scalar_lea.hbm %s5001_s12, 16 }
 0x17d   : > { %p4542_p6 = scmp.ne.s32.totalorder %s5001_s12, %s4541_s17  ;;  %p4548_p5 = scmp.lt.u32.totalorder %s4541_s17, %s5001_s12 }
 0x17f   : > { %p4544_p8 = pnand %p4542_p6, %p5901_p13 }
 0x181   : > { %p4545_p0 = pneg %p4544_p8 }
 0x183   : > { %p4550_p1 = pnand %p4548_p5, %p4545_p0 }
 0x185   : > { %4553 = shalt.err (!%p4550_p1)
}
 0x186   : > { %s4554_s14 = scalar_lea.vmem %s916_s1, 16  ;;  %s4561_s11 = scalar_lea.vmem %s916_s1, 32 }
 0x187   : > { %p4555_p9 = scmp.ne.s32.totalorder %s916_s1, %s4554_s14  ;;  %p4562_p10 = scmp.lt.s32.totalorder %s916_s1, %s916_s1 }
 0x188   : > { %p4563_p12 = scmp.lt.s32.totalorder %s4561_s11, %s4554_s14 }
 0x189   : > { %p4557_p2 = pnand %p4555_p9, %p5901_p13 }
 0x18a   : > { %p4564_p3 = por %p4563_p12, %p4562_p10 }
 0x18b   : > { %p4558_p7 = pneg %p4557_p2 }
 0x18d   : > { %p4565_p4 = pnand %p4564_p3, %p4558_p7 }
 0x18f   : > { %4568 = shalt.err (!%p4565_p4)
}
 0x190   : > { %3948 = dma.hbm_to_vmem [thread:$0]  (!%p5902_p11), %s5001_s12, 16, %s916_s1, [#allocation23]  }
 0x191   : > { %s4907_s25 = smov [#allocation27]   ;;  %s4908_s21 = smov [#allocation30]  }
 0x192   : > { %s937_s9 = sshll.u32 %s4907_s25, 4  ;;  %s969_s13 = sshll.u32 %s4908_s21, 4  ;;  %s938_s9 = int_to_ptr.vmem [resolvable:$true] %s937_s9  ;;  %s970_s13 = int_to_ptr.vmem [resolvable:$true] %s969_s13 }
 0x193   : > { %s4569_s16 = scalar_lea.hbm %s5011_s27, 16 }
 0x194   : > { %p4570_p6 = scmp.ne.s32.totalorder %s5011_s27, %s4569_s16  ;;  %p4576_p5 = scmp.lt.u32.totalorder %s4569_s16, %s5011_s27 }
 0x196   : > { %p4572_p8 = pnand %p4570_p6, %p5901_p13 }
 0x198   : > { %p4573_p0 = pneg %p4572_p8 }
 0x19a   : > { %p4578_p1 = pnand %p4576_p5, %p4573_p0 }
 0x19c   : > { %4581 = shalt.err (!%p4578_p1)
}
 0x19d   : > { %s4582_s17 = scalar_lea.vmem %s938_s9, 16  ;;  %s4589_s1 = scalar_lea.vmem %s938_s9, 32 }
 0x19e   : > { %p4583_p9 = scmp.ne.s32.totalorder %s938_s9, %s4582_s17  ;;  %p4590_p10 = scmp.lt.s32.totalorder %s938_s9, %s938_s9 }
 0x19f   : > { %p4591_p12 = scmp.lt.s32.totalorder %s4589_s1, %s4582_s17 }
 0x1a0   : > { %p4585_p2 = pnand %p4583_p9, %p5901_p13 }
 0x1a1   : > { %p4592_p3 = por %p4591_p12, %p4590_p10 }
 0x1a2   : > { %p4586_p7 = pneg %p4585_p2 }
 0x1a4   : > { %p4593_p4 = pnand %p4592_p3, %p4586_p7 }
 0x1a6   : > { %4596 = shalt.err (!%p4593_p4)
}
 0x1a7   : > { %s5903_s14 = sld [smem:[#allocation66_spill]] }
 0x1a8   : > { %3954 = dma.hbm_to_vmem [thread:$0]  (!%p5902_p11), %s5011_s27, 16, %s938_s9, [#allocation26]  }
 0x1ad   : > { %s4597_s11 = scalar_lea.hbm %s5903_s14, 256 }
 0x1ae   : > { %p4598_p6 = scmp.ne.s32.totalorder %s5903_s14, %s4597_s11  ;;  %p4604_p5 = scmp.lt.u32.totalorder %s4597_s11, %s5903_s14 }
 0x1b0   : > { %p4600_p8 = pnand %p4598_p6, %p5901_p13 }
 0x1b2   : > { %p4601_p0 = pneg %p4600_p8 }
 0x1b4   : > { %p4606_p1 = pnand %p4604_p5, %p4601_p0 }
 0x1b6   : > { %4609 = shalt.err (!%p4606_p1)
}
 0x1b7   : > { %s4610_s25 = scalar_lea.vmem %s970_s13, 256  ;;  %p4618_p10 = scmp.lt.s32.totalorder %s970_s13, %s970_s13 }
 0x1b8   : > { %p4611_p9 = scmp.ne.s32.totalorder %s970_s13, %s4610_s25  ;;  %p4619_p12 = scmp.lt.s32.totalorder %s4610_s25, %s4610_s25 }
 0x1ba   : > { %p4613_p2 = pnand %p4611_p9, %p5901_p13  ;;  %p4620_p3 = por %p4619_p12, %p4618_p10 }
 0x1bc   : > { %p4614_p7 = pneg %p4613_p2 }
 0x1be   : > { %p4621_p4 = pnand %p4620_p3, %p4614_p7 }
 0x1c0   : > { %4624 = shalt.err (!%p4621_p4)
}
 0x1c1   : > { %s5904_s9 = sld [smem:[#allocation69_spill]]  ;;  %s4909_s21 = smov [#allocation33]  }
 0x1c2   : > { %3960 = dma.hbm_to_vmem [thread:$0]  (!%p5902_p11), %s5903_s14, 256, %s970_s13, [#allocation29], %s5890_s15, %s5890_s15, %s5889_s5  }
 0x1c3   : > { %s997_s16 = sshll.u32 %s4909_s21, 4  ;;  %s4910_s17 = smov [#allocation36]   ;;  %s998_s16 = int_to_ptr.vmem [resolvable:$true] %s997_s16 }
 0x1c4   : > { %s1019_s1 = sshll.u32 %s4910_s17, 4  ;;  %s1020_s1 = int_to_ptr.vmem [resolvable:$true] %s1019_s1 }
 0x1c7   : > { %s4625_s11 = scalar_lea.hbm %s5904_s9, 16 }
 0x1c8   : > { %p4626_p6 = scmp.ne.s32.totalorder %s5904_s9, %s4625_s11  ;;  %p4632_p5 = scmp.lt.u32.totalorder %s4625_s11, %s5904_s9 }
 0x1ca   : > { %p4628_p8 = pnand %p4626_p6, %p5901_p13 }
 0x1cc   : > { %p4629_p0 = pneg %p4628_p8 }
 0x1ce   : > { %p4634_p1 = pnand %p4632_p5, %p4629_p0 }
 0x1d0   : > { %4637 = shalt.err (!%p4634_p1)
}
 0x1d1   : > { %s4638_s25 = scalar_lea.vmem %s998_s16, 16  ;;  %s4645_s5 = scalar_lea.vmem %s998_s16, 32 }
 0x1d2   : > { %p4639_p9 = scmp.ne.s32.totalorder %s998_s16, %s4638_s25  ;;  %p4646_p10 = scmp.lt.s32.totalorder %s998_s16, %s998_s16 }
 0x1d3   : > { %p4647_p12 = scmp.lt.s32.totalorder %s4645_s5, %s4638_s25 }
 0x1d4   : > { %p4641_p2 = pnand %p4639_p9, %p5901_p13 }
 0x1d5   : > { %p4648_p3 = por %p4647_p12, %p4646_p10 }
 0x1d6   : > { %p4642_p7 = pneg %p4641_p2 }
 0x1d8   : > { %p4649_p4 = pnand %p4648_p3, %p4642_p7 }
 0x1da   : > { %4652 = shalt.err (!%p4649_p4)
}
 0x1db   : > { %s5905_s15 = sld [smem:[#allocation71_spill]] }
 0x1dc   : > { %3966 = dma.hbm_to_vmem [thread:$0]  (!%p5902_p11), %s5904_s9, 16, %s998_s16, [#allocation32]  }
 0x1e1   : > { %s4653_s13 = scalar_lea.hbm %s5905_s15, 16 }
 0x1e2   : > { %p4654_p6 = scmp.ne.s32.totalorder %s5905_s15, %s4653_s13  ;;  %p4660_p5 = scmp.lt.u32.totalorder %s4653_s13, %s5905_s15 }
 0x1e4   : > { %p4656_p8 = pnand %p4654_p6, %p5901_p13 }
 0x1e6   : > { %p4657_p0 = pneg %p4656_p8 }
 0x1e8   : > { %p4662_p1 = pnand %p4660_p5, %p4657_p0 }
 0x1ea   : > { %4665 = shalt.err (!%p4662_p1)
}
 0x1eb   : > { %s4666_s21 = scalar_lea.vmem %s1020_s1, 16  ;;  %s4673_s17 = scalar_lea.vmem %s1020_s1, 32 }
 0x1ec   : > { %p4667_p9 = scmp.ne.s32.totalorder %s1020_s1, %s4666_s21  ;;  %p4674_p10 = scmp.lt.s32.totalorder %s1020_s1, %s1020_s1 }
 0x1ed   : > { %p4675_p12 = scmp.lt.s32.totalorder %s4673_s17, %s4666_s21 }
 0x1ee   : > { %p4669_p2 = pnand %p4667_p9, %p5901_p13 }
 0x1ef   : > { %p4676_p3 = por %p4675_p12, %p4674_p10 }
 0x1f0   : > { %p4670_p7 = pneg %p4669_p2 }
 0x1f2   : > { %p4677_p4 = pnand %p4676_p3, %p4670_p7 }
 0x1f4   : > { %4680 = shalt.err (!%p4677_p4)
}
 0x1f5   : > { %s5906_s16 = sld [smem:[#allocation50_spill]]  ;;  %s5907_s10 = sshll.u32 %s4855_s28, 7 }
 0x1f6   : > { %3972 = dma.hbm_to_vmem [thread:$0]  (!%p5902_p11), %s5905_s15, 16, %s1020_s1, [#allocation35]  }
 0x1f7   : > { %s5908_s25 = sshll.u32 %s5275_s20, 3  ;;  %s1053_s21 = scalar_lea.sflag [#allocation8], %s5275_s20 }
 0x1f8   : > { %s1056_s5 = scalar_lea.vmem [#allocation7], %s5908_s25  ;;  %p5909_p6 = scmp.ne.s32.totalorder %s5900_s19, 0 }
 0x1f9   : > { %s1063_s18 = sshll.u32 %s1056_s5, 4  ;;  %s5414_s18 = int_to_ptr.vmem [resolvable:$true] %s1063_s18 }
 0x1fb   : > { %s5410_s11 = scalar_lea.hbm %s5906_s16, %s5907_s10  ;;  %s4686_s1 = scalar_lea.hbm %s5906_s16, 256 }
 0x1fc   : > { %s4681_s17 = scalar_lea.hbm %s5410_s11, 128  ;;  %p4687_p11 = scmp.lt.u32.totalorder %s5410_s11, %s5906_s16 }
 0x1fd   : > { %p4682_p13 = scmp.ne.s32.totalorder %s5410_s11, %s4681_s17  ;;  %p4688_p5 = scmp.lt.u32.totalorder %s4686_s1, %s4681_s17 }
 0x1fe   : > { %p4690_p9 = scmp.lt.u32.totalorder %s4681_s17, %s5410_s11 }
 0x1ff   : > { %p4684_p8 = pnand %p4682_p13, %p5909_p6  ;;  %p4689_p1 = por %p4688_p5, %p4687_p11 }
 0x201   : > { %p4685_p0 = pneg %p4684_p8  ;;  %p4691_p2 = por %p4690_p9, %p4689_p1 }
 0x203   : > { %p4692_p7 = pnand %p4691_p2, %p4685_p0 }
 0x205   : > { %4695 = shalt.err (!%p4692_p7)
}
 0x206   : > { %s4696_s10 = scalar_lea.vmem %s5414_s18, 128  ;;  %s4911_s25 = smov [#allocation7]  }
 0x207   : > { %p4697_p10 = scmp.ne.s32.totalorder %s5414_s18, %s4696_s10  ;;  %s4701_s5 = sshll.u32 %s4911_s25, 4  ;;  %s4702_s5 = int_to_ptr.vmem [resolvable:$false] %s4701_s5 }
 0x208   : > { %s4703_s13 = scalar_lea.vmem %s4702_s5, 256  ;;  %p4704_p4 = scmp.lt.s32.totalorder %s5414_s18, %s4702_s5 }
 0x209   : > { %p4699_p12 = pnand %p4697_p10, %p5909_p6  ;;  %p4705_p13 = scmp.lt.s32.totalorder %s4703_s13, %s4696_s10 }
 0x20b   : > { %p4700_p3 = pneg %p4699_p12  ;;  %p4706_p8 = por %p4705_p13, %p4704_p4 }
 0x20d   : > { %p4707_p11 = pnand %p4706_p8, %p4700_p3 }
 0x20f   : > { %4710 = shalt.err (!%p4707_p11)
}
 0x210   : > { %p5910_p0 = scmp.ne.s32.totalorder %s5899_s30, 0  ;;  %s5911_s17 = sld [smem:[#allocation53_spill]] }
 0x211   : > { %s5912_s1 = sshll.u32 %s4855_s28, 4  ;;  %s1100_s13 = scalar_lea.vmem [#allocation12], %s5275_s20 }
 0x212   : > { %3976 = dma.hbm_to_vmem [thread:$0]  (!%p5910_p0), %s5410_s11, 128, %s5414_s18, %s1053_s21  }
 0x213   : > { %s1107_s10 = sshll.u32 %s1100_s13, 4  ;;  %s1108_s10 = int_to_ptr.vmem [resolvable:$true] %s1107_s10 }
 0x216   : > { %s5438_s25 = scalar_lea.hbm %s5911_s17, %s5912_s1  ;;  %s4716_s8 = scalar_lea.hbm %s5911_s17, 32 }
 0x217   : > { %s4711_s5 = scalar_lea.hbm %s5438_s25, 16  ;;  %p4717_p2 = scmp.lt.u32.totalorder %s5438_s25, %s5911_s17 }
 0x218   : > { %p4712_p5 = scmp.ne.s32.totalorder %s5438_s25, %s4711_s5  ;;  %p4718_p7 = scmp.lt.u32.totalorder %s4716_s8, %s4711_s5 }
 0x219   : > { %p4720_p12 = scmp.lt.u32.totalorder %s4711_s5, %s5438_s25 }
 0x21a   : > { %p4714_p1 = pnand %p4712_p5, %p5909_p6  ;;  %p4719_p10 = por %p4718_p7, %p4717_p2 }
 0x21c   : > { %p4715_p9 = pneg %p4714_p1  ;;  %p4721_p3 = por %p4720_p12, %p4719_p10 }
 0x21e   : > { %p4722_p4 = pnand %p4721_p3, %p4715_p9 }
 0x220   : > { %4725 = shalt.err (!%p4722_p4)
}
 0x221   : > { %s4726_s11 = scalar_lea.vmem %s1108_s10, 16  ;;  %s4912_s20 = smov [#allocation12]  }
 0x222   : > { %p4727_p13 = scmp.ne.s32.totalorder %s1108_s10, %s4726_s11  ;;  %s4731_s18 = sshll.u32 %s4912_s20, 4  ;;  %s4732_s18 = int_to_ptr.vmem [resolvable:$false] %s4731_s18 }
 0x223   : > { %s4733_s21 = scalar_lea.vmem %s4732_s18, 32  ;;  %p4734_p5 = scmp.lt.s32.totalorder %s1108_s10, %s4732_s18 }
 0x224   : > { %p4729_p8 = pnand %p4727_p13, %p5909_p6  ;;  %p4735_p1 = scmp.lt.s32.totalorder %s4733_s21, %s4726_s11 }
 0x226   : > { %p4730_p11 = pneg %p4729_p8  ;;  %p4736_p0 = por %p4735_p1, %p4734_p5 }
 0x228   : > { %p4737_p2 = pnand %p4736_p0, %p4730_p11 }
 0x22a   : > { %4740 = shalt.err (!%p4737_p2)
}
 0x22b   : > { %p5913_p7 = scmp.ne.s32.totalorder %s5899_s30, 0  ;;  %p5914_p9 = scmp.ne.s32.totalorder %s5886_s7, 0 }
 0x22c   : > { %s5458_s8 = sand.u32 (!%p5914_p9), 1, %s4843_s23   ;;  %p5915_p6 = scmp.ne.s32.totalorder (!%p5914_p9), %s5894_s3, 0 }
 0x22d   : > { %3982 = dma.hbm_to_vmem [thread:$0]  (!%p5913_p7), %s5438_s25, 16, %s1108_s10, %s5295_s0  }
 0x22e   : > { %1116 = sbr.rel (%p5914_p9) target bundleno = 4982 (0x1376), region = 144  ;;  %s5461_s19 = sshll.u32 (!%p5914_p9), %s5458_s8, 3 }
 0x22f   : > { %s1119_s1 = scalar_lea.sflag (!%p5914_p9), [#allocation8], %s5458_s8  ;;  %s1122_s13 = scalar_lea.vmem (!%p5914_p9), [#allocation7], %s5461_s19 }
 0x235   : > { %4794 = dma.done.wait (%p5915_p6), %s1119_s1, 128  }
 0x236   : > { %4796 = vsyncadd (%p5915_p6), %s1119_s1, 4294967168  ;;  %s1127_s30 = sand.u32 1, %s5119_s2   ;;  %s1131_s7 = scalar_lea.vmem [#allocation10], %s5461_s19 }
 0x237   : > { %s1128_s0 = scalar_lea.sflag [#allocation11], %s1127_s30 }
 0x238   : > { %4798 = dma.done.wait (%p5915_p6), %s1128_s0, 144  }
 0x239   : > { %4800 = vsyncadd (%p5915_p6), %s1128_s0, 4294967152  ;;  %s1139_s25 = scalar_lea.vmem [#allocation12], %s5458_s8  ;;  %p5916_p0 = scmp.eq.s32.totalorder %s5119_s2, 0 }
 0x23b   : > { %4802 = dma.done.wait (%p5916_p0), [#allocation14], 32   ;;  %p5917_p10 = pmov %p5916_p0 }
 0x23c   : > { %p5918_p12 = pmov %p5916_p0 }
 0x23d   : > { %4804 = vsyncadd (%p5917_p10), [#allocation14], 4294967264 }
 0x23e   : > { %4806 = dma.done.wait (%p5918_p12), [#allocation17], 272   ;;  %p5919_p3 = pmov %p5916_p0 }
 0x23f   : > { %p5920_p4 = pmov %p5916_p0 }
 0x240   : > { %4808 = vsyncadd (%p5919_p3), [#allocation17], 4294967024 }
 0x241   : > { %4810 = dma.done.wait (%p5920_p4), [#allocation20], 272   ;;  %p5921_p13 = pmov %p5916_p0 }
 0x242   : > { %p5922_p8 = pmov %p5916_p0 }
 0x243   : > { %4812 = vsyncadd (%p5921_p13), [#allocation20], 4294967024 }
 0x244   : > { %4814 = dma.done.wait (%p5922_p8), [#allocation23], 32   ;;  %p5923_p11 = pmov %p5916_p0 }
 0x245   : > { %p5924_p5 = pmov %p5916_p0 }
 0x246   : > { %4816 = vsyncadd (%p5923_p11), [#allocation23], 4294967264 }
 0x247   : > { %4818 = dma.done.wait (%p5924_p5), [#allocation26], 32   ;;  %p5925_p1 = pmov %p5916_p0 }
 0x248   : > { %p5926_p2 = pmov %p5916_p0 }
 0x249   : > { %4820 = vsyncadd (%p5925_p1), [#allocation26], 4294967264 }
 0x24a   : > { %4822 = dma.done.wait (%p5926_p2), [#allocation29], 512   ;;  %p5927_p7 = pmov %p5916_p0 }
 0x24b   : > { %p5928_p9 = pmov %p5916_p0 }
 0x24c   : > { %4824 = vsyncadd (%p5927_p7), [#allocation29], 4294966784 }
 0x24d   : > { %4826 = dma.done.wait (%p5928_p9), [#allocation32], 32   ;;  %p5929_p6 = pmov %p5916_p0 }
 0x24f   : > { %4828 = vsyncadd (%p5929_p6), [#allocation32], 4294967264 }
 0x250   : > { %4830 = dma.done.wait (%p5916_p0), [#allocation35], 32   ;;  %p5930_p10 = pmov %p5916_p0 }
 0x251   : > { %s5931_s3 = sld [smem:[#allocation49_spill]]  ;;  %p1303_p12 = scmp.lt.s32.totalorder %s4851_s26, 1  ;;  %vm1322_vm0 = vcmask 261120   ;;  %v1321_v0 = vld [vmem:[%s1122_s13] sm:$0xff]  ;;  %v4913_v16 = vmov 0.0   ;;  %vm4914_vm1 = vmmov 0  }
 0x252   : > { %4832 = vsyncadd (%p5930_p10), [#allocation35], 4294967264  ;;  %v1323_v2 = vsel %vm1322_vm0, %v1321_v0, 0.0  ;;  %s5932_s2 = sld [smem:[#allocation57_spill]]  ;;  %v4128_v15 = vld [vmem:[#allocation21] sm:$0xff]   ;;  %3672 = vmatprep.subr.bf16.mxu0 %v4913_v16  ;;  %3680 = vmatprep.subr.bf16.mxu1 %v4913_v16  ;;  %v4130_v18 = vld [vmem:[#allocation21 + $0x8] sm:$0xff]  }
 0x253   : > { %s5510_s10 = scalar_select %p1303_p12, %s4851_s26, 1  ;;  %1324 = vadd.xlane.f32.xlu0 %v1323_v2  ;;  %3681 = vmatpush3.bf16.msra.mxu1 %v4128_v15  ;;  %v3531_v34 = vld [vmem:[#allocation13] ss:$0 sm:$0xff]  ;;  %v3532_v38 = vld [vmem:[#allocation15] ss:$0 sm:$0xff]  ;;  %v4131_v41 = vld [vmem:[#allocation28] sm:$0xff]  }
 0x254   : > { %3682 = vmatprep.subr.bf16.mxu1 %v4913_v16  ;;  %3676 = vmatprep.mubr.msk.bf16.mxu0 %vm4914_vm1, %v4913_v16  ;;  %s5933_s20 = sld [smem:[#allocation51_spill]]  ;;  %v4132_v45 = vld [vmem:[#allocation28 + $0x8] sm:$0xff]   ;;  %v4133_v49 = vld [vmem:[#allocation16] sm:$0xff]   ;;  %v4134_v51 = vld [vmem:[#allocation16 + $0x8] sm:$0xff]   ;;  %s5934_s1 = sld [smem:[#allocation65_spill]]  ;;  %vm1428_vm6 = vcmask 257024  }
 0x255   : > { %s3528_s5 = sshll.u32 %s5510_s10, 3  ;;  %3684 = vmatprep.mubr.msk.bf16.mxu1 %vm4914_vm1, %v4913_v16  ;;  %s3607_s18 = sshll.u32 %s5510_s10, 4  ;;  %v4135_v54 = vld [vmem:[#allocation30] sm:$0xff]   ;;  %v4136_v55 = vld [vmem:[#allocation30 + $0x8] sm:$0xff]   ;;  %v3533_v56 = vld [vmem:[#allocation19] ss:$0 sm:$0xff] }
 0x256   : > { %v3537_v57 = vld [vmem:[#allocation22] ss:$0 sm:$0xff]  ;;  %vm1747_vm7 = vcmask 64512   ;;  %vm1811_vm8 = vcmask 1043456   ;;  %s4915_s13 = smov 120   ;;  %s4916_s30 = smov 104  }
 0x257   : > { %s1309_s11 = scalar_lea.vmem %s5931_s3, %s3528_s5  ;;  %3683 = vmatpush3.bf16.msra.mxu1 %v4130_v18  ;;  %s4917_s0 = smov 112   ;;  %vm1981_vm10 = vcmask 130112   ;;  %vm2107_vm11 = vcmask 195712   ;;  %vm2233_vm12 = vcmask 261312  }
 0x258   : > { %v5516_v1 = vld [vmem:[%s1309_s11] sm:$0xff]  ;;  %v4129_v17 = vld [vmem:[%s5932_s2 + $0x8] sm:$0xff]   ;;  %3696 = vmatprep.subr.bf16.mxu1 %v4913_v16  ;;  %s4919_s3 = smov 8   ;;  %s4920_s10 = smov 16  }
 0x259   : > { %v1640_v3 = vsel %vm1322_vm0, %v5516_v1, 0.0  ;;  %v4127_v14 = vld [vmem:[%s5932_s2] sm:$0xff]   ;;  %s4921_s5 = smov 24   ;;  %s5936_s11 = sld [smem:[#allocation62_spill]] }
 0x25a   : > { %1641 = vadd.xlane.f32.xlu0 %v1640_v3  ;;  %3673 = vmatpush3.bf16.msra.mxu0 %v4127_v14  ;;  %s1314_s21 = scalar_lea.vmem %s5933_s20, %s3607_s18  ;;  %s5937_s20 = sld [smem:[#allocation63_spill]] }
 0x25b   : > { %3674 = vmatprep.subr.bf16.mxu0 %v4913_v16  ;;  %v1495_v43 = vld [vmem:[%s1314_s21] sm:$0xff]  ;;  %v1496_v44 = vld [vmem:[%s1314_s21 + $0x8] sm:$0xff]  ;;  %s5939_s18 = sld [smem:[#allocation72_spill]]  ;;  %s5940_s21 = sld [smem:[#allocation73_spill]] }
 0x25c   : > { %v1497_v47 = vpack.c.bf16 %v1496_v44, %v1495_v43  ;;  %p5943_p4 = scmp.ne.s32.totalorder %s5895_s6, 0 }
 0x25e   : > { %3675 = vmatpush3.bf16.msra.mxu0 %v4129_v17 }
 0x25f   : > { %3688 = vmatprep.subr.bf16.mxu0 %v4913_v16 }
 0x2e0   : > { %v1325_v4 = vpop.xlane.xlu0 %1324 }
 0x2e1   : > { %v1327_v5 = vmul.f32 0.03125, %v1325_v4 }
 0x2e3   : > { %v1328_v6 = vsub.f32 %v1321_v0, %v1327_v5 }
 0x2e5   : > { %v1329_v9 = vmul.f32 %v1328_v6, %v1328_v6  ;;  %v1350_v36 = vmul.f32 %v3531_v34, %v1328_v6 }
 0x2e7   : > { %v1642_v7 = vpop.xlane.xlu0 %1641  ;;  %v1330_v11 = vsel %vm1322_vm0, %v1329_v9, 0.0 }
 0x2e8   : > { %v1644_v8 = vmul.f32 0.03125, %v1642_v7  ;;  %1331 = vadd.xlane.f32.xlu1 %v1330_v11  ;;  %v3541_v7 = vld [vmem:[%s5934_s1] ss:$0 sm:$0xff]  ;;  %s5941_s1 = sld [smem:[#allocation74_spill]] }
 0x2ea   : > { %v5522_v10 = vsub.f32 %v5516_v1, %v1644_v8 }
 0x2ec   : > { %v1646_v12 = vmul.f32 %v5522_v10, %v5522_v10  ;;  %v1667_v48 = vmul.f32 %v3531_v34, %v5522_v10 }
 0x2ee   : > { %v1647_v13 = vsel %vm1322_vm0, %v1646_v12, 0.0 }
 0x2ef   : > { %1648 = vadd.xlane.f32.xlu1 %v1647_v13 }
 0x375   : > { %v1332_v19 = vpop.xlane.xlu1 %1331 }
 0x376   : > { %v1333_v20 = vmul.f32 0.032258064, %v1332_v19 }
 0x378   : > { %4155 = vrsqrt.f32 %v1333_v20  ;;  %vm1336_vm2 = vcmp.eq.f32.partialorder %v1333_v20, inf  ;;  %v1339_v25 = vand.u32 2147483648, %v1333_v20  ;;  %vm1338_vm3 = vcmp.eq.f32.partialorder %v1333_v20, 0.0 }
 0x37c   : > { %v1649_v21 = vpop.xlane.xlu1 %1648 }
 0x37d   : > { %v1650_v22 = vmul.f32 0.032258064, %v1649_v21  ;;  %v3551_v21 = vld [vmem:[#allocation18] ss:$0 sm:$0xff] }
 0x37f   : > { %4157 = vrsqrt.f32 %v1650_v22  ;;  %vm1653_vm4 = vcmp.eq.f32.partialorder %v1650_v22, inf  ;;  %v1656_v31 = vand.u32 2147483648, %v1650_v22  ;;  %vm1655_vm5 = vcmp.eq.f32.partialorder %v1650_v22, 0.0 }
 0x382   : > { %v4156_v23 = vpop.eup %4155 }
 0x383   : > { %v1335_v24 = vmul.f32 %v4156_v23, %v1333_v20 }
 0x385   : > { %v1337_v26 = vsel %vm1336_vm2, %v1333_v20, %v1335_v24  ;;  %vm2464_vm2 = vcmask 130048  }
 0x386   : > { %v1340_v28 = vsel %vm1338_vm3, %v1339_v25, %v1337_v26 }
 0x387   : > { %v1341_v29 = vadd.f32 1e-06, %v1340_v28 }
 0x389   : > { %v4158_v27 = vpop.eup %4157  ;;  %4159 = vrcp.f32 %v1341_v29 }
 0x38a   : > { %v1652_v30 = vmul.f32 %v4158_v27, %v1650_v22 }
 0x38c   : > { %v1654_v32 = vsel %vm1653_vm4, %v1650_v22, %v1652_v30  ;;  %v3545_v30 = vld [vmem:[#allocation31] ss:$0 sm:$0xff]  ;;  %vm3092_vm4 = vcmask 523264  }
 0x38d   : > { %v1657_v33 = vsel %vm1655_vm5, %v1656_v31, %v1654_v32 }
 0x38e   : > { %v1658_v35 = vadd.f32 1e-06, %v1657_v33 }
 0x390   : > { %4161 = vrcp.f32 %v1658_v35 }
 0x393   : > { %v4160_v37 = vpop.eup %4159 }
 0x394   : > { %v1351_v39 = vmul.f32 %v4160_v37, %v1350_v36 }
 0x396   : > { %v1359_v40 = vadd.f32 %v3532_v38, %v1351_v39 }
 0x398   : > { %v1360_v42 = vpack.c.bf16 %v1359_v40, %v1359_v40 }
 0x39a   : > { %3677 = vmatmul.mubr.msk.bf16.vlgmr.msra.gmra.mrb[0].mxu0 %vm1322_vm0, %v1360_v42  ;;  %3685 = vmatmul.mubr.msk.bf16.vlgmr.msra.gmra.mrb[0].mxu1 %vm1322_vm0, %v1360_v42  ;;  %v4162_v46 = vpop.eup %4161 }
 0x39b   : > { %3689 = vmatpush3.bf16.msra.mxu0 %v4131_v41  ;;  %3692 = vmatprep.mubr.msk.bf16.mxu0 %vm4914_vm1, %v4913_v16  ;;  %v1668_v50 = vmul.f32 %v4162_v46, %v1667_v48 }
 0x39c   : > { %3690 = vmatprep.subr.bf16.mxu0 %v4913_v16  ;;  %3700 = vmatprep.mubr.msk.bf16.mxu1 %vm4914_vm1, %v4913_v16 }
 0x39d   : > { %v1676_v52 = vadd.f32 %v3532_v38, %v1668_v50  ;;  %3697 = vmatpush3.bf16.msra.mxu1 %v4135_v54 }
 0x39e   : > { %3698 = vmatprep.subr.bf16.mxu1 %v4913_v16 }
 0x39f   : > { %3691 = vmatpush3.bf16.msra.mxu0 %v4132_v45  ;;  %v1677_v53 = vpack.c.bf16 %v1676_v52, %v1676_v52 }
 0x3a0   : > { %3704 = vmatprep.subr.bf16.mxu0 %v4913_v16 }
 0x3a1   : > { %3699 = vmatpush3.bf16.msra.mxu1 %v4136_v55 }
 0x3a2   : > { %3693 = vmatmul.mubr.msk.bf16.vlgmr.msra.gmra.mrb[4].mxu0 %vm1322_vm0, %v1497_v47  ;;  %3712 = vmatprep.subr.bf16.mxu1 %v4913_v16 }
 0x3a3   : > { %3705 = vmatpush3.bf16.msra.mxu0 %v4133_v49  ;;  %3708 = vmatprep.mubr.msk.bf16.mxu0 %vm4914_vm1, %v4913_v16  ;;  %v4918_v49 = vmov -1e+09  }
 0x3a4   : > { %3706 = vmatprep.subr.bf16.mxu0 %v4913_v16  ;;  %3701 = vmatmul.mubr.msk.bf16.vlgmr.msra.gmra.mrb[4].mxu1 %vm1322_vm0, %v1497_v47  ;;  %v1633_v47 = vld [vmem:[%s1131_s7] sm:$0xff]  ;;  %s5935_s7 = sld [smem:[#allocation60_spill]] }
 0x3a5   : > { %3714 = vmatprep.mubr.msk.bf16.mxu1 %vm4914_vm1, %v4913_v16  ;;  %vm1634_vm9 = vcmp.gt.f32.partialorder %v1633_v47, 0.0 }
 0x3a6   : > { %v1635_v50 = vsel %vm1634_vm9, 0.0, %v4918_v49 }
 0x3a7   : > { %3707 = vmatpush3.bf16.msra.mxu0 %v4134_v51 }
 0x3a8   : > { %3718 = vmatprep.subr.bf16.mxu0 %v4913_v16 }
 0x3aa   : > { %3709 = vmatmul.mubr.msk.bf16.vlgmr.msra.gmra.mrb[8].mxu0 %vm1322_vm0, %v1677_v53 }
 0x3ab   : > { %3720 = vmatprep.mubr.msk.bf16.mxu0 %vm4914_vm1, %v4913_v16 }
 0x46d   : > { %v1421_v58 = vpop.f32.mrb[0].mxu0  ;;  %v1487_v59 = vpop.f32.mrb[0].mxu1 }
 0x46e   : > { %v1422_v60 = vadd.f32 %v3533_v56, %v1421_v58  ;;  %v1488_v61 = vadd.f32 %v3537_v57, %v1487_v59  ;;  %v3678_v62 = vpop.f32.mrb[1].mxu0  ;;  %v3686_v63 = vpop.f32.mrb[1].mxu1 }
 0x46f   : > { %v1424_v0 = vpop.f32.mrb[2].mxu0  ;;  %v1490_v2 = vpop.f32.mrb[2].mxu1 }
 0x470   : > { %v1427_v3 = vpack.c.bf16 %v1422_v60, %v1422_v60  ;;  %v1493_v4 = vpack.c.bf16 %v1488_v61, %v1488_v61  ;;  %v3679_v5 = vpop.f32.mrb[3].mxu0  ;;  %v3687_v6 = vpop.f32.mrb[3].mxu1 }
 0x472   : > { %1429 = vst.msk [vmem:[#allocation2] sm:$0xf] %vm1428_vm6, %v1427_v3  ;;  %1494 = vst.msk [vmem:[#allocation3] sm:$0xf] %vm1428_vm6, %v1493_v4 }
 0x475   : > { %v1558_v8 = vpop.f32.mrb[4].mxu0 }
 0x476   : > { %v1559_v9 = vadd.f32 %v3541_v7, %v1558_v8  ;;  %v3694_v10 = vpop.f32.mrb[5].mxu0 }
 0x477   : > { %v1561_v11 = vpop.f32.mrb[6].mxu0  ;;  %v1624_v31 = vpop.f32.mrb[4].mxu1 }
 0x478   : > { %v1562_v12 = vadd.f32 %v3541_v7, %v1561_v11  ;;  %v3695_v13 = vpop.f32.mrb[7].mxu0  ;;  %v1625_v32 = vadd.f32 %v3545_v30, %v1624_v31  ;;  %v3702_v33 = vpop.f32.mrb[5].mxu1 }
 0x479   : > { %v1745_v14 = vld [vmem:[#allocation2] sm:$0xf]  ;;  %v1746_v15 = vld [vmem:[#allocation3] sm:$0xf]  ;;  %v1627_v34 = vpop.f32.mrb[6].mxu1 }
 0x47a   : > { %v1565_v17 = vpack.c.bf16 %v1562_v12, %v1559_v9  ;;  %v1752_v18 = vsel %vm1747_vm7, %v1745_v14, 0  ;;  %v1813_v19 = vsel %vm1811_vm8, %v1746_v15, 0  ;;  %v4137_v20 = vld [vmem:[#allocation2] ss:$0 sps:$4 sm:$0xff]   ;;  %v1628_v35 = vadd.f32 %v3545_v30, %v1627_v34  ;;  %v3703_v36 = vpop.f32.mrb[7].mxu1 }
 0x47b   : > { %3713 = vmatpush3.bf16.xpose.msra.mxu1 %v1752_v18  ;;  %3719 = vmatpush3.bf16.msra.mxu0 %v1813_v19  ;;  %v4138_v25 = vld [vmem:[#allocation2] ss:$0 sps:$4 sm:$0xff]   ;;  %v4140_v31 = vld [vmem:[#allocation3] ss:$0 sps:$4 sm:$0xff]  }
 0x47c   : > { %1566 = vst.msk [vmem:[#allocation4] sm:$0xff] %vm1322_vm0, %v1565_v17  ;;  %1864 = vrot.lane.b32.xlu0 %v4137_v20, %s4915_s13  ;;  %3724 = vmatprep.subr.bf16.mxu1 %v4913_v16  ;;  %v4139_v29 = vld [vmem:[#allocation2] ss:$0 sps:$4 sm:$0xff]   ;;  %v1631_v37 = vpack.c.bf16 %v1628_v35, %v1625_v32  ;;  %v4141_v34 = vld [vmem:[#allocation3] ss:$0 sps:$4 sm:$0xff]  }
 0x47d   : > { %v1738_v22 = vpop.f32.mrb[8].mxu0  ;;  %3730 = vmatprep.subr.bf16.mxu0 %v4913_v16 }
 0x47e   : > { %v1739_v23 = vadd.f32 %v3551_v21, %v1738_v22  ;;  %v3710_v24 = vpop.f32.mrb[9].mxu0  ;;  %1632 = vst.msk [vmem:[#allocation5] sm:$0xff] %vm1322_vm0, %v1631_v37 }
 0x47f   : > { %v1741_v26 = vpop.f32.mrb[10].mxu0 }
 0x480   : > { %v1744_v27 = vpack.c.bf16 %v1739_v23, %v1739_v23  ;;  %2116 = vrot.lane.b32.xlu0 %v4138_v25, %s4916_s30  ;;  %v3711_v28 = vpop.f32.mrb[11].mxu0 }
 0x482   : > { %1859 = vrot.lane.b32.xlu1 %v1744_v27, %s4915_s13  ;;  %3715 = vmatmul.mubr.msk.bf16.vlgmr.msra.gmra.mrb[8].mxu1 %vm1747_vm7, %v1744_v27 }
 0x483   : > { %3726 = vmatprep.mubr.msk.bf16.mxu1 %vm4914_vm1, %v4913_v16 }
 0x486   : > { %1990 = vrot.lane.b32.xlu1 %v4139_v29, %s4917_s0 }
 0x48a   : > { %1985 = vrot.lane.b32.xlu1 %v1744_v27, %s4917_s0 }
 0x48e   : > { %2111 = vrot.lane.b32.xlu1 %v1744_v27, %s4916_s30 }
 0x4ee   : > { %v1865_v38 = vpop.permute.xlu0 %1864 }
 0x4ef   : > { %v1870_v39 = vsel %vm1747_vm7, %v1865_v38, 0 }
 0x4f0   : > { %3725 = vmatpush3.bf16.xpose.msra.mxu1 %v1870_v39 }
 0x4f1   : > { %3736 = vmatprep.subr.bf16.mxu1 %v4913_v16 }
 0x4f2   : > { %v2117_v43 = vpop.permute.xlu0 %2116 }
 0x4f3   : > { %v2122_v45 = vsel %vm1747_vm7, %v2117_v43, 0 }
 0x4f4   : > { %v1860_v40 = vpop.permute.xlu1 %1859 }
 0x4f7   : > { %3727 = vmatmul.mubr.msk.bf16.vlgmr.msra.gmra.mrb[12].mxu1 %vm1747_vm7, %v1860_v40 }
 0x4f8   : > { %v1991_v41 = vpop.permute.xlu1 %1990  ;;  %3738 = vmatprep.mubr.msk.bf16.mxu1 %vm4914_vm1, %v4913_v16 }
 0x4f9   : > { %v1996_v42 = vsel %vm1747_vm7, %v1991_v41, 0 }
 0x4fa   : > { %3737 = vmatpush3.bf16.xpose.msra.mxu1 %v1996_v42  ;;  %v4142_v42 = vld [vmem:[#allocation3] ss:$0 sps:$4 sm:$0xff]  }
 0x4fb   : > { %3748 = vmatprep.subr.bf16.mxu1 %v4913_v16 }
 0x4fc   : > { %v1986_v44 = vpop.permute.xlu1 %1985 }
 0x500   : > { %v2112_v46 = vpop.permute.xlu1 %2111 }
 0x501   : > { %3739 = vmatmul.mubr.msk.bf16.vlgmr.msra.gmra.mrb[16].mxu1 %vm1747_vm7, %v1986_v44 }
 0x502   : > { %3749 = vmatpush3.bf16.xpose.msra.mxu1 %v2122_v45  ;;  %3750 = vmatprep.mubr.msk.bf16.mxu1 %vm4914_vm1, %v4913_v16 }
 0x503   : > { %3760 = vmatprep.subr.bf16.mxu1 %v4913_v16 }
 0x509   : > { %3751 = vmatmul.mubr.msk.bf16.vlgmr.msra.gmra.mrb[20].mxu1 %vm1747_vm7, %v2112_v46 }
 0x50a   : > { %3764 = vmatprep.mubr.msk.bf16.mxu1 %vm4914_vm1, %v4913_v16 }
 0x555   : > { %v1788_v48 = vpop.f32.mrb[8].mxu1 }
 0x556   : > { %v1794_v51 = vmul.f32 0.35355338, %v1788_v48  ;;  %v3716_v52 = vpop.f32.mrb[9].mxu1 }
 0x557   : > { %v1791_v53 = vpop.f32.mrb[10].mxu1 }
 0x558   : > { %v3717_v54 = vpop.f32.mrb[11].mxu1  ;;  %v1795_v55 = vadd.f32 %v1794_v51, %v1635_v50 }
 0x55a   : > { %v1796_v56 = vsel %vm1747_vm7, %v1795_v55, -inf }
 0x55b   : > { %1797 = vmax.xlane.f32.xlu0 %v1796_v56 }
 0x5ca   : > { %v1906_v57 = vpop.f32.mrb[12].mxu1 }
 0x5cb   : > { %v1912_v58 = vmul.f32 0.35355338, %v1906_v57  ;;  %v3728_v59 = vpop.f32.mrb[13].mxu1 }
 0x5cc   : > { %v1909_v60 = vpop.f32.mrb[14].mxu1 }
 0x5cd   : > { %v3729_v61 = vpop.f32.mrb[15].mxu1  ;;  %v1913_v62 = vadd.f32 %v1912_v58, %v1635_v50 }
 0x5cf   : > { %v1914_v63 = vsel %vm1747_vm7, %v1913_v62, -inf }
 0x5d0   : > { %1915 = vmax.xlane.f32.xlu1 %v1914_v63 }
 0x5d4   : > { %v2032_v0 = vpop.f32.mrb[16].mxu1 }
 0x5d5   : > { %v2038_v2 = vmul.f32 0.35355338, %v2032_v0  ;;  %v3740_v3 = vpop.f32.mrb[17].mxu1 }
 0x5d6   : > { %v2035_v4 = vpop.f32.mrb[18].mxu1  ;;  %v4143_v3 = vld [vmem:[%s5935_s7] sm:$0xff]  }
 0x5d7   : > { %v3741_v5 = vpop.f32.mrb[19].mxu1  ;;  %v2039_v6 = vadd.f32 %v2038_v2, %v1635_v50  ;;  %3761 = vmatpush3.bf16.msra.mxu1 %v4143_v3 }
 0x5d8   : > { %3762 = vmatprep.subr.bf16.mxu1 %v4913_v16 }
 0x5d9   : > { %v2040_v7 = vsel %vm1747_vm7, %v2039_v6, -inf }
 0x5da   : > { %2041 = vmax.xlane.f32.xlu0 %v2040_v7 }
 0x5dc   : > { %v2158_v8 = vpop.f32.mrb[20].mxu1 }
 0x5dd   : > { %v2164_v9 = vmul.f32 0.35355338, %v2158_v8  ;;  %v3752_v10 = vpop.f32.mrb[21].mxu1 }
 0x5de   : > { %v2161_v11 = vpop.f32.mrb[22].mxu1 }
 0x5df   : > { %v3753_v12 = vpop.f32.mrb[23].mxu1  ;;  %v2165_v13 = vadd.f32 %v2164_v9, %v1635_v50 }
 0x5e0   : > { %v4144_v12 = vld [vmem:[%s5935_s7 + $0x8] sm:$0xff]  }
 0x5e1   : > { %v2166_v14 = vsel %vm1747_vm7, %v2165_v13, -inf  ;;  %3763 = vmatpush3.bf16.msra.mxu1 %v4144_v12 }
 0x5e2   : > { %2167 = vmax.xlane.f32.xlu0 %v2166_v14  ;;  %3776 = vmatprep.subr.bf16.mxu1 %v4913_v16 }
 0x5e8   : > { %v1798_v15 = vpop.xlane.xlu0 %1797 }
 0x5e9   : > { %v1799_v17 = vsub.f32 %v1795_v55, %v1798_v15 }
 0x5eb   : > { %v1800_v18 = vmul.f32 1.442695, %v1799_v17 }
 0x5ed   : > { %4163 = vpow2.f32 %v1800_v18 }
 0x5f7   : > { %v4164_v19 = vpop.eup %4163 }
 0x5f8   : > { %v1802_v20 = vsel %vm1747_vm7, %v4164_v19, 0.0 }
 0x5f9   : > { %1803 = vadd.xlane.f32.xlu0 %v1802_v20 }
 0x65d   : > { %v1916_v21 = vpop.xlane.xlu1 %1915 }
 0x65e   : > { %v1917_v22 = vsub.f32 %v1913_v62, %v1916_v21 }
 0x660   : > { %v1918_v23 = vmul.f32 1.442695, %v1917_v22  ;;  %v2408_v22 = vld [vmem:[#allocation4] sm:$0xff] }
 0x662   : > { %4165 = vpow2.f32 %v1918_v23 }
 0x667   : > { %v2042_v24 = vpop.xlane.xlu0 %2041 }
 0x668   : > { %v2043_v25 = vsub.f32 %v2039_v6, %v2042_v24  ;;  %v2414_v24 = vsel %vm1747_vm7, %v2408_v22, 0 }
 0x66a   : > { %v2044_v26 = vmul.f32 1.442695, %v2043_v25  ;;  %v3569_v25 = vld [vmem:[#allocation24] ss:$0 sm:$0xff] }
 0x66c   : > { %v4166_v27 = vpop.eup %4165  ;;  %4167 = vpow2.f32 %v2044_v26 }
 0x66d   : > { %v1920_v28 = vsel %vm1747_vm7, %v4166_v27, 0.0 }
 0x66e   : > { %1921 = vadd.xlane.f32.xlu1 %v1920_v28 }
 0x66f   : > { %v2168_v32 = vpop.xlane.xlu0 %2167 }
 0x670   : > { %v2169_v35 = vsub.f32 %v2165_v13, %v2168_v32 }
 0x672   : > { %v2170_v37 = vmul.f32 1.442695, %v2169_v35 }
 0x676   : > { %v4168_v29 = vpop.eup %4167 }
 0x677   : > { %v2046_v30 = vsel %vm1747_vm7, %v4168_v29, 0.0 }
 0x678   : > { %2047 = vadd.xlane.f32.xlu0 %v2046_v30 }
 0x67f   : > { %2055 = vrot.lane.b32.xlu1 %v4140_v31, %s4917_s0 }
 0x686   : > { %v1804_v33 = vpop.xlane.xlu0 %1803 }
 0x687   : > { %4169 = vrcp.f32 %v1804_v33 }
 0x688   : > { %4171 = vpow2.f32 %v2170_v37 }
 0x68e   : > { %1929 = vrot.lane.b32.xlu0 %v4141_v34, %s4915_s13 }
 0x691   : > { %v4170_v36 = vpop.eup %4169 }
 0x692   : > { %v1806_v38 = vmul.f32 %v4170_v36, %v4164_v19  ;;  %v4172_v40 = vpop.eup %4171 }
 0x693   : > { %v2172_v41 = vsel %vm1747_vm7, %v4172_v40, 0.0 }
 0x694   : > { %v1807_v39 = vpack.c.bf16 %v1806_v38, %v1806_v38  ;;  %v4146_v38 = vld [vmem:[%s5936_s11 + $0x8] sm:$0xff]  }
 0x696   : > { %3721 = vmatmul.mubr.msk.bf16.vlgmr.msra.gmra.mrb[12].mxu0 %vm1747_vm7, %v1807_v39 }
 0x697   : > { %3732 = vmatprep.mubr.msk.bf16.mxu0 %vm4914_vm1, %v4913_v16 }
 0x6a3   : > { %2173 = vadd.xlane.f32.xlu1 %v2172_v41 }
 0x6b4   : > { %2181 = vrot.lane.b32.xlu1 %v4142_v42, %s4916_s30 }
 0x6fb   : > { %v1922_v43 = vpop.xlane.xlu1 %1921 }
 0x6fc   : > { %4173 = vrcp.f32 %v1922_v43 }
 0x6ff   : > { %v2056_v50 = vpop.permute.xlu1 %2055 }
 0x700   : > { %v2061_v52 = vsel %vm1811_vm8, %v2056_v50, 0 }
 0x705   : > { %v2048_v44 = vpop.xlane.xlu0 %2047 }
 0x706   : > { %v4174_v45 = vpop.eup %4173  ;;  %4175 = vrcp.f32 %v2048_v44 }
 0x707   : > { %v1924_v46 = vmul.f32 %v4174_v45, %v4166_v27 }
 0x709   : > { %v1930_v47 = vpop.permute.xlu0 %1929  ;;  %v1925_v51 = vpack.c.bf16 %v1924_v46, %v1924_v46 }
 0x70a   : > { %v1935_v48 = vsel %vm1811_vm8, %v1930_v47, 0  ;;  %v3573_v47 = vld [vmem:[#allocation25] ss:$0 sm:$0xff] }
 0x70b   : > { %3731 = vmatpush3.bf16.msra.mxu0 %v1935_v48 }
 0x70c   : > { %3742 = vmatprep.subr.bf16.mxu0 %v4913_v16 }
 0x70e   : > { %3733 = vmatmul.mubr.msk.bf16.vlgmr.msra.gmra.mrb[16].mxu0 %vm1747_vm7, %v1925_v51  ;;  %v3574_v51 = vld [vmem:[#allocation27] ss:$0 sm:$0xff] }
 0x70f   : > { %3743 = vmatpush3.bf16.msra.mxu0 %v2061_v52  ;;  %3744 = vmatprep.mubr.msk.bf16.mxu0 %vm4914_vm1, %v4913_v16 }
 0x710   : > { %v4176_v53 = vpop.eup %4175  ;;  %3754 = vmatprep.subr.bf16.mxu0 %v4913_v16 }
 0x711   : > { %v2050_v54 = vmul.f32 %v4176_v53, %v4168_v29 }
 0x713   : > { %v2051_v55 = vpack.c.bf16 %v2050_v54, %v2050_v54 }
 0x716   : > { %3745 = vmatmul.mubr.msk.bf16.vlgmr.msra.gmra.mrb[20].mxu0 %vm1747_vm7, %v2051_v55  ;;  %v5658_v55 = vld [vmem:[#allocation5] sm:$0xff] }
 0x717   : > { %3756 = vmatprep.mubr.msk.bf16.mxu0 %vm4914_vm1, %v4913_v16 }
 0x730   : > { %v2174_v56 = vpop.xlane.xlu1 %2173 }
 0x731   : > { %4177 = vrcp.f32 %v2174_v56  ;;  %v3575_v56 = vld [vmem:[%s5937_s20] ss:$0 sm:$0xff] }
 0x734   : > { %v2182_v57 = vpop.permute.xlu1 %2181 }
 0x735   : > { %v2187_v58 = vsel %vm1811_vm8, %v2182_v57, 0 }
 0x736   : > { %3755 = vmatpush3.bf16.msra.mxu0 %v2187_v58 }
 0x737   : > { %3768 = vmatprep.subr.bf16.mxu0 %v4913_v16 }
 0x73b   : > { %v4178_v59 = vpop.eup %4177 }
 0x73c   : > { %v2176_v60 = vmul.f32 %v4178_v59, %v4172_v40 }
 0x73e   : > { %v2177_v61 = vpack.c.bf16 %v2176_v60, %v2176_v60 }
 0x740   : > { %3757 = vmatmul.mubr.msk.bf16.vlgmr.msra.gmra.mrb[24].mxu0 %vm1747_vm7, %v2177_v61 }
 0x741   : > { %3772 = vmatprep.mubr.msk.bf16.mxu0 %vm4914_vm1, %v4913_v16 }
 0x769   : > { %v1849_v62 = vpop.f32.mrb[12].mxu0 }
 0x76a   : > { %1855 = vst.msk [vmem:[#allocation6] sm:$0xff] %vm1747_vm7, %v1849_v62  ;;  %v3722_v63 = vpop.f32.mrb[13].mxu0 }
 0x76b   : > { %v1852_v0 = vpop.f32.mrb[14].mxu0 }
 0x76c   : > { %v3723_v2 = vpop.f32.mrb[15].mxu0 }
 0x7e1   : > { %v1971_v4 = vpop.f32.mrb[16].mxu0 }
 0x7e2   : > { %1978 = vrot.lane.b32.xlu1 %v1971_v4, %s4919_s3  ;;  %v3734_v5 = vpop.f32.mrb[17].mxu0 }
 0x7e3   : > { %v1974_v6 = vpop.f32.mrb[18].mxu0 }
 0x7e4   : > { %v3735_v7 = vpop.f32.mrb[19].mxu0 }
 0x7e9   : > { %v2097_v8 = vpop.f32.mrb[20].mxu0 }
 0x7ea   : > { %2104 = vrot.lane.b32.xlu0 %v2097_v8, %s4920_s10  ;;  %v3746_v9 = vpop.f32.mrb[21].mxu0 }
 0x7eb   : > { %v2100_v10 = vpop.f32.mrb[22].mxu0  ;;  %v2458_v9 = vlaneseq }
 0x7ec   : > { %v3747_v11 = vpop.f32.mrb[23].mxu0  ;;  %v1636_v10 = vld [vmem:[%s1139_s25] sm:$0x1]  ;;  %s5938_s25 = sld [smem:[#allocation68_spill]] }
 0x7ed   : > { %v2459_v11 = vshrl.u32 %v2458_v9, 7  ;;  %vm1637_vm15 = vcmp.gt.f32.partialorder %v1636_v10, 0.0 }
 0x7ef   : > { %v2460_v12 = vsub.s32 0, %v2459_v11 }
 0x813   : > { %v2223_v13 = vpop.f32.mrb[24].mxu0 }
 0x814   : > { %2230 = vrot.lane.b32.xlu1 %v2223_v13, %s4921_s5  ;;  %v3758_v14 = vpop.f32.mrb[25].mxu0  ;;  %v1638_v13 = vsel %vm1637_vm15, 0.0, %v4918_v49 }
 0x815   : > { %v2226_v15 = vpop.f32.mrb[26].mxu0  ;;  %v2461_v14 = vrot.slane %v1638_v13, %v2460_v12 }
 0x816   : > { %v3759_v17 = vpop.f32.mrb[27].mxu0 }
 0x854   : > { %v1979_v18 = vpop.permute.xlu1 %1978 }
 0x855   : > { %1982 = vst.msk [vmem:[#allocation6] sm:$0xff] %vm1981_vm10, %v1979_v18 }
 0x85c   : > { %v2105_v19 = vpop.permute.xlu0 %2104 }
 0x85d   : > { %2108 = vst.msk [vmem:[#allocation6] sm:$0xff] %vm2107_vm11, %v2105_v19 }
 0x886   : > { %v2231_v20 = vpop.permute.xlu1 %2230 }
 0x887   : > { %2234 = vst.msk [vmem:[#allocation6] sm:$0xff] %vm2233_vm12, %v2231_v20 }
 0x88e   : > { %v2235_v21 = vld [vmem:[#allocation6] sm:$0xff] }
 0x88f   : > { %v2236_v23 = vpack.c.bf16 %v2235_v21, %v2235_v21 }
 0x891   : > { %3765 = vmatmul.mubr.msk.bf16.vlgmr.msra.gmra.mrb[24].mxu1 %vm1322_vm0, %v2236_v23 }
 0x892   : > { %3777 = vmatpush3.bf16.xpose.msra.mxu1 %v2414_v24  ;;  %3778 = vmatprep.mubr.msk.bf16.mxu1 %vm4914_vm1, %v4913_v16 }
 0x893   : > { %3788 = vmatprep.subr.bf16.mxu1 %v4913_v16 }
 0x964   : > { %v2297_v26 = vpop.f32.mrb[24].mxu1 }
 0x965   : > { %v2298_v27 = vadd.f32 %v3569_v25, %v2297_v26  ;;  %v3766_v28 = vpop.f32.mrb[25].mxu1 }
 0x966   : > { %v2300_v29 = vpop.f32.mrb[26].mxu1 }
 0x967   : > { %v5644_v30 = vadd.f32 %v2298_v27, %v5516_v1  ;;  %v3767_v31 = vpop.f32.mrb[27].mxu1  ;;  %v4145_v1 = vld [vmem:[%s5936_s11] sm:$0xff]  }
 0x968   : > { %3769 = vmatpush3.bf16.msra.mxu0 %v4145_v1 }
 0x969   : > { %v2304_v32 = vsel %vm1322_vm0, %v5644_v30, 0.0  ;;  %3770 = vmatprep.subr.bf16.mxu0 %v4913_v16 }
 0x96a   : > { %2305 = vadd.xlane.f32.xlu0 %v2304_v32 }
 0x96c   : > { %3771 = vmatpush3.bf16.msra.mxu0 %v4146_v38 }
 0x96d   : > { %3782 = vmatprep.subr.bf16.mxu0 %v4913_v16 }
 0x980   : > { %2527 = vrot.lane.b32.xlu0 %v2408_v22, %s4915_s13 }
 0x984   : > { %2646 = vrot.lane.b32.xlu0 %v2408_v22, %s4917_s0 }
 0x988   : > { %2765 = vrot.lane.b32.xlu0 %v2408_v22, %s4916_s30 }
 0x9f7   : > { %v2306_v33 = vpop.xlane.xlu0 %2305 }
 0x9f8   : > { %v2307_v34 = vmul.f32 0.03125, %v2306_v33 }
 0x9fa   : > { %v2308_v35 = vsub.f32 %v5644_v30, %v2307_v34 }
 0x9fb   : > { %v2528_v60 = vpop.permute.xlu0 %2527 }
 0x9fc   : > { %v2309_v36 = vmul.f32 %v2308_v35, %v2308_v35  ;;  %v2330_v48 = vmul.f32 %v3573_v47, %v2308_v35  ;;  %v2533_v0 = vsel %vm1747_vm7, %v2528_v60, 0 }
 0x9fe   : > { %v2310_v37 = vsel %vm1322_vm0, %v2309_v36, 0.0 }
 0x9ff   : > { %2311 = vadd.xlane.f32.xlu1 %v2310_v37  ;;  %v2647_v2 = vpop.permute.xlu0 %2646 }
 0xa00   : > { %v2652_v4 = vsel %vm1747_vm7, %v2647_v2, 0 }
 0xa03   : > { %v2766_v5 = vpop.permute.xlu0 %2765 }
 0xa04   : > { %v2771_v7 = vsel %vm1747_vm7, %v2766_v5, 0 }
 0xa8c   : > { %v2312_v39 = vpop.xlane.xlu1 %2311 }
 0xa8d   : > { %v2313_v40 = vmul.f32 0.032258064, %v2312_v39 }
 0xa8f   : > { %4179 = vrsqrt.f32 %v2313_v40  ;;  %vm2316_vm13 = vcmp.eq.f32.partialorder %v2313_v40, inf  ;;  %v2319_v43 = vand.u32 2147483648, %v2313_v40  ;;  %vm2318_vm14 = vcmp.eq.f32.partialorder %v2313_v40, 0.0 }
 0xa99   : > { %v4180_v41 = vpop.eup %4179 }
 0xa9a   : > { %v2315_v42 = vmul.f32 %v4180_v41, %v2313_v40 }
 0xa9c   : > { %v2317_v44 = vsel %vm2316_vm13, %v2313_v40, %v2315_v42 }
 0xa9d   : > { %v2320_v45 = vsel %vm2318_vm14, %v2319_v43, %v2317_v44 }
 0xa9e   : > { %v2321_v46 = vadd.f32 1e-06, %v2320_v45 }
 0xaa0   : > { %4181 = vrcp.f32 %v2321_v46 }
 0xaaa   : > { %v4182_v50 = vpop.eup %4181 }
 0xaab   : > { %v2331_v52 = vmul.f32 %v4182_v50, %v2330_v48 }
 0xaad   : > { %v2339_v53 = vadd.f32 %v3574_v51, %v2331_v52 }
 0xaaf   : > { %v2340_v54 = vpack.c.bf16 %v2339_v53, %v2339_v53 }
 0xab1   : > { %3773 = vmatmul.mubr.msk.bf16.vlgmr.msra.gmra.mrb[28].mxu0 %vm1322_vm0, %v2340_v54 }
 0xab2   : > { %3783 = vmatpush3.bf16.msra.mxu0 %v5658_v55  ;;  %3784 = vmatprep.mubr.msk.bf16.mxu0 %vm4914_vm1, %v4913_v16 }
 0xab3   : > { %3794 = vmatprep.subr.bf16.mxu0 %v4913_v16 }
 0xb84   : > { %v2401_v57 = vpop.f32.mrb[28].mxu0 }
 0xb85   : > { %v2402_v58 = vadd.f32 %v3575_v56, %v2401_v57  ;;  %v3774_v59 = vpop.f32.mrb[29].mxu0 }
 0xb86   : > { %v2404_v61 = vpop.f32.mrb[30].mxu0 }
 0xb87   : > { %v2407_v62 = vpack.c.bf16 %v2402_v58, %v2402_v58  ;;  %v3775_v63 = vpop.f32.mrb[31].mxu0 }
 0xb89   : > { %2524 = vrot.lane.b32.xlu1 %v2407_v62, %s4915_s13  ;;  %3779 = vmatmul.mubr.msk.bf16.vlgmr.msra.gmra.mrb[28].mxu1 %vm1747_vm7, %v2407_v62 }
 0xb8a   : > { %3789 = vmatpush3.bf16.xpose.msra.mxu1 %v2533_v0  ;;  %3790 = vmatprep.mubr.msk.bf16.mxu1 %vm4914_vm1, %v4913_v16 }
 0xb8b   : > { %3800 = vmatprep.subr.bf16.mxu1 %v4913_v16 }
 0xb8d   : > { %2643 = vrot.lane.b32.xlu1 %v2407_v62, %s4917_s0 }
 0xb91   : > { %2762 = vrot.lane.b32.xlu1 %v2407_v62, %s4916_s30 }
 0xbfb   : > { %v2525_v3 = vpop.permute.xlu1 %2524 }
 0xbfc   : > { %3791 = vmatmul.mubr.msk.bf16.vlgmr.msra.gmra.mrb[32].mxu1 %vm1747_vm7, %v2525_v3 }
 0xbfd   : > { %3801 = vmatpush3.bf16.xpose.msra.mxu1 %v2652_v4  ;;  %3802 = vmatprep.mubr.msk.bf16.mxu1 %vm4914_vm1, %v4913_v16 }
 0xbfe   : > { %3812 = vmatprep.subr.bf16.mxu1 %v4913_v16 }
 0xbff   : > { %v2644_v6 = vpop.permute.xlu1 %2643 }
 0xc03   : > { %v2763_v8 = vpop.permute.xlu1 %2762 }
 0xc04   : > { %3803 = vmatmul.mubr.msk.bf16.vlgmr.msra.gmra.mrb[36].mxu1 %vm1747_vm7, %v2644_v6 }
 0xc05   : > { %3813 = vmatpush3.bf16.xpose.msra.mxu1 %v2771_v7  ;;  %3814 = vmatprep.mubr.msk.bf16.mxu1 %vm4914_vm1, %v4913_v16 }
 0xc06   : > { %3824 = vmatprep.subr.bf16.mxu1 %v4913_v16 }
 0xc0c   : > { %3815 = vmatmul.mubr.msk.bf16.vlgmr.msra.gmra.mrb[40].mxu1 %vm1747_vm7, %v2763_v8 }
 0xc0d   : > { %3828 = vmatprep.mubr.msk.bf16.mxu1 %vm4914_vm1, %v4913_v16 }
 0xc5c   : > { %v2450_v15 = vpop.f32.mrb[28].mxu1 }
 0xc5d   : > { %v2456_v17 = vmul.f32 0.35355338, %v2450_v15  ;;  %v3780_v18 = vpop.f32.mrb[29].mxu1 }
 0xc5e   : > { %v2453_v19 = vpop.f32.mrb[30].mxu1 }
 0xc5f   : > { %v3781_v20 = vpop.f32.mrb[31].mxu1  ;;  %v2463_v21 = vadd.f32 %v2461_v14, %v2456_v17 }
 0xc61   : > { %v2465_v22 = vsel %vm2464_vm2, %v2463_v21, -inf }
 0xc62   : > { %2466 = vmax.xlane.f32.xlu0 %v2465_v22 }
 0xccf   : > { %v2569_v23 = vpop.f32.mrb[32].mxu1 }
 0xcd0   : > { %v2575_v24 = vmul.f32 0.35355338, %v2569_v23  ;;  %v3792_v25 = vpop.f32.mrb[33].mxu1 }
 0xcd1   : > { %v2572_v26 = vpop.f32.mrb[34].mxu1 }
 0xcd2   : > { %v3793_v27 = vpop.f32.mrb[35].mxu1  ;;  %v2576_v28 = vadd.f32 %v2575_v24, %v2461_v14 }
 0xcd4   : > { %v2577_v29 = vsel %vm2464_vm2, %v2576_v28, -inf }
 0xcd5   : > { %2578 = vmax.xlane.f32.xlu1 %v2577_v29 }
 0xcd7   : > { %v2688_v49 = vpop.f32.mrb[36].mxu1 }
 0xcd8   : > { %v2694_v31 = vmul.f32 0.35355338, %v2688_v49  ;;  %v3804_v32 = vpop.f32.mrb[37].mxu1 }
 0xcd9   : > { %v2691_v33 = vpop.f32.mrb[38].mxu1 }
 0xcda   : > { %v3805_v34 = vpop.f32.mrb[39].mxu1  ;;  %v2695_v35 = vadd.f32 %v2694_v31, %v2461_v14  ;;  %v4147_v33 = vld [vmem:[%s5938_s25] sm:$0xff]  }
 0xcdb   : > { %3825 = vmatpush3.bf16.msra.mxu1 %v4147_v33  ;;  %v4148_v34 = vld [vmem:[%s5938_s25 + $0x8] sm:$0xff]  }
 0xcdc   : > { %v2696_v36 = vsel %vm2464_vm2, %v2695_v35, -inf  ;;  %3826 = vmatprep.subr.bf16.mxu1 %v4913_v16 }
 0xcdd   : > { %2697 = vmax.xlane.f32.xlu0 %v2696_v36 }
 0xcdf   : > { %v2807_v37 = vpop.f32.mrb[40].mxu1  ;;  %3827 = vmatpush3.bf16.msra.mxu1 %v4148_v34 }
 0xce0   : > { %v2813_v1 = vmul.f32 0.35355338, %v2807_v37  ;;  %v3816_v38 = vpop.f32.mrb[41].mxu1  ;;  %3840 = vmatprep.subr.bf16.mxu1 %v4913_v16 }
 0xce1   : > { %v2810_v39 = vpop.f32.mrb[42].mxu1 }
 0xce2   : > { %v3817_v40 = vpop.f32.mrb[43].mxu1  ;;  %v2814_v41 = vadd.f32 %v2813_v1, %v2461_v14 }
 0xce4   : > { %v2815_v42 = vsel %vm2464_vm2, %v2814_v41, -inf }
 0xce5   : > { %2816 = vmax.xlane.f32.xlu0 %v2815_v42 }
 0xcef   : > { %v2467_v43 = vpop.xlane.xlu0 %2466 }
 0xcf0   : > { %v2468_v44 = vsub.f32 %v2463_v21, %v2467_v43  ;;  %v3587_v43 = vld [vmem:[#allocation33] ss:$0 sm:$0xff] }
 0xcf2   : > { %v2469_v45 = vmul.f32 1.442695, %v2468_v44 }
 0xcf4   : > { %4183 = vpow2.f32 %v2469_v45 }
 0xcfe   : > { %v4184_v46 = vpop.eup %4183 }
 0xcff   : > { %v2471_v47 = vsel %vm2464_vm2, %v4184_v46, 0.0 }
 0xd00   : > { %2472 = vadd.xlane.f32.xlu0 %v2471_v47 }
 0xd62   : > { %v2579_v48 = vpop.xlane.xlu1 %2578 }
 0xd63   : > { %v2580_v50 = vsub.f32 %v2576_v28, %v2579_v48 }
 0xd65   : > { %v2581_v51 = vmul.f32 1.442695, %v2580_v50 }
 0xd67   : > { %4185 = vpow2.f32 %v2581_v51 }
 0xd6a   : > { %v2698_v52 = vpop.xlane.xlu0 %2697 }
 0xd6b   : > { %v2699_v53 = vsub.f32 %v2695_v35, %v2698_v52 }
 0xd6d   : > { %v2700_v54 = vmul.f32 1.442695, %v2699_v53 }
 0xd6f   : > { %4187 = vpow2.f32 %v2700_v54 }
 0xd71   : > { %v4186_v56 = vpop.eup %4185 }
 0xd72   : > { %v2583_v57 = vsel %vm2464_vm2, %v4186_v56, 0.0  ;;  %v2817_v60 = vpop.xlane.xlu0 %2816 }
 0xd73   : > { %2584 = vadd.xlane.f32.xlu1 %v2583_v57  ;;  %v2818_v62 = vsub.f32 %v2814_v41, %v2817_v60  ;;  %v4152_v60 = vld [vmem:[%s5076_s4 + $0x8] sm:$0xff]  }
 0xd75   : > { %v2819_v63 = vmul.f32 1.442695, %v2818_v62 }
 0xd79   : > { %v4188_v58 = vpop.eup %4187 }
 0xd7a   : > { %v2702_v59 = vsel %vm2464_vm2, %v4188_v58, 0.0 }
 0xd7b   : > { %2703 = vadd.xlane.f32.xlu0 %v2702_v59  ;;  %v4150_v59 = vld [vmem:[%s5939_s18 + $0x8] sm:$0xff]  }
 0xd84   : > { %2709 = vrot.lane.b32.xlu1 %v5658_v55, %s4917_s0  ;;  %s1302_s0 = scalar_lea.vmem [#allocation37], %s5461_s19 }
 0xd8d   : > { %v2473_v61 = vpop.xlane.xlu0 %2472 }
 0xd8e   : > { %4189 = vrcp.f32 %v2473_v61 }
 0xd8f   : > { %4191 = vpow2.f32 %v2819_v63 }
 0xd91   : > { %2590 = vrot.lane.b32.xlu0 %v5658_v55, %s4915_s13  ;;  %s5942_s13 = sld [smem:[#allocation75_spill]] }
 0xd98   : > { %v4190_v0 = vpop.eup %4189 }
 0xd99   : > { %v2475_v2 = vmul.f32 %v4190_v0, %v4184_v46  ;;  %v4192_v4 = vpop.eup %4191 }
 0xd9a   : > { %v2821_v5 = vsel %vm2464_vm2, %v4192_v4, 0.0 }
 0xd9b   : > { %v2476_v3 = vpack.c.bf16 %v2475_v2, %v2475_v2 }
 0xd9d   : > { %3785 = vmatmul.mubr.msk.bf16.vlgmr.msra.gmra.mrb[32].mxu0 %vm2464_vm2, %v2476_v3 }
 0xd9e   : > { %3796 = vmatprep.mubr.msk.bf16.mxu0 %vm4914_vm1, %v4913_v16 }
 0xda8   : > { %2822 = vadd.xlane.f32.xlu1 %v2821_v5 }
 0xdb9   : > { %2828 = vrot.lane.b32.xlu1 %v5658_v55, %s4916_s30  ;;  %s3604_s30 = sshll.u32 %s4851_s26, 7  ;;  %s4922_s26 = smov [#allocation37]  }
 0xdba   : > { %s4745_s19 = sshll.u32 %s4922_s26, 4  ;;  %s4746_s19 = int_to_ptr.vmem [resolvable:$false] %s4745_s19 }
 0xe00   : > { %v2585_v6 = vpop.xlane.xlu1 %2584 }
 0xe01   : > { %4193 = vrcp.f32 %v2585_v6  ;;  %v3591_v6 = vld [vmem:[#allocation34] ss:$0 sm:$0xff] }
 0xe04   : > { %v2710_v12 = vpop.permute.xlu1 %2709 }
 0xe08   : > { %v2704_v7 = vpop.xlane.xlu0 %2703 }
 0xe09   : > { %4195 = vrcp.f32 %v2704_v7 }
 0xe0b   : > { %v4194_v8 = vpop.eup %4193 }
 0xe0c   : > { %v2587_v9 = vmul.f32 %v4194_v8, %v4186_v56  ;;  %v2591_v10 = vpop.permute.xlu0 %2590 }
 0xe0d   : > { %3795 = vmatpush3.bf16.msra.mxu0 %v2591_v10 }
 0xe0e   : > { %v2588_v11 = vpack.c.bf16 %v2587_v9, %v2587_v9  ;;  %3806 = vmatprep.subr.bf16.mxu0 %v4913_v16  ;;  %v3592_v9 = vld [vmem:[#allocation36] ss:$0 sm:$0xff] }
 0xe10   : > { %3797 = vmatmul.mubr.msk.bf16.vlgmr.msra.gmra.mrb[36].mxu0 %vm2464_vm2, %v2588_v11 }
 0xe11   : > { %3807 = vmatpush3.bf16.msra.mxu0 %v2710_v12  ;;  %3808 = vmatprep.mubr.msk.bf16.mxu0 %vm4914_vm1, %v4913_v16 }
 0xe12   : > { %3818 = vmatprep.subr.bf16.mxu0 %v4913_v16 }
 0xe13   : > { %v4196_v55 = vpop.eup %4195 }
 0xe14   : > { %v2706_v13 = vmul.f32 %v4196_v55, %v4188_v58  ;;  %v4149_v58 = vld [vmem:[%s5939_s18] sm:$0xff]   ;;  %v4153_v55 = vld [vmem:[%s5076_s4 + $0x10] sm:$0xff]  }
 0xe16   : > { %v2707_v14 = vpack.c.bf16 %v2706_v13, %v2706_v13  ;;  %v4154_v13 = vld [vmem:[%s5076_s4 + $0x18] sm:$0xff]  }
 0xe18   : > { %3809 = vmatmul.mubr.msk.bf16.vlgmr.msra.gmra.mrb[40].mxu0 %vm2464_vm2, %v2707_v14  ;;  %v3593_v14 = vld [vmem:[%s5940_s21] ss:$0 sm:$0xff]  ;;  %s4747_s21 = scalar_lea.vmem %s4746_s19, 256 }
 0xe19   : > { %3820 = vmatprep.mubr.msk.bf16.mxu0 %vm4914_vm1, %v4913_v16 }
 0xe35   : > { %v2823_v15 = vpop.xlane.xlu1 %2822 }
 0xe36   : > { %4197 = vrcp.f32 %v2823_v15 }
 0xe39   : > { %v2829_v17 = vpop.permute.xlu1 %2828 }
 0xe3a   : > { %3819 = vmatpush3.bf16.msra.mxu0 %v2829_v17 }
 0xe3b   : > { %3832 = vmatprep.subr.bf16.mxu0 %v4913_v16 }
 0xe40   : > { %v4198_v18 = vpop.eup %4197 }
 0xe41   : > { %v2825_v19 = vmul.f32 %v4198_v18, %v4192_v4 }
 0xe43   : > { %v2826_v20 = vpack.c.bf16 %v2825_v19, %v2825_v19 }
 0xe45   : > { %3821 = vmatmul.mubr.msk.bf16.vlgmr.msra.gmra.mrb[44].mxu0 %vm2464_vm2, %v2826_v20 }
 0xe46   : > { %3836 = vmatprep.mubr.msk.bf16.mxu0 %vm4914_vm1, %v4913_v16  ;;  %3833 = vmatpush3.bf16.msra.mxu0 %v4149_v58 }
 0xe47   : > { %3834 = vmatprep.subr.bf16.mxu0 %v4913_v16 }
 0xe4a   : > { %3835 = vmatpush3.bf16.msra.mxu0 %v4150_v59 }
 0xe70   : > { %v2514_v21 = vpop.f32.mrb[32].mxu0 }
 0xe71   : > { %2520 = vst.msk [vmem:[#allocation6] sm:$0xff] %vm1747_vm7, %v2514_v21  ;;  %v3786_v22 = vpop.f32.mrb[33].mxu0 }
 0xe72   : > { %v2517_v23 = vpop.f32.mrb[34].mxu0 }
 0xe73   : > { %v3787_v24 = vpop.f32.mrb[35].mxu0  ;;  %v3597_v23 = vld [vmem:[%s5941_s1] ss:$0 sm:$0xff] }
 0xee3   : > { %v2630_v25 = vpop.f32.mrb[36].mxu0 }
 0xee4   : > { %2637 = vrot.lane.b32.xlu1 %v2630_v25, %s4919_s3  ;;  %v3798_v26 = vpop.f32.mrb[37].mxu0  ;;  %s3153_s3 = sshll.u32 %s1302_s0, 4  ;;  %s5758_s3 = int_to_ptr.vmem [resolvable:$true] %s3153_s3 }
 0xee5   : > { %v2633_v27 = vpop.f32.mrb[38].mxu0  ;;  %s4741_s20 = scalar_lea.vmem %s5758_s3, 128  ;;  %p4748_p11 = scmp.lt.s32.totalorder %s5758_s3, %s4746_s19 }
 0xee6   : > { %v3799_v28 = vpop.f32.mrb[39].mxu0  ;;  %p4742_p3 = scmp.ne.s32.totalorder %s5758_s3, %s4741_s20  ;;  %p4749_p5 = scmp.lt.s32.totalorder %s4747_s21, %s4741_s20 }
 0xee8   : > { %p4743_p13 = pnand %p4742_p3, %p5943_p4  ;;  %p4750_p1 = por %p4749_p5, %p4748_p11 }
 0xeea   : > { %p4744_p8 = pneg %p4743_p13 }
 0xeeb   : > { %v2749_v29 = vpop.f32.mrb[40].mxu0 }
 0xeec   : > { %2756 = vrot.lane.b32.xlu0 %v2749_v29, %s4920_s10  ;;  %v3810_v49 = vpop.f32.mrb[41].mxu0  ;;  %s5756_s10 = scalar_lea.hbm %s5942_s13, %s3604_s30  ;;  %p4751_p2 = pnand %p4750_p1, %p4744_p8 }
 0xeed   : > { %v2752_v31 = vpop.f32.mrb[42].mxu0 }
 0xeee   : > { %v3811_v32 = vpop.f32.mrb[43].mxu0 }
 0xf18   : > { %v2868_v35 = vpop.f32.mrb[44].mxu0 }
 0xf19   : > { %2875 = vrot.lane.b32.xlu1 %v2868_v35, %s4921_s5  ;;  %v3822_v36 = vpop.f32.mrb[45].mxu0  ;;  %s3139_s5 = scalar_lea.sflag [#allocation9], %s5458_s8 }
 0xf1a   : > { %v2871_v37 = vpop.f32.mrb[46].mxu0 }
 0xf1b   : > { %v3823_v1 = vpop.f32.mrb[47].mxu0 }
 0xf56   : > { %v2638_v38 = vpop.permute.xlu1 %2637 }
 0xf57   : > { %2640 = vst.msk [vmem:[#allocation6] sm:$0xff] %vm1981_vm10, %v2638_v38 }
 0xf5e   : > { %v2757_v39 = vpop.permute.xlu0 %2756 }
 0xf5f   : > { %2759 = vst.msk [vmem:[#allocation6] sm:$0xff] %vm2107_vm11, %v2757_v39 }
 0xf8b   : > { %v2876_v40 = vpop.permute.xlu1 %2875 }
 0xf8c   : > { %2878 = vst.msk [vmem:[#allocation6] sm:$0xff] %vm2233_vm12, %v2876_v40 }
 0xf93   : > { %v2879_v41 = vld [vmem:[#allocation6] sm:$0xff] }
 0xf94   : > { %v2880_v42 = vpack.c.bf16 %v2879_v41, %v2879_v41 }
 0xf96   : > { %3829 = vmatmul.mubr.msk.bf16.vlgmr.msra.gmra.mrb[44].mxu1 %vm1322_vm0, %v2880_v42 }
 0xf97   : > { %3848 = vmatprep.mubr.msk.bf16.mxu1 %vm4914_vm1, %v4913_v16 }
0x1069   : > { %v2941_v44 = vpop.f32.mrb[44].mxu1 }
0x106a   : > { %v2942_v45 = vadd.f32 %v3587_v43, %v2941_v44  ;;  %v3830_v46 = vpop.f32.mrb[45].mxu1 }
0x106b   : > { %v2944_v47 = vpop.f32.mrb[46].mxu1 }
0x106c   : > { %v5733_v48 = vadd.f32 %v2942_v45, %v5644_v30  ;;  %v3831_v50 = vpop.f32.mrb[47].mxu1  ;;  %v4151_v30 = vld [vmem:[%s5076_s4] sm:$0xff]  }
0x106d   : > { %3841 = vmatpush3.bf16.msra.mxu1 %v4151_v30 }
0x106e   : > { %v2948_v51 = vsel %vm1322_vm0, %v5733_v48, 0.0  ;;  %3842 = vmatprep.subr.bf16.mxu1 %v4913_v16 }
0x106f   : > { %2949 = vadd.xlane.f32.xlu0 %v2948_v51 }
0x1071   : > { %3843 = vmatpush3.bf16.msra.mxu1 %v4152_v60 }
0x1072   : > { %3844 = vmatprep.subr.bf16.mxu1 %v4913_v16 }
0x1075   : > { %3845 = vmatpush3.bf16.msra.mxu1 %v4153_v55 }
0x1076   : > { %3846 = vmatprep.subr.bf16.mxu1 %v4913_v16 }
0x1079   : > { %3847 = vmatpush3.bf16.msra.mxu1 %v4154_v13 }
0x10fc   : > { %v2950_v52 = vpop.xlane.xlu0 %2949 }
0x10fd   : > { %v2951_v53 = vmul.f32 0.03125, %v2950_v52 }
0x10ff   : > { %v2952_v54 = vsub.f32 %v5733_v48, %v2951_v53 }
0x1101   : > { %v2953_v56 = vmul.f32 %v2952_v54, %v2952_v54  ;;  %v2974_v7 = vmul.f32 %v3591_v6, %v2952_v54 }
0x1103   : > { %v2954_v57 = vsel %vm1322_vm0, %v2953_v56, 0.0 }
0x1104   : > { %2955 = vadd.xlane.f32.xlu1 %v2954_v57 }
0x1191   : > { %v2956_v61 = vpop.xlane.xlu1 %2955 }
0x1192   : > { %v2957_v62 = vmul.f32 0.032258064, %v2956_v61 }
0x1194   : > { %4199 = vrsqrt.f32 %v2957_v62  ;;  %vm2960_vm1 = vcmp.eq.f32.partialorder %v2957_v62, inf  ;;  %v2963_v2 = vand.u32 2147483648, %v2957_v62  ;;  %vm2962_vm3 = vcmp.eq.f32.partialorder %v2957_v62, 0.0 }
0x119e   : > { %v4200_v63 = vpop.eup %4199 }
0x119f   : > { %v2959_v0 = vmul.f32 %v4200_v63, %v2957_v62 }
0x11a1   : > { %v2961_v3 = vsel %vm2960_vm1, %v2957_v62, %v2959_v0 }
0x11a2   : > { %v2964_v4 = vsel %vm2962_vm3, %v2963_v2, %v2961_v3 }
0x11a3   : > { %v2965_v5 = vadd.f32 1e-06, %v2964_v4 }
0x11a5   : > { %4201 = vrcp.f32 %v2965_v5 }
0x11af   : > { %v4202_v8 = vpop.eup %4201 }
0x11b0   : > { %v2975_v10 = vmul.f32 %v4202_v8, %v2974_v7 }
0x11b2   : > { %v2983_v11 = vadd.f32 %v3592_v9, %v2975_v10 }
0x11b4   : > { %v2984_v12 = vpack.c.bf16 %v2983_v11, %v2983_v11 }
0x11b6   : > { %3837 = vmatmul.mubr.msk.bf16.vlgmr.msra.gmra.mrb[48].mxu0 %vm1322_vm0, %v2984_v12 }
0x1289   : > { %v3045_v15 = vpop.f32.mrb[48].mxu0 }
0x128a   : > { %v3046_v17 = vadd.f32 %v3593_v14, %v3045_v15  ;;  %v3838_v18 = vpop.f32.mrb[49].mxu0 }
0x128b   : > { %v3048_v19 = vpop.f32.mrb[50].mxu0 }
0x128c   : > { %v3051_v20 = vmax.f32 %v3046_v17, 0.0  ;;  %v3839_v21 = vpop.f32.mrb[51].mxu0 }
0x128e   : > { %v3052_v22 = vpack.c.bf16 %v3051_v20, %v3051_v20 }
0x1290   : > { %3849 = vmatmul.mubr.msk.bf16.vlgmr.msra.gmra.mrb[48].mxu1 %vm3092_vm4, %v3052_v22 }
0x1363   : > { %v3130_v24 = vpop.f32.mrb[48].mxu1 }
0x1364   : > { %v3131_v16 = vadd.f32 %v3597_v23, %v3130_v24  ;;  %v3850_v25 = vpop.f32.mrb[49].mxu1 }
0x1365   : > { %v3133_v26 = vpop.f32.mrb[50].mxu1 }
0x1366   : > { %v3136_v27 = vadd.f32 %v3131_v16, %v5733_v48  ;;  %v3851_v28 = vpop.f32.mrb[51].mxu1 }
0x1368   : > { %3137 = vst.msk [vmem:[%s1302_s0] sm:$0xff] %vm1322_vm0, %v3136_v27 }
0x1369   : > { %4754 = shalt.err (!%p4751_p2)
}
0x136a   : > { %s4755_s8 = scalar_lea.hbm %s5756_s10, 128  ;;  %s4759_s1 = scalar_lea.hbm %s5942_s13, 256 }
0x136b   : > { %p4756_p7 = scmp.ne.s32.totalorder %s5756_s10, %s4755_s8  ;;  %p4760_p0 = scmp.lt.u32.totalorder %s5756_s10, %s5942_s13 }
0x136c   : > { %p4761_p10 = scmp.lt.u32.totalorder %s4759_s1, %s4755_s8  ;;  %p4763_p3 = scmp.lt.u32.totalorder %s4755_s8, %s5756_s10 }
0x136d   : > { %p4757_p9 = pnand %p4756_p7, %p5943_p4 }
0x136e   : > { %p4762_p12 = por %p4761_p10, %p4760_p0 }
0x136f   : > { %p4758_p6 = pneg %p4757_p9 }
0x1370   : > { %p4764_p13 = por %p4763_p3, %p4762_p12 }
0x1372   : > { %p4765_p8 = pnand %p4764_p13, %p4758_p6 }
0x1374   : > { %4768 = shalt.err (!%p4765_p8)
}
0x1375   : > { %3922 = dma.vmem_to_hbm [thread:$0]  (%p5943_p4), %s5758_s3, 128, %s5756_s10, %s3139_s5  }
0x1376 PF: > { %s5944_s30 = sld [smem:[#allocation80_spill]]  ;;  %s5945_s0 = sld [smem:[#allocation77_spill]] }
0x1377   : > { %s3165_s20 = sand.u32 1, %s4839_s22  }
0x1378   : > { %s3166_s26 = scalar_lea.sflag [#allocation9], %s3165_s20 }
0x137c   : > { %p5946_p11 = scmp.ne.s32.totalorder %s5944_s30, 0  ;;  %p5947_p5 = scmp.ge.s32.totalorder %s5945_s0, 2 }
0x137e   : > { %p3984_p1 = pnand %p5947_p5, %p5946_p11 }
0x1380   : > { %4834 = dma.done.wait (!%p3984_p1), %s3166_s26, 128  }
0x1381   : > { %4836 = vsyncadd (!%p3984_p1), %s3166_s26, 4294967168  ;;  %s90_s1 = sadd.s32 1, %s5945_s0   ;;  %s5948_s19 = sld [smem:[#allocation76_spill]] }
0x1382   : > { %p87_p2 = scmp.ge.s32.totalorder %s90_s1, 4   ;;  %s5949_s0 = sld [smem:[#allocation79_spill]] }
0x1383   : > { %s5950_s6 = sld [smem:[#allocation78_spill]]  ;;  %s5951_s22 = smov %s4843_s23 }
0x1384   : > { %s5953_s26 = smov %s4855_s28  ;;  %89 = sbr.rel (!%p87_p2) target bundleno = 79 (0x4f), region = 318 }
0x1387   : > { %s5952_s23 = smov %s5948_s19 }
0x1389   : > { %s5954_s28 = smov %s5950_s6 }
0x138b   :  { %3171 = vsyncpa [#allocation8], 1 }
0x138c   :  { %3173 = vsyncpa [#allocation8 + $0x1], 1 }
0x138d   :  { %3174 = vsyncpa [#allocation11], 1 }
0x138e   :  { %3176 = vsyncpa [#allocation11 + $0x1], 1 }
0x138f   :  { %3177 = vsyncpa [#allocation14], 1 }
0x1390   :  { %3178 = vsyncpa [#allocation17], 1 }
0x1391   :  { %3179 = vsyncpa [#allocation20], 1 }
0x1392   :  { %3180 = vsyncpa [#allocation23], 1 }
0x1393   :  { %3181 = vsyncpa [#allocation26], 1 }
0x1394   :  { %3182 = vsyncpa [#allocation29], 1 }
0x1395   :  { %3183 = vsyncpa [#allocation32], 1 }
0x1396   :  { %3184 = vsyncpa [#allocation35], 1 }
0x1397   :  { %3185 = vsyncpa [#allocation9], 1 }
0x1398   :  { %3187 = vsyncpa [#allocation9 + $0x1], 1 }

</bundles_post_ra>
